<compile_context>
chip_gen: v7x
topology: tpu7x:2x2x1
jax: 0.10.0
libtpu: 0.0.40
codegen_flags: <defaults>
</compile_context>

<pallas_src>
import functools
import math

import jax
import jax.numpy as jnp
import numpy as np
from jax.experimental import pallas as pl
from jax.experimental.pallas import tpu as pltpu

WINDOW_SIZE = 11
NUM_CHANNEL = 3
MSSSIM_WEIGHTS = np.array([0.0448, 0.2856, 0.3001, 0.2363, 0.1333], dtype=np.float32)
LEVELS = MSSSIM_WEIGHTS.shape[0]
C1 = 0.01 ** 2
C2 = 0.03 ** 2
OUT_ROWS = 16        # 2*LEVELS rounded up to a multiple of 8 -> unmasked store
OUT_LANES = 128      # lane-dense output block


def gaussian_1d(window_size, sigma):
    """Matches MSSSIMMetric.gaussian (normalized 1D Gaussian, float32)."""
    g = np.array(
        [math.exp(-(x - window_size // 2) ** 2 / float(2 * sigma ** 2))
         for x in range(window_size)],
        dtype=np.float32,
    )
    return g / g.sum()


# --------------------------------------------------------------------------- #
# Constant-matrix construction (numpy, once per (C, H, W)).
# --------------------------------------------------------------------------- #
def _band_matrix(n, g):
    """(n, n) M with M[j, i] = g[j - i + pad]; row @ M == zero-padded 'same' conv."""
    ws = g.shape[0]
    pad = ws // 2
    m = np.zeros((n, n), np.float32)
    for i in range(n):
        for j in range(max(0, i - pad), min(n, i + pad + 1)):
            m[j, i] = g[j - i + pad]
    return m


def _pool_matrix(n):
    """(n, n//2) P with 0.5 at (2j, j), (2j+1, j); row @ P == avg-pool(kernel=2)."""
    n2 = n // 2
    m = np.zeros((n, n2), np.float32)
    for j in range(n2):
        m[2 * j, j] = 0.5
        m[2 * j + 1, j] = 0.5
    return m


def _block_diag(block, reps):
    r, c = block.shape
    m = np.zeros((reps * r, reps * c), np.float32)
    for k in range(reps):
        m[k * r:(k + 1) * r, k * c:(k + 1) * c] = block
    return m


@functools.lru_cache(maxsize=None)
def _level_constants(C, H, W):
    """Padded per-level constant stacks (top-left corner holds level l's matrix)."""
    g = gaussian_1d(WINDOW_SIZE, 1.5)
    gw_all = np.zeros((LEVELS, W, W), np.float32)                    # W-axis Gaussian
    gh_all = np.zeros((LEVELS, C * H, C * H), np.float32)            # H-axis (block-diag over C)
    pw_all = np.zeros((max(LEVELS - 1, 1), W, max(W // 2, 1)), np.float32)
    ph_all = np.zeros((max(LEVELS - 1, 1), max(C * (H // 2), 1), C * H), np.float32)
    h, w = H, W
    for l in range(LEVELS):
        gw_all[l, :w, :w] = _band_matrix(w, g)
        gh_all[l, :C * h, :C * h] = _block_diag(_band_matrix(h, g), C)
        if l < LEVELS - 1:
            h2, w2 = h // 2, w // 2
            pw_all[l, :w, :w2] = _pool_matrix(w)
            ph_all[l, :C * h2, :C * h] = _block_diag(_pool_matrix(h).T, C)
            h, w = h2, w2
    return gw_all, gh_all, pw_all, ph_all


# --------------------------------------------------------------------------- #
# Fused multi-level Pallas kernel: one batch element per grid step.
# --------------------------------------------------------------------------- #
def _msssim_kernel(img1_ref, img2_ref, gw_ref, gh_ref, pw_ref, ph_ref, out_ref,
                   *, C, H, W, levels):
    # Row-major 2D layout: rows = (channel, image-row) on sublanes, W on lanes.
    x1 = img1_ref[...].reshape(C * H, W)
    x2 = img2_ref[...].reshape(C * H, W)

    # In-register result accumulator: row 2l = ssim mean, row 2l+1 = cs mean.
    row_idx = jax.lax.broadcasted_iota(jnp.int32, (OUT_ROWS, OUT_LANES), 0)
    acc = jnp.zeros((OUT_ROWS, OUT_LANES), jnp.float32)

    h, w = H, W
    for l in range(levels):
        r = C * h
        gw = gw_ref[l, :w, :w]        # (w, w)  Gaussian along W
        gh = gh_ref[l, :r, :r]        # (r, r)  Gaussian along H (per-channel blocks)

        if r % 8 == 0:
            # Fused W-pass: one MXU matmul filters all five operands at once.
            # Row offsets k*r are multiples of 8, so the split stays aligned.
            ops = jnp.concatenate([x1, x2, x1 * x1, x2 * x2, x1 * x2], axis=0)
            t = jnp.dot(ops, gw, preferred_element_type=jnp.float32)
            mu1 = jnp.dot(gh, t[0 * r:1 * r], preferred_element_type=jnp.float32)
            mu2 = jnp.dot(gh, t[1 * r:2 * r], preferred_element_type=jnp.float32)
            e11 = jnp.dot(gh, t[2 * r:3 * r], preferred_element_type=jnp.float32)
            e22 = jnp.dot(gh, t[3 * r:4 * r], preferred_element_type=jnp.float32)
            e12 = jnp.dot(gh, t[4 * r:5 * r], preferred_element_type=jnp.float32)
        else:
            # Tiny deep levels: per-operand path (avoids unaligned sublane slices).
            def gauss_filter(slab):
                t = jnp.dot(slab, gw, preferred_element_type=jnp.float32)
                return jnp.dot(gh, t, preferred_element_type=jnp.float32)

            mu1 = gauss_filter(x1)
            mu2 = gauss_filter(x2)
            e11 = gauss_filter(x1 * x1)
            e22 = gauss_filter(x2 * x2)
            e12 = gauss_filter(x1 * x2)

        mu1_sq = mu1 * mu1
        mu2_sq = mu2 * mu2
        mu1_mu2 = mu1 * mu2
        sigma1_sq = e11 - mu1_sq
        sigma2_sq = e22 - mu2_sq
        sigma12 = e12 - mu1_mu2

        v1 = 2.0 * sigma12 + C2
        v2 = sigma1_sq + sigma2_sq + C2
        ssim_map = ((2.0 * mu1_mu2 + C1) * v1) / ((mu1_sq + mu2_sq + C1) * v2)
        cs_map = v1 / v2

        acc = jnp.where(row_idx == 2 * l, jnp.mean(ssim_map), acc)
        acc = jnp.where(row_idx == 2 * l + 1, jnp.mean(cs_map), acc)

        if l < levels - 1:
            h2, w2 = h // 2, w // 2
            pw = pw_ref[l, :w, :w2]             # (w, w2)       2x2 avg-pool along W
            ph = ph_ref[l, :C * h2, :C * h]     # (C*h2, C*h)   2x2 avg-pool along H

            def pool2x2(slab):
                t = jnp.dot(slab, pw, preferred_element_type=jnp.float32)
                return jnp.dot(ph, t, preferred_element_type=jnp.float32)

            x1 = pool2x2(x1)
            x2 = pool2x2(x2)
            h, w = h2, w2

    out_ref[0] = acc   # single unmasked, lane-dense (16, 128) store


def _msssim_per_level(img1, img2):
    """Returns (ssim[B, LEVELS], cs[B, LEVELS]) from one fused pallas_call."""
    B, C, H, W = img1.shape
    gw_all, gh_all, pw_all, ph_all = _level_constants(C, H, W)

    kernel = functools.partial(_msssim_kernel, C=C, H=H, W=W, levels=LEVELS)

    def const_spec(shape):
        return pl.BlockSpec(shape, lambda b: (0, 0, 0))

    out = pl.pallas_call(
        kernel,
        out_shape=jax.ShapeDtypeStruct((B, OUT_ROWS, OUT_LANES), jnp.float32),
        grid_spec=pltpu.PrefetchScalarGridSpec(
            num_scalar_prefetch=0,
            grid=(B,),
            in_specs=[
                pl.BlockSpec((1, C, H, W), lambda b: (b, 0, 0, 0)),
                pl.BlockSpec((1, C, H, W), lambda b: (b, 0, 0, 0)),
                const_spec(gw_all.shape),
                const_spec(gh_all.shape),
                const_spec(pw_all.shape),
                const_spec(ph_all.shape),
            ],
            out_specs=pl.BlockSpec((1, OUT_ROWS, OUT_LANES), lambda b: (b, 0, 0)),
        ),
        compiler_params=pltpu.CompilerParams(
            dimension_semantics=("parallel",),   # batch splits across v7x cores
        ),
    )(img1.astype(jnp.float32), img2.astype(jnp.float32),
      jnp.asarray(gw_all), jnp.asarray(gh_all),
      jnp.asarray(pw_all), jnp.asarray(ph_all))

    ssims = out[:, 0:2 * LEVELS:2, 0]   # (B, LEVELS)
    mcs = out[:, 1:2 * LEVELS:2, 0]     # (B, LEVELS)
    return ssims, mcs


def msssim_metric(img1, img2):
    ssims, mcs = _msssim_per_level(img1, img2)
    weights = jnp.asarray(MSSSIM_WEIGHTS)
    ssims = (ssims + 1.0) / 2.0
    mcs = (mcs + 1.0) / 2.0
    pow1 = mcs ** weights.reshape(1, LEVELS)
    pow2 = ssims ** weights.reshape(1, LEVELS)
    # NOTE: intentionally replicates the reference module's broadcasting quirk
    # (last-level ssim term multiplied into every factor).
    return jnp.prod(pow1[:, :-1] * pow2[:, -1].reshape(-1, 1), axis=1)


# --------------------------------------------------------------------------- #
# Pure-JAX reference (lax grouped conv) for a correctness check.
# --------------------------------------------------------------------------- #
def avg_pool2x2(x):
    B, C, H, W = x.shape
    H2, W2 = H // 2, W // 2
    x = x[:, :, :H2 * 2, :W2 * 2]
    return x.reshape(B, C, H2, 2, W2, 2).mean(axis=(3, 5))


def _msssim_reference(img1, img2):
    g = gaussian_1d(WINDOW_SIZE, 1.5)
    w2d = jnp.asarray(np.outer(g, g), jnp.float32)
    window = jnp.broadcast_to(w2d, (NUM_CHANNEL, 1, WINDOW_SIZE, WINDOW_SIZE))
    pad = WINDOW_SIZE // 2

    def conv(x):
        return jax.lax.conv_general_dilated(
            x, window, (1, 1), [(pad, pad), (pad, pad)],
            dimension_numbers=("NCHW", "OIHW", "NCHW"),
            feature_group_count=NUM_CHANNEL)

    def ssim(a, b):
        mu1, mu2 = conv(a), conv(b)
        mu1_sq, mu2_sq, mu1_mu2 = mu1 * mu1, mu2 * mu2, mu1 * mu2
        s1 = conv(a * a) - mu1_sq
        s2 = conv(b * b) - mu2_sq
        s12 = conv(a * b) - mu1_mu2
        v1 = 2.0 * s12 + C2
        v2 = s1 + s2 + C2
        smap = ((2.0 * mu1_mu2 + C1) * v1) / ((mu1_sq + mu2_sq + C1) * v2)
        return smap.mean(axis=(1, 2, 3)), (v1 / v2).mean(axis=(1, 2, 3))

    weights = jnp.asarray(MSSSIM_WEIGHTS)
    ssims, mcs = [], []
    x1, x2 = img1.astype(jnp.float32), img2.astype(jnp.float32)
    for _ in range(LEVELS):
        s, c = ssim(x1, x2)
        ssims.append(s)
        mcs.append(c)
        x1 = avg_pool2x2(x1)
        x2 = avg_pool2x2(x2)
    ssims = (jnp.stack(ssims, axis=1) + 1.0) / 2.0
    mcs = (jnp.stack(mcs, axis=1) + 1.0) / 2.0
    pow1 = mcs ** weights.reshape(1, LEVELS)
    pow2 = ssims ** weights.reshape(1, LEVELS)
    return jnp.prod(pow1[:, :-1] * pow2[:, -1].reshape(-1, 1), axis=1)


if __name__ == "__main__":
    key = jax.random.PRNGKey(0)
    k1, k2 = jax.random.split(key)
    # 32x32 keeps all 5 pyramid levels valid, as the reference module requires.
    B, C, H, W = 2, NUM_CHANNEL, 32, 32
    img1 = jax.random.uniform(k1, (B, C, H, W), dtype=jnp.float32)
    img2 = jax.random.uniform(k2, (B, C, H, W), dtype=jnp.float32)

    out = jax.block_until_ready(jax.jit(msssim_metric)(img1, img2))
    ref = jax.block_until_ready(_msssim_reference(img1, img2))

    assert out.shape == (B,)
    np.testing.assert_allclose(np.asarray(out), np.asarray(ref),
                               rtol=1e-3, atol=1e-4)
    print("KERNEL_OK")
</pallas_src>

<mosaic_0001>
module attributes {stable_mosaic.version = 11 : i64} {
  func.func @_msssim_kernel(%arg0: i32, %arg1: memref<1x3x32x32xf32, #tpu.memory_space<vmem>>, %arg2: memref<1x3x32x32xf32, #tpu.memory_space<vmem>>, %arg3: memref<5x32x32xf32, #tpu.memory_space<vmem>>, %arg4: memref<5x96x96xf32, #tpu.memory_space<vmem>>, %arg5: memref<4x32x16xf32, #tpu.memory_space<vmem>>, %arg6: memref<4x48x96xf32, #tpu.memory_space<vmem>>, %arg7: memref<1x16x128xf32, #tpu.memory_space<vmem>>) attributes {dimension_semantics = [#tpu.dimension_semantics<parallel>], iteration_bounds = array<i64: 2>, scalar_prefetch = 0 : i64, scratch_operands = 0 : i64, tpu.core_type = #tpu.core_type<tc>, window_params = [{transform_indices = @transform_0, window_bounds = array<i64: 1, 3, 32, 32>}, {transform_indices = @transform_1, window_bounds = array<i64: 1, 3, 32, 32>}, {pipeline_mode = #tpu.pipeline_mode<synchronous>, transform_indices = @transform_2, window_bounds = array<i64: 5, 32, 32>}, {pipeline_mode = #tpu.pipeline_mode<synchronous>, transform_indices = @transform_3, window_bounds = array<i64: 5, 96, 96>}, {pipeline_mode = #tpu.pipeline_mode<synchronous>, transform_indices = @transform_4, window_bounds = array<i64: 4, 32, 16>}, {pipeline_mode = #tpu.pipeline_mode<synchronous>, transform_indices = @transform_5, window_bounds = array<i64: 4, 48, 96>}, {transform_indices = @transform_6, window_bounds = array<i64: 1, 16, 128>}]} {
    %c0 = arith.constant 0 : index
    %c0_0 = arith.constant 0 : index
    %c0_1 = arith.constant 0 : index
    %c0_2 = arith.constant 0 : index
    %0 = vector.load %arg1[%c0, %c0_0, %c0_1, %c0_2] : memref<1x3x32x32xf32, #tpu.memory_space<vmem>>, vector<1x3x32x32xf32>
    %1 = vector.shape_cast %0 : vector<1x3x32x32xf32> to vector<96x32xf32>
    %c0_3 = arith.constant 0 : index
    %c0_4 = arith.constant 0 : index
    %c0_5 = arith.constant 0 : index
    %c0_6 = arith.constant 0 : index
    %2 = vector.load %arg2[%c0_3, %c0_4, %c0_5, %c0_6] : memref<1x3x32x32xf32, #tpu.memory_space<vmem>>, vector<1x3x32x32xf32>
    %3 = vector.shape_cast %2 : vector<1x3x32x32xf32> to vector<96x32xf32>
    %4 = tpu.iota {dimensions = array<i32: 0>} : vector<16x128xi32>
    %cst = arith.constant 0.000000e+00 : f32
    %5 = vector.broadcast %cst : f32 to vector<16x128xf32>
    %c0_7 = arith.constant 0 : index
    %c0_8 = arith.constant 0 : index
    %c0_9 = arith.constant 0 : index
    %6 = vector.load %arg3[%c0_7, %c0_8, %c0_9] : memref<5x32x32xf32, #tpu.memory_space<vmem>>, vector<1x32x32xf32>
    %7 = vector.shape_cast %6 : vector<1x32x32xf32> to vector<32x32xf32>
    %c0_10 = arith.constant 0 : index
    %c0_11 = arith.constant 0 : index
    %c0_12 = arith.constant 0 : index
    %8 = vector.load %arg4[%c0_10, %c0_11, %c0_12] : memref<5x96x96xf32, #tpu.memory_space<vmem>>, vector<1x96x96xf32>
    %9 = vector.shape_cast %8 : vector<1x96x96xf32> to vector<96x96xf32>
    %10 = arith.mulf %1, %1 : vector<96x32xf32>
    %11 = arith.mulf %3, %3 : vector<96x32xf32>
    %12 = arith.mulf %1, %3 : vector<96x32xf32>
    %13 = tpu.concatenate %1, %3, %10, %11, %12 in 0 : vector<96x32xf32>, vector<96x32xf32>, vector<96x32xf32>, vector<96x32xf32>, vector<96x32xf32> -> vector<480x32xf32>
    %cst_13 = arith.constant dense<0.000000e+00> : vector<480x32xf32>
    %14 = tpu.matmul %13, %7, %cst_13 {dimension_numbers = #tpu.dot_dimension_numbers<[1], [0], [0], [1], [0, 0, 1, 1], [], []>} : vector<480x32xf32>, vector<32x32xf32>, vector<480x32xf32> -> vector<480x32xf32>
    %15 = vector.extract_strided_slice %14 {offsets = [0, 0], sizes = [96, 32], strides = [1, 1]} : vector<480x32xf32> to vector<96x32xf32>
    %cst_14 = arith.constant dense<0.000000e+00> : vector<96x32xf32>
    %16 = tpu.matmul %9, %15, %cst_14 {dimension_numbers = #tpu.dot_dimension_numbers<[1], [0], [0], [1], [0, 0, 1, 1], [], []>} : vector<96x96xf32>, vector<96x32xf32>, vector<96x32xf32> -> vector<96x32xf32>
    %17 = vector.extract_strided_slice %14 {offsets = [96, 0], sizes = [96, 32], strides = [1, 1]} : vector<480x32xf32> to vector<96x32xf32>
    %cst_15 = arith.constant dense<0.000000e+00> : vector<96x32xf32>
    %18 = tpu.matmul %9, %17, %cst_15 {dimension_numbers = #tpu.dot_dimension_numbers<[1], [0], [0], [1], [0, 0, 1, 1], [], []>} : vector<96x96xf32>, vector<96x32xf32>, vector<96x32xf32> -> vector<96x32xf32>
    %19 = vector.extract_strided_slice %14 {offsets = [192, 0], sizes = [96, 32], strides = [1, 1]} : vector<480x32xf32> to vector<96x32xf32>
    %cst_16 = arith.constant dense<0.000000e+00> : vector<96x32xf32>
    %20 = tpu.matmul %9, %19, %cst_16 {dimension_numbers = #tpu.dot_dimension_numbers<[1], [0], [0], [1], [0, 0, 1, 1], [], []>} : vector<96x96xf32>, vector<96x32xf32>, vector<96x32xf32> -> vector<96x32xf32>
    %21 = vector.extract_strided_slice %14 {offsets = [288, 0], sizes = [96, 32], strides = [1, 1]} : vector<480x32xf32> to vector<96x32xf32>
    %cst_17 = arith.constant dense<0.000000e+00> : vector<96x32xf32>
    %22 = tpu.matmul %9, %21, %cst_17 {dimension_numbers = #tpu.dot_dimension_numbers<[1], [0], [0], [1], [0, 0, 1, 1], [], []>} : vector<96x96xf32>, vector<96x32xf32>, vector<96x32xf32> -> vector<96x32xf32>
    %23 = vector.extract_strided_slice %14 {offsets = [384, 0], sizes = [96, 32], strides = [1, 1]} : vector<480x32xf32> to vector<96x32xf32>
    %cst_18 = arith.constant dense<0.000000e+00> : vector<96x32xf32>
    %24 = tpu.matmul %9, %23, %cst_18 {dimension_numbers = #tpu.dot_dimension_numbers<[1], [0], [0], [1], [0, 0, 1, 1], [], []>} : vector<96x96xf32>, vector<96x32xf32>, vector<96x32xf32> -> vector<96x32xf32>
    %25 = arith.mulf %16, %16 : vector<96x32xf32>
    %26 = arith.mulf %18, %18 : vector<96x32xf32>
    %27 = arith.mulf %16, %18 : vector<96x32xf32>
    %28 = arith.subf %20, %25 : vector<96x32xf32>
    %29 = arith.subf %22, %26 : vector<96x32xf32>
    %30 = arith.subf %24, %27 : vector<96x32xf32>
    %cst_19 = arith.constant 2.000000e+00 : f32
    %31 = vector.broadcast %cst_19 : f32 to vector<96x32xf32>
    %32 = arith.mulf %31, %30 : vector<96x32xf32>
    %cst_20 = arith.constant 8.99999984E-4 : f32
    %33 = vector.broadcast %cst_20 : f32 to vector<96x32xf32>
    %34 = arith.addf %32, %33 : vector<96x32xf32>
    %35 = arith.addf %28, %29 : vector<96x32xf32>
    %cst_21 = arith.constant 8.99999984E-4 : f32
    %36 = vector.broadcast %cst_21 : f32 to vector<96x32xf32>
    %37 = arith.addf %35, %36 : vector<96x32xf32>
    %cst_22 = arith.constant 2.000000e+00 : f32
    %38 = vector.broadcast %cst_22 : f32 to vector<96x32xf32>
    %39 = arith.mulf %38, %27 : vector<96x32xf32>
    %cst_23 = arith.constant 9.99999974E-5 : f32
    %40 = vector.broadcast %cst_23 : f32 to vector<96x32xf32>
    %41 = arith.addf %39, %40 : vector<96x32xf32>
    %42 = arith.mulf %41, %34 : vector<96x32xf32>
    %43 = arith.addf %25, %26 : vector<96x32xf32>
    %cst_24 = arith.constant 9.99999974E-5 : f32
    %44 = vector.broadcast %cst_24 : f32 to vector<96x32xf32>
    %45 = arith.addf %43, %44 : vector<96x32xf32>
    %46 = arith.mulf %45, %37 : vector<96x32xf32>
    %47 = arith.divf %42, %46 : vector<96x32xf32>
    %48 = arith.divf %34, %37 : vector<96x32xf32>
    %c0_i32 = arith.constant 0 : i32
    %49 = vector.broadcast %c0_i32 : i32 to vector<16x128xi32>
    %50 = arith.cmpi eq, %4, %49 : vector<16x128xi32>
    %51 = vector.shape_cast %47 : vector<96x32xf32> to vector<1x96x32xf32>
    %cst_25 = arith.constant dense<0.000000e+00> : vector<1xf32>
    %52 = vector.multi_reduction <add>, %51, %cst_25 [1, 2] : vector<1x96x32xf32> to vector<1xf32>
    %53 = vector.shape_cast %52 : vector<1xf32> to vector<1x1x1xf32>
    %54 = vector.extract %53[0, 0, 0] : f32 from vector<1x1x1xf32>
    %cst_26 = arith.constant 3.072000e+03 : f32
    %55 = arith.divf %54, %cst_26 : f32
    %56 = vector.broadcast %55 : f32 to vector<16x128xf32>
    %57 = arith.select %50, %56, %5 : vector<16x128xi1>, vector<16x128xf32>
    %c1_i32 = arith.constant 1 : i32
    %58 = vector.broadcast %c1_i32 : i32 to vector<16x128xi32>
    %59 = arith.cmpi eq, %4, %58 : vector<16x128xi32>
    %60 = vector.shape_cast %48 : vector<96x32xf32> to vector<1x96x32xf32>
    %cst_27 = arith.constant dense<0.000000e+00> : vector<1xf32>
    %61 = vector.multi_reduction <add>, %60, %cst_27 [1, 2] : vector<1x96x32xf32> to vector<1xf32>
    %62 = vector.shape_cast %61 : vector<1xf32> to vector<1x1x1xf32>
    %63 = vector.extract %62[0, 0, 0] : f32 from vector<1x1x1xf32>
    %cst_28 = arith.constant 3.072000e+03 : f32
    %64 = arith.divf %63, %cst_28 : f32
    %65 = vector.broadcast %64 : f32 to vector<16x128xf32>
    %66 = arith.select %59, %65, %57 : vector<16x128xi1>, vector<16x128xf32>
    %c0_29 = arith.constant 0 : index
    %c0_30 = arith.constant 0 : index
    %c0_31 = arith.constant 0 : index
    %67 = vector.load %arg5[%c0_29, %c0_30, %c0_31] : memref<4x32x16xf32, #tpu.memory_space<vmem>>, vector<1x32x16xf32>
    %68 = vector.shape_cast %67 : vector<1x32x16xf32> to vector<32x16xf32>
    %c0_32 = arith.constant 0 : index
    %c0_33 = arith.constant 0 : index
    %c0_34 = arith.constant 0 : index
    %69 = vector.load %arg6[%c0_32, %c0_33, %c0_34] : memref<4x48x96xf32, #tpu.memory_space<vmem>>, vector<1x48x96xf32>
    %70 = vector.shape_cast %69 : vector<1x48x96xf32> to vector<48x96xf32>
    %cst_35 = arith.constant dense<0.000000e+00> : vector<96x16xf32>
    %71 = tpu.matmul %1, %68, %cst_35 {dimension_numbers = #tpu.dot_dimension_numbers<[1], [0], [0], [1], [0, 0, 1, 1], [], []>} : vector<96x32xf32>, vector<32x16xf32>, vector<96x16xf32> -> vector<96x16xf32>
    %cst_36 = arith.constant dense<0.000000e+00> : vector<48x16xf32>
    %72 = tpu.matmul %70, %71, %cst_36 {dimension_numbers = #tpu.dot_dimension_numbers<[1], [0], [0], [1], [0, 0, 1, 1], [], []>} : vector<48x96xf32>, vector<96x16xf32>, vector<48x16xf32> -> vector<48x16xf32>
    %cst_37 = arith.constant dense<0.000000e+00> : vector<96x16xf32>
    %73 = tpu.matmul %3, %68, %cst_37 {dimension_numbers = #tpu.dot_dimension_numbers<[1], [0], [0], [1], [0, 0, 1, 1], [], []>} : vector<96x32xf32>, vector<32x16xf32>, vector<96x16xf32> -> vector<96x16xf32>
    %cst_38 = arith.constant dense<0.000000e+00> : vector<48x16xf32>
    %74 = tpu.matmul %70, %73, %cst_38 {dimension_numbers = #tpu.dot_dimension_numbers<[1], [0], [0], [1], [0, 0, 1, 1], [], []>} : vector<48x96xf32>, vector<96x16xf32>, vector<48x16xf32> -> vector<48x16xf32>
    %c1 = arith.constant 1 : index
    %c0_39 = arith.constant 0 : index
    %c0_40 = arith.constant 0 : index
    %75 = vector.load %arg3[%c1, %c0_39, %c0_40] : memref<5x32x32xf32, #tpu.memory_space<vmem>>, vector<1x16x16xf32>
    %76 = vector.shape_cast %75 : vector<1x16x16xf32> to vector<16x16xf32>
    %c1_41 = arith.constant 1 : index
    %c0_42 = arith.constant 0 : index
    %c0_43 = arith.constant 0 : index
    %77 = vector.load %arg4[%c1_41, %c0_42, %c0_43] : memref<5x96x96xf32, #tpu.memory_space<vmem>>, vector<1x48x48xf32>
    %78 = vector.shape_cast %77 : vector<1x48x48xf32> to vector<48x48xf32>
    %79 = arith.mulf %72, %72 : vector<48x16xf32>
    %80 = arith.mulf %74, %74 : vector<48x16xf32>
    %81 = arith.mulf %72, %74 : vector<48x16xf32>
    %82 = tpu.concatenate %72, %74, %79, %80, %81 in 0 : vector<48x16xf32>, vector<48x16xf32>, vector<48x16xf32>, vector<48x16xf32>, vector<48x16xf32> -> vector<240x16xf32>
    %cst_44 = arith.constant dense<0.000000e+00> : vector<240x16xf32>
    %83 = tpu.matmul %82, %76, %cst_44 {dimension_numbers = #tpu.dot_dimension_numbers<[1], [0], [0], [1], [0, 0, 1, 1], [], []>} : vector<240x16xf32>, vector<16x16xf32>, vector<240x16xf32> -> vector<240x16xf32>
    %84 = vector.extract_strided_slice %83 {offsets = [0, 0], sizes = [48, 16], strides = [1, 1]} : vector<240x16xf32> to vector<48x16xf32>
    %cst_45 = arith.constant dense<0.000000e+00> : vector<48x16xf32>
    %85 = tpu.matmul %78, %84, %cst_45 {dimension_numbers = #tpu.dot_dimension_numbers<[1], [0], [0], [1], [0, 0, 1, 1], [], []>} : vector<48x48xf32>, vector<48x16xf32>, vector<48x16xf32> -> vector<48x16xf32>
    %86 = vector.extract_strided_slice %83 {offsets = [48, 0], sizes = [48, 16], strides = [1, 1]} : vector<240x16xf32> to vector<48x16xf32>
    %cst_46 = arith.constant dense<0.000000e+00> : vector<48x16xf32>
    %87 = tpu.matmul %78, %86, %cst_46 {dimension_numbers = #tpu.dot_dimension_numbers<[1], [0], [0], [1], [0, 0, 1, 1], [], []>} : vector<48x48xf32>, vector<48x16xf32>, vector<48x16xf32> -> vector<48x16xf32>
    %88 = vector.extract_strided_slice %83 {offsets = [96, 0], sizes = [48, 16], strides = [1, 1]} : vector<240x16xf32> to vector<48x16xf32>
    %cst_47 = arith.constant dense<0.000000e+00> : vector<48x16xf32>
    %89 = tpu.matmul %78, %88, %cst_47 {dimension_numbers = #tpu.dot_dimension_numbers<[1], [0], [0], [1], [0, 0, 1, 1], [], []>} : vector<48x48xf32>, vector<48x16xf32>, vector<48x16xf32> -> vector<48x16xf32>
    %90 = vector.extract_strided_slice %83 {offsets = [144, 0], sizes = [48, 16], strides = [1, 1]} : vector<240x16xf32> to vector<48x16xf32>
    %cst_48 = arith.constant dense<0.000000e+00> : vector<48x16xf32>
    %91 = tpu.matmul %78, %90, %cst_48 {dimension_numbers = #tpu.dot_dimension_numbers<[1], [0], [0], [1], [0, 0, 1, 1], [], []>} : vector<48x48xf32>, vector<48x16xf32>, vector<48x16xf32> -> vector<48x16xf32>
    %92 = vector.extract_strided_slice %83 {offsets = [192, 0], sizes = [48, 16], strides = [1, 1]} : vector<240x16xf32> to vector<48x16xf32>
    %cst_49 = arith.constant dense<0.000000e+00> : vector<48x16xf32>
    %93 = tpu.matmul %78, %92, %cst_49 {dimension_numbers = #tpu.dot_dimension_numbers<[1], [0], [0], [1], [0, 0, 1, 1], [], []>} : vector<48x48xf32>, vector<48x16xf32>, vector<48x16xf32> -> vector<48x16xf32>
    %94 = arith.mulf %85, %85 : vector<48x16xf32>
    %95 = arith.mulf %87, %87 : vector<48x16xf32>
    %96 = arith.mulf %85, %87 : vector<48x16xf32>
    %97 = arith.subf %89, %94 : vector<48x16xf32>
    %98 = arith.subf %91, %95 : vector<48x16xf32>
    %99 = arith.subf %93, %96 : vector<48x16xf32>
    %cst_50 = arith.constant 2.000000e+00 : f32
    %100 = vector.broadcast %cst_50 : f32 to vector<48x16xf32>
    %101 = arith.mulf %100, %99 : vector<48x16xf32>
    %cst_51 = arith.constant 8.99999984E-4 : f32
    %102 = vector.broadcast %cst_51 : f32 to vector<48x16xf32>
    %103 = arith.addf %101, %102 : vector<48x16xf32>
    %104 = arith.addf %97, %98 : vector<48x16xf32>
    %cst_52 = arith.constant 8.99999984E-4 : f32
    %105 = vector.broadcast %cst_52 : f32 to vector<48x16xf32>
    %106 = arith.addf %104, %105 : vector<48x16xf32>
    %cst_53 = arith.constant 2.000000e+00 : f32
    %107 = vector.broadcast %cst_53 : f32 to vector<48x16xf32>
    %108 = arith.mulf %107, %96 : vector<48x16xf32>
    %cst_54 = arith.constant 9.99999974E-5 : f32
    %109 = vector.broadcast %cst_54 : f32 to vector<48x16xf32>
    %110 = arith.addf %108, %109 : vector<48x16xf32>
    %111 = arith.mulf %110, %103 : vector<48x16xf32>
    %112 = arith.addf %94, %95 : vector<48x16xf32>
    %cst_55 = arith.constant 9.99999974E-5 : f32
    %113 = vector.broadcast %cst_55 : f32 to vector<48x16xf32>
    %114 = arith.addf %112, %113 : vector<48x16xf32>
    %115 = arith.mulf %114, %106 : vector<48x16xf32>
    %116 = arith.divf %111, %115 : vector<48x16xf32>
    %117 = arith.divf %103, %106 : vector<48x16xf32>
    %c2_i32 = arith.constant 2 : i32
    %118 = vector.broadcast %c2_i32 : i32 to vector<16x128xi32>
    %119 = arith.cmpi eq, %4, %118 : vector<16x128xi32>
    %120 = vector.shape_cast %116 : vector<48x16xf32> to vector<1x48x16xf32>
    %cst_56 = arith.constant dense<0.000000e+00> : vector<1xf32>
    %121 = vector.multi_reduction <add>, %120, %cst_56 [1, 2] : vector<1x48x16xf32> to vector<1xf32>
    %122 = vector.shape_cast %121 : vector<1xf32> to vector<1x1x1xf32>
    %123 = vector.extract %122[0, 0, 0] : f32 from vector<1x1x1xf32>
    %cst_57 = arith.constant 7.680000e+02 : f32
    %124 = arith.divf %123, %cst_57 : f32
    %125 = vector.broadcast %124 : f32 to vector<16x128xf32>
    %126 = arith.select %119, %125, %66 : vector<16x128xi1>, vector<16x128xf32>
    %c3_i32 = arith.constant 3 : i32
    %127 = vector.broadcast %c3_i32 : i32 to vector<16x128xi32>
    %128 = arith.cmpi eq, %4, %127 : vector<16x128xi32>
    %129 = vector.shape_cast %117 : vector<48x16xf32> to vector<1x48x16xf32>
    %cst_58 = arith.constant dense<0.000000e+00> : vector<1xf32>
    %130 = vector.multi_reduction <add>, %129, %cst_58 [1, 2] : vector<1x48x16xf32> to vector<1xf32>
    %131 = vector.shape_cast %130 : vector<1xf32> to vector<1x1x1xf32>
    %132 = vector.extract %131[0, 0, 0] : f32 from vector<1x1x1xf32>
    %cst_59 = arith.constant 7.680000e+02 : f32
    %133 = arith.divf %132, %cst_59 : f32
    %134 = vector.broadcast %133 : f32 to vector<16x128xf32>
    %135 = arith.select %128, %134, %126 : vector<16x128xi1>, vector<16x128xf32>
    %c1_60 = arith.constant 1 : index
    %c0_61 = arith.constant 0 : index
    %c0_62 = arith.constant 0 : index
    %136 = vector.load %arg5[%c1_60, %c0_61, %c0_62] : memref<4x32x16xf32, #tpu.memory_space<vmem>>, vector<1x16x8xf32>
    %137 = vector.shape_cast %136 : vector<1x16x8xf32> to vector<16x8xf32>
    %c1_63 = arith.constant 1 : index
    %c0_64 = arith.constant 0 : index
    %c0_65 = arith.constant 0 : index
    %138 = vector.load %arg6[%c1_63, %c0_64, %c0_65] : memref<4x48x96xf32, #tpu.memory_space<vmem>>, vector<1x24x48xf32>
    %139 = vector.shape_cast %138 : vector<1x24x48xf32> to vector<24x48xf32>
    %cst_66 = arith.constant dense<0.000000e+00> : vector<48x8xf32>
    %140 = tpu.matmul %72, %137, %cst_66 {dimension_numbers = #tpu.dot_dimension_numbers<[1], [0], [0], [1], [0, 0, 1, 1], [], []>} : vector<48x16xf32>, vector<16x8xf32>, vector<48x8xf32> -> vector<48x8xf32>
    %cst_67 = arith.constant dense<0.000000e+00> : vector<24x8xf32>
    %141 = tpu.matmul %139, %140, %cst_67 {dimension_numbers = #tpu.dot_dimension_numbers<[1], [0], [0], [1], [0, 0, 1, 1], [], []>} : vector<24x48xf32>, vector<48x8xf32>, vector<24x8xf32> -> vector<24x8xf32>
    %cst_68 = arith.constant dense<0.000000e+00> : vector<48x8xf32>
    %142 = tpu.matmul %74, %137, %cst_68 {dimension_numbers = #tpu.dot_dimension_numbers<[1], [0], [0], [1], [0, 0, 1, 1], [], []>} : vector<48x16xf32>, vector<16x8xf32>, vector<48x8xf32> -> vector<48x8xf32>
    %cst_69 = arith.constant dense<0.000000e+00> : vector<24x8xf32>
    %143 = tpu.matmul %139, %142, %cst_69 {dimension_numbers = #tpu.dot_dimension_numbers<[1], [0], [0], [1], [0, 0, 1, 1], [], []>} : vector<24x48xf32>, vector<48x8xf32>, vector<24x8xf32> -> vector<24x8xf32>
    %c2 = arith.constant 2 : index
    %c0_70 = arith.constant 0 : index
    %c0_71 = arith.constant 0 : index
    %144 = vector.load %arg3[%c2, %c0_70, %c0_71] : memref<5x32x32xf32, #tpu.memory_space<vmem>>, vector<1x8x8xf32>
    %145 = vector.shape_cast %144 : vector<1x8x8xf32> to vector<8x8xf32>
    %c2_72 = arith.constant 2 : index
    %c0_73 = arith.constant 0 : index
    %c0_74 = arith.constant 0 : index
    %146 = vector.load %arg4[%c2_72, %c0_73, %c0_74] : memref<5x96x96xf32, #tpu.memory_space<vmem>>, vector<1x24x24xf32>
    %147 = vector.shape_cast %146 : vector<1x24x24xf32> to vector<24x24xf32>
    %148 = arith.mulf %141, %141 : vector<24x8xf32>
    %149 = arith.mulf %143, %143 : vector<24x8xf32>
    %150 = arith.mulf %141, %143 : vector<24x8xf32>
    %151 = tpu.concatenate %141, %143, %148, %149, %150 in 0 : vector<24x8xf32>, vector<24x8xf32>, vector<24x8xf32>, vector<24x8xf32>, vector<24x8xf32> -> vector<120x8xf32>
    %cst_75 = arith.constant dense<0.000000e+00> : vector<120x8xf32>
    %152 = tpu.matmul %151, %145, %cst_75 {dimension_numbers = #tpu.dot_dimension_numbers<[1], [0], [0], [1], [0, 0, 1, 1], [], []>} : vector<120x8xf32>, vector<8x8xf32>, vector<120x8xf32> -> vector<120x8xf32>
    %153 = vector.extract_strided_slice %152 {offsets = [0, 0], sizes = [24, 8], strides = [1, 1]} : vector<120x8xf32> to vector<24x8xf32>
    %cst_76 = arith.constant dense<0.000000e+00> : vector<24x8xf32>
    %154 = tpu.matmul %147, %153, %cst_76 {dimension_numbers = #tpu.dot_dimension_numbers<[1], [0], [0], [1], [0, 0, 1, 1], [], []>} : vector<24x24xf32>, vector<24x8xf32>, vector<24x8xf32> -> vector<24x8xf32>
    %155 = vector.extract_strided_slice %152 {offsets = [24, 0], sizes = [24, 8], strides = [1, 1]} : vector<120x8xf32> to vector<24x8xf32>
    %cst_77 = arith.constant dense<0.000000e+00> : vector<24x8xf32>
    %156 = tpu.matmul %147, %155, %cst_77 {dimension_numbers = #tpu.dot_dimension_numbers<[1], [0], [0], [1], [0, 0, 1, 1], [], []>} : vector<24x24xf32>, vector<24x8xf32>, vector<24x8xf32> -> vector<24x8xf32>
    %157 = vector.extract_strided_slice %152 {offsets = [48, 0], sizes = [24, 8], strides = [1, 1]} : vector<120x8xf32> to vector<24x8xf32>
    %cst_78 = arith.constant dense<0.000000e+00> : vector<24x8xf32>
    %158 = tpu.matmul %147, %157, %cst_78 {dimension_numbers = #tpu.dot_dimension_numbers<[1], [0], [0], [1], [0, 0, 1, 1], [], []>} : vector<24x24xf32>, vector<24x8xf32>, vector<24x8xf32> -> vector<24x8xf32>
    %159 = vector.extract_strided_slice %152 {offsets = [72, 0], sizes = [24, 8], strides = [1, 1]} : vector<120x8xf32> to vector<24x8xf32>
    %cst_79 = arith.constant dense<0.000000e+00> : vector<24x8xf32>
    %160 = tpu.matmul %147, %159, %cst_79 {dimension_numbers = #tpu.dot_dimension_numbers<[1], [0], [0], [1], [0, 0, 1, 1], [], []>} : vector<24x24xf32>, vector<24x8xf32>, vector<24x8xf32> -> vector<24x8xf32>
    %161 = vector.extract_strided_slice %152 {offsets = [96, 0], sizes = [24, 8], strides = [1, 1]} : vector<120x8xf32> to vector<24x8xf32>
    %cst_80 = arith.constant dense<0.000000e+00> : vector<24x8xf32>
    %162 = tpu.matmul %147, %161, %cst_80 {dimension_numbers = #tpu.dot_dimension_numbers<[1], [0], [0], [1], [0, 0, 1, 1], [], []>} : vector<24x24xf32>, vector<24x8xf32>, vector<24x8xf32> -> vector<24x8xf32>
    %163 = arith.mulf %154, %154 : vector<24x8xf32>
    %164 = arith.mulf %156, %156 : vector<24x8xf32>
    %165 = arith.mulf %154, %156 : vector<24x8xf32>
    %166 = arith.subf %158, %163 : vector<24x8xf32>
    %167 = arith.subf %160, %164 : vector<24x8xf32>
    %168 = arith.subf %162, %165 : vector<24x8xf32>
    %cst_81 = arith.constant 2.000000e+00 : f32
    %169 = vector.broadcast %cst_81 : f32 to vector<24x8xf32>
    %170 = arith.mulf %169, %168 : vector<24x8xf32>
    %cst_82 = arith.constant 8.99999984E-4 : f32
    %171 = vector.broadcast %cst_82 : f32 to vector<24x8xf32>
    %172 = arith.addf %170, %171 : vector<24x8xf32>
    %173 = arith.addf %166, %167 : vector<24x8xf32>
    %cst_83 = arith.constant 8.99999984E-4 : f32
    %174 = vector.broadcast %cst_83 : f32 to vector<24x8xf32>
    %175 = arith.addf %173, %174 : vector<24x8xf32>
    %cst_84 = arith.constant 2.000000e+00 : f32
    %176 = vector.broadcast %cst_84 : f32 to vector<24x8xf32>
    %177 = arith.mulf %176, %165 : vector<24x8xf32>
    %cst_85 = arith.constant 9.99999974E-5 : f32
    %178 = vector.broadcast %cst_85 : f32 to vector<24x8xf32>
    %179 = arith.addf %177, %178 : vector<24x8xf32>
    %180 = arith.mulf %179, %172 : vector<24x8xf32>
    %181 = arith.addf %163, %164 : vector<24x8xf32>
    %cst_86 = arith.constant 9.99999974E-5 : f32
    %182 = vector.broadcast %cst_86 : f32 to vector<24x8xf32>
    %183 = arith.addf %181, %182 : vector<24x8xf32>
    %184 = arith.mulf %183, %175 : vector<24x8xf32>
    %185 = arith.divf %180, %184 : vector<24x8xf32>
    %186 = arith.divf %172, %175 : vector<24x8xf32>
    %c4_i32 = arith.constant 4 : i32
    %187 = vector.broadcast %c4_i32 : i32 to vector<16x128xi32>
    %188 = arith.cmpi eq, %4, %187 : vector<16x128xi32>
    %189 = vector.shape_cast %185 : vector<24x8xf32> to vector<1x24x8xf32>
    %cst_87 = arith.constant dense<0.000000e+00> : vector<1xf32>
    %190 = vector.multi_reduction <add>, %189, %cst_87 [1, 2] : vector<1x24x8xf32> to vector<1xf32>
    %191 = vector.shape_cast %190 : vector<1xf32> to vector<1x1x1xf32>
    %192 = vector.extract %191[0, 0, 0] : f32 from vector<1x1x1xf32>
    %cst_88 = arith.constant 1.920000e+02 : f32
    %193 = arith.divf %192, %cst_88 : f32
    %194 = vector.broadcast %193 : f32 to vector<16x128xf32>
    %195 = arith.select %188, %194, %135 : vector<16x128xi1>, vector<16x128xf32>
    %c5_i32 = arith.constant 5 : i32
    %196 = vector.broadcast %c5_i32 : i32 to vector<16x128xi32>
    %197 = arith.cmpi eq, %4, %196 : vector<16x128xi32>
    %198 = vector.shape_cast %186 : vector<24x8xf32> to vector<1x24x8xf32>
    %cst_89 = arith.constant dense<0.000000e+00> : vector<1xf32>
    %199 = vector.multi_reduction <add>, %198, %cst_89 [1, 2] : vector<1x24x8xf32> to vector<1xf32>
    %200 = vector.shape_cast %199 : vector<1xf32> to vector<1x1x1xf32>
    %201 = vector.extract %200[0, 0, 0] : f32 from vector<1x1x1xf32>
    %cst_90 = arith.constant 1.920000e+02 : f32
    %202 = arith.divf %201, %cst_90 : f32
    %203 = vector.broadcast %202 : f32 to vector<16x128xf32>
    %204 = arith.select %197, %203, %195 : vector<16x128xi1>, vector<16x128xf32>
    %c2_91 = arith.constant 2 : index
    %c0_92 = arith.constant 0 : index
    %c0_93 = arith.constant 0 : index
    %205 = vector.load %arg5[%c2_91, %c0_92, %c0_93] : memref<4x32x16xf32, #tpu.memory_space<vmem>>, vector<1x8x4xf32>
    %206 = vector.shape_cast %205 : vector<1x8x4xf32> to vector<8x4xf32>
    %c2_94 = arith.constant 2 : index
    %c0_95 = arith.constant 0 : index
    %c0_96 = arith.constant 0 : index
    %207 = vector.load %arg6[%c2_94, %c0_95, %c0_96] : memref<4x48x96xf32, #tpu.memory_space<vmem>>, vector<1x12x24xf32>
    %208 = vector.shape_cast %207 : vector<1x12x24xf32> to vector<12x24xf32>
    %cst_97 = arith.constant dense<0.000000e+00> : vector<24x4xf32>
    %209 = tpu.matmul %141, %206, %cst_97 {dimension_numbers = #tpu.dot_dimension_numbers<[1], [0], [0], [1], [0, 0, 1, 1], [], []>} : vector<24x8xf32>, vector<8x4xf32>, vector<24x4xf32> -> vector<24x4xf32>
    %cst_98 = arith.constant dense<0.000000e+00> : vector<12x4xf32>
    %210 = tpu.matmul %208, %209, %cst_98 {dimension_numbers = #tpu.dot_dimension_numbers<[1], [0], [0], [1], [0, 0, 1, 1], [], []>} : vector<12x24xf32>, vector<24x4xf32>, vector<12x4xf32> -> vector<12x4xf32>
    %cst_99 = arith.constant dense<0.000000e+00> : vector<24x4xf32>
    %211 = tpu.matmul %143, %206, %cst_99 {dimension_numbers = #tpu.dot_dimension_numbers<[1], [0], [0], [1], [0, 0, 1, 1], [], []>} : vector<24x8xf32>, vector<8x4xf32>, vector<24x4xf32> -> vector<24x4xf32>
    %cst_100 = arith.constant dense<0.000000e+00> : vector<12x4xf32>
    %212 = tpu.matmul %208, %211, %cst_100 {dimension_numbers = #tpu.dot_dimension_numbers<[1], [0], [0], [1], [0, 0, 1, 1], [], []>} : vector<12x24xf32>, vector<24x4xf32>, vector<12x4xf32> -> vector<12x4xf32>
    %c3 = arith.constant 3 : index
    %c0_101 = arith.constant 0 : index
    %c0_102 = arith.constant 0 : index
    %213 = vector.load %arg3[%c3, %c0_101, %c0_102] : memref<5x32x32xf32, #tpu.memory_space<vmem>>, vector<1x4x4xf32>
    %214 = vector.shape_cast %213 : vector<1x4x4xf32> to vector<4x4xf32>
    %c3_103 = arith.constant 3 : index
    %c0_104 = arith.constant 0 : index
    %c0_105 = arith.constant 0 : index
    %215 = vector.load %arg4[%c3_103, %c0_104, %c0_105] : memref<5x96x96xf32, #tpu.memory_space<vmem>>, vector<1x12x12xf32>
    %216 = vector.shape_cast %215 : vector<1x12x12xf32> to vector<12x12xf32>
    %cst_106 = arith.constant dense<0.000000e+00> : vector<12x4xf32>
    %217 = tpu.matmul %210, %214, %cst_106 {dimension_numbers = #tpu.dot_dimension_numbers<[1], [0], [0], [1], [0, 0, 1, 1], [], []>} : vector<12x4xf32>, vector<4x4xf32>, vector<12x4xf32> -> vector<12x4xf32>
    %cst_107 = arith.constant dense<0.000000e+00> : vector<12x4xf32>
    %218 = tpu.matmul %216, %217, %cst_107 {dimension_numbers = #tpu.dot_dimension_numbers<[1], [0], [0], [1], [0, 0, 1, 1], [], []>} : vector<12x12xf32>, vector<12x4xf32>, vector<12x4xf32> -> vector<12x4xf32>
    %cst_108 = arith.constant dense<0.000000e+00> : vector<12x4xf32>
    %219 = tpu.matmul %212, %214, %cst_108 {dimension_numbers = #tpu.dot_dimension_numbers<[1], [0], [0], [1], [0, 0, 1, 1], [], []>} : vector<12x4xf32>, vector<4x4xf32>, vector<12x4xf32> -> vector<12x4xf32>
    %cst_109 = arith.constant dense<0.000000e+00> : vector<12x4xf32>
    %220 = tpu.matmul %216, %219, %cst_109 {dimension_numbers = #tpu.dot_dimension_numbers<[1], [0], [0], [1], [0, 0, 1, 1], [], []>} : vector<12x12xf32>, vector<12x4xf32>, vector<12x4xf32> -> vector<12x4xf32>
    %221 = arith.mulf %210, %210 : vector<12x4xf32>
    %cst_110 = arith.constant dense<0.000000e+00> : vector<12x4xf32>
    %222 = tpu.matmul %221, %214, %cst_110 {dimension_numbers = #tpu.dot_dimension_numbers<[1], [0], [0], [1], [0, 0, 1, 1], [], []>} : vector<12x4xf32>, vector<4x4xf32>, vector<12x4xf32> -> vector<12x4xf32>
    %cst_111 = arith.constant dense<0.000000e+00> : vector<12x4xf32>
    %223 = tpu.matmul %216, %222, %cst_111 {dimension_numbers = #tpu.dot_dimension_numbers<[1], [0], [0], [1], [0, 0, 1, 1], [], []>} : vector<12x12xf32>, vector<12x4xf32>, vector<12x4xf32> -> vector<12x4xf32>
    %224 = arith.mulf %212, %212 : vector<12x4xf32>
    %cst_112 = arith.constant dense<0.000000e+00> : vector<12x4xf32>
    %225 = tpu.matmul %224, %214, %cst_112 {dimension_numbers = #tpu.dot_dimension_numbers<[1], [0], [0], [1], [0, 0, 1, 1], [], []>} : vector<12x4xf32>, vector<4x4xf32>, vector<12x4xf32> -> vector<12x4xf32>
    %cst_113 = arith.constant dense<0.000000e+00> : vector<12x4xf32>
    %226 = tpu.matmul %216, %225, %cst_113 {dimension_numbers = #tpu.dot_dimension_numbers<[1], [0], [0], [1], [0, 0, 1, 1], [], []>} : vector<12x12xf32>, vector<12x4xf32>, vector<12x4xf32> -> vector<12x4xf32>
    %227 = arith.mulf %210, %212 : vector<12x4xf32>
    %cst_114 = arith.constant dense<0.000000e+00> : vector<12x4xf32>
    %228 = tpu.matmul %227, %214, %cst_114 {dimension_numbers = #tpu.dot_dimension_numbers<[1], [0], [0], [1], [0, 0, 1, 1], [], []>} : vector<12x4xf32>, vector<4x4xf32>, vector<12x4xf32> -> vector<12x4xf32>
    %cst_115 = arith.constant dense<0.000000e+00> : vector<12x4xf32>
    %229 = tpu.matmul %216, %228, %cst_115 {dimension_numbers = #tpu.dot_dimension_numbers<[1], [0], [0], [1], [0, 0, 1, 1], [], []>} : vector<12x12xf32>, vector<12x4xf32>, vector<12x4xf32> -> vector<12x4xf32>
    %230 = arith.mulf %218, %218 : vector<12x4xf32>
    %231 = arith.mulf %220, %220 : vector<12x4xf32>
    %232 = arith.mulf %218, %220 : vector<12x4xf32>
    %233 = arith.subf %223, %230 : vector<12x4xf32>
    %234 = arith.subf %226, %231 : vector<12x4xf32>
    %235 = arith.subf %229, %232 : vector<12x4xf32>
    %cst_116 = arith.constant 2.000000e+00 : f32
    %236 = vector.broadcast %cst_116 : f32 to vector<12x4xf32>
    %237 = arith.mulf %236, %235 : vector<12x4xf32>
    %cst_117 = arith.constant 8.99999984E-4 : f32
    %238 = vector.broadcast %cst_117 : f32 to vector<12x4xf32>
    %239 = arith.addf %237, %238 : vector<12x4xf32>
    %240 = arith.addf %233, %234 : vector<12x4xf32>
    %cst_118 = arith.constant 8.99999984E-4 : f32
    %241 = vector.broadcast %cst_118 : f32 to vector<12x4xf32>
    %242 = arith.addf %240, %241 : vector<12x4xf32>
    %cst_119 = arith.constant 2.000000e+00 : f32
    %243 = vector.broadcast %cst_119 : f32 to vector<12x4xf32>
    %244 = arith.mulf %243, %232 : vector<12x4xf32>
    %cst_120 = arith.constant 9.99999974E-5 : f32
    %245 = vector.broadcast %cst_120 : f32 to vector<12x4xf32>
    %246 = arith.addf %244, %245 : vector<12x4xf32>
    %247 = arith.mulf %246, %239 : vector<12x4xf32>
    %248 = arith.addf %230, %231 : vector<12x4xf32>
    %cst_121 = arith.constant 9.99999974E-5 : f32
    %249 = vector.broadcast %cst_121 : f32 to vector<12x4xf32>
    %250 = arith.addf %248, %249 : vector<12x4xf32>
    %251 = arith.mulf %250, %242 : vector<12x4xf32>
    %252 = arith.divf %247, %251 : vector<12x4xf32>
    %253 = arith.divf %239, %242 : vector<12x4xf32>
    %c6_i32 = arith.constant 6 : i32
    %254 = vector.broadcast %c6_i32 : i32 to vector<16x128xi32>
    %255 = arith.cmpi eq, %4, %254 : vector<16x128xi32>
    %256 = vector.shape_cast %252 : vector<12x4xf32> to vector<1x12x4xf32>
    %cst_122 = arith.constant dense<0.000000e+00> : vector<1xf32>
    %257 = vector.multi_reduction <add>, %256, %cst_122 [1, 2] : vector<1x12x4xf32> to vector<1xf32>
    %258 = vector.shape_cast %257 : vector<1xf32> to vector<1x1x1xf32>
    %259 = vector.extract %258[0, 0, 0] : f32 from vector<1x1x1xf32>
    %cst_123 = arith.constant 4.800000e+01 : f32
    %260 = arith.divf %259, %cst_123 : f32
    %261 = vector.broadcast %260 : f32 to vector<16x128xf32>
    %262 = arith.select %255, %261, %204 : vector<16x128xi1>, vector<16x128xf32>
    %c7_i32 = arith.constant 7 : i32
    %263 = vector.broadcast %c7_i32 : i32 to vector<16x128xi32>
    %264 = arith.cmpi eq, %4, %263 : vector<16x128xi32>
    %265 = vector.shape_cast %253 : vector<12x4xf32> to vector<1x12x4xf32>
    %cst_124 = arith.constant dense<0.000000e+00> : vector<1xf32>
    %266 = vector.multi_reduction <add>, %265, %cst_124 [1, 2] : vector<1x12x4xf32> to vector<1xf32>
    %267 = vector.shape_cast %266 : vector<1xf32> to vector<1x1x1xf32>
    %268 = vector.extract %267[0, 0, 0] : f32 from vector<1x1x1xf32>
    %cst_125 = arith.constant 4.800000e+01 : f32
    %269 = arith.divf %268, %cst_125 : f32
    %270 = vector.broadcast %269 : f32 to vector<16x128xf32>
    %271 = arith.select %264, %270, %262 : vector<16x128xi1>, vector<16x128xf32>
    %c3_126 = arith.constant 3 : index
    %c0_127 = arith.constant 0 : index
    %c0_128 = arith.constant 0 : index
    %272 = vector.load %arg5[%c3_126, %c0_127, %c0_128] : memref<4x32x16xf32, #tpu.memory_space<vmem>>, vector<1x4x2xf32>
    %273 = vector.shape_cast %272 : vector<1x4x2xf32> to vector<4x2xf32>
    %c3_129 = arith.constant 3 : index
    %c0_130 = arith.constant 0 : index
    %c0_131 = arith.constant 0 : index
    %274 = vector.load %arg6[%c3_129, %c0_130, %c0_131] : memref<4x48x96xf32, #tpu.memory_space<vmem>>, vector<1x6x12xf32>
    %275 = vector.shape_cast %274 : vector<1x6x12xf32> to vector<6x12xf32>
    %cst_132 = arith.constant dense<0.000000e+00> : vector<12x2xf32>
    %276 = tpu.matmul %210, %273, %cst_132 {dimension_numbers = #tpu.dot_dimension_numbers<[1], [0], [0], [1], [0, 0, 1, 1], [], []>} : vector<12x4xf32>, vector<4x2xf32>, vector<12x2xf32> -> vector<12x2xf32>
    %cst_133 = arith.constant dense<0.000000e+00> : vector<6x2xf32>
    %277 = tpu.matmul %275, %276, %cst_133 {dimension_numbers = #tpu.dot_dimension_numbers<[1], [0], [0], [1], [0, 0, 1, 1], [], []>} : vector<6x12xf32>, vector<12x2xf32>, vector<6x2xf32> -> vector<6x2xf32>
    %cst_134 = arith.constant dense<0.000000e+00> : vector<12x2xf32>
    %278 = tpu.matmul %212, %273, %cst_134 {dimension_numbers = #tpu.dot_dimension_numbers<[1], [0], [0], [1], [0, 0, 1, 1], [], []>} : vector<12x4xf32>, vector<4x2xf32>, vector<12x2xf32> -> vector<12x2xf32>
    %cst_135 = arith.constant dense<0.000000e+00> : vector<6x2xf32>
    %279 = tpu.matmul %275, %278, %cst_135 {dimension_numbers = #tpu.dot_dimension_numbers<[1], [0], [0], [1], [0, 0, 1, 1], [], []>} : vector<6x12xf32>, vector<12x2xf32>, vector<6x2xf32> -> vector<6x2xf32>
    %c4 = arith.constant 4 : index
    %c0_136 = arith.constant 0 : index
    %c0_137 = arith.constant 0 : index
    %280 = vector.load %arg3[%c4, %c0_136, %c0_137] : memref<5x32x32xf32, #tpu.memory_space<vmem>>, vector<1x2x2xf32>
    %281 = vector.shape_cast %280 : vector<1x2x2xf32> to vector<2x2xf32>
    %c4_138 = arith.constant 4 : index
    %c0_139 = arith.constant 0 : index
    %c0_140 = arith.constant 0 : index
    %282 = vector.load %arg4[%c4_138, %c0_139, %c0_140] : memref<5x96x96xf32, #tpu.memory_space<vmem>>, vector<1x6x6xf32>
    %283 = vector.shape_cast %282 : vector<1x6x6xf32> to vector<6x6xf32>
    %cst_141 = arith.constant dense<0.000000e+00> : vector<6x2xf32>
    %284 = tpu.matmul %277, %281, %cst_141 {dimension_numbers = #tpu.dot_dimension_numbers<[1], [0], [0], [1], [0, 0, 1, 1], [], []>} : vector<6x2xf32>, vector<2x2xf32>, vector<6x2xf32> -> vector<6x2xf32>
    %cst_142 = arith.constant dense<0.000000e+00> : vector<6x2xf32>
    %285 = tpu.matmul %283, %284, %cst_142 {dimension_numbers = #tpu.dot_dimension_numbers<[1], [0], [0], [1], [0, 0, 1, 1], [], []>} : vector<6x6xf32>, vector<6x2xf32>, vector<6x2xf32> -> vector<6x2xf32>
    %cst_143 = arith.constant dense<0.000000e+00> : vector<6x2xf32>
    %286 = tpu.matmul %279, %281, %cst_143 {dimension_numbers = #tpu.dot_dimension_numbers<[1], [0], [0], [1], [0, 0, 1, 1], [], []>} : vector<6x2xf32>, vector<2x2xf32>, vector<6x2xf32> -> vector<6x2xf32>
    %cst_144 = arith.constant dense<0.000000e+00> : vector<6x2xf32>
    %287 = tpu.matmul %283, %286, %cst_144 {dimension_numbers = #tpu.dot_dimension_numbers<[1], [0], [0], [1], [0, 0, 1, 1], [], []>} : vector<6x6xf32>, vector<6x2xf32>, vector<6x2xf32> -> vector<6x2xf32>
    %288 = arith.mulf %277, %277 : vector<6x2xf32>
    %cst_145 = arith.constant dense<0.000000e+00> : vector<6x2xf32>
    %289 = tpu.matmul %288, %281, %cst_145 {dimension_numbers = #tpu.dot_dimension_numbers<[1], [0], [0], [1], [0, 0, 1, 1], [], []>} : vector<6x2xf32>, vector<2x2xf32>, vector<6x2xf32> -> vector<6x2xf32>
    %cst_146 = arith.constant dense<0.000000e+00> : vector<6x2xf32>
    %290 = tpu.matmul %283, %289, %cst_146 {dimension_numbers = #tpu.dot_dimension_numbers<[1], [0], [0], [1], [0, 0, 1, 1], [], []>} : vector<6x6xf32>, vector<6x2xf32>, vector<6x2xf32> -> vector<6x2xf32>
    %291 = arith.mulf %279, %279 : vector<6x2xf32>
    %cst_147 = arith.constant dense<0.000000e+00> : vector<6x2xf32>
    %292 = tpu.matmul %291, %281, %cst_147 {dimension_numbers = #tpu.dot_dimension_numbers<[1], [0], [0], [1], [0, 0, 1, 1], [], []>} : vector<6x2xf32>, vector<2x2xf32>, vector<6x2xf32> -> vector<6x2xf32>
    %cst_148 = arith.constant dense<0.000000e+00> : vector<6x2xf32>
    %293 = tpu.matmul %283, %292, %cst_148 {dimension_numbers = #tpu.dot_dimension_numbers<[1], [0], [0], [1], [0, 0, 1, 1], [], []>} : vector<6x6xf32>, vector<6x2xf32>, vector<6x2xf32> -> vector<6x2xf32>
    %294 = arith.mulf %277, %279 : vector<6x2xf32>
    %cst_149 = arith.constant dense<0.000000e+00> : vector<6x2xf32>
    %295 = tpu.matmul %294, %281, %cst_149 {dimension_numbers = #tpu.dot_dimension_numbers<[1], [0], [0], [1], [0, 0, 1, 1], [], []>} : vector<6x2xf32>, vector<2x2xf32>, vector<6x2xf32> -> vector<6x2xf32>
    %cst_150 = arith.constant dense<0.000000e+00> : vector<6x2xf32>
    %296 = tpu.matmul %283, %295, %cst_150 {dimension_numbers = #tpu.dot_dimension_numbers<[1], [0], [0], [1], [0, 0, 1, 1], [], []>} : vector<6x6xf32>, vector<6x2xf32>, vector<6x2xf32> -> vector<6x2xf32>
    %297 = arith.mulf %285, %285 : vector<6x2xf32>
    %298 = arith.mulf %287, %287 : vector<6x2xf32>
    %299 = arith.mulf %285, %287 : vector<6x2xf32>
    %300 = arith.subf %290, %297 : vector<6x2xf32>
    %301 = arith.subf %293, %298 : vector<6x2xf32>
    %302 = arith.subf %296, %299 : vector<6x2xf32>
    %cst_151 = arith.constant 2.000000e+00 : f32
    %303 = vector.broadcast %cst_151 : f32 to vector<6x2xf32>
    %304 = arith.mulf %303, %302 : vector<6x2xf32>
    %cst_152 = arith.constant 8.99999984E-4 : f32
    %305 = vector.broadcast %cst_152 : f32 to vector<6x2xf32>
    %306 = arith.addf %304, %305 : vector<6x2xf32>
    %307 = arith.addf %300, %301 : vector<6x2xf32>
    %cst_153 = arith.constant 8.99999984E-4 : f32
    %308 = vector.broadcast %cst_153 : f32 to vector<6x2xf32>
    %309 = arith.addf %307, %308 : vector<6x2xf32>
    %cst_154 = arith.constant 2.000000e+00 : f32
    %310 = vector.broadcast %cst_154 : f32 to vector<6x2xf32>
    %311 = arith.mulf %310, %299 : vector<6x2xf32>
    %cst_155 = arith.constant 9.99999974E-5 : f32
    %312 = vector.broadcast %cst_155 : f32 to vector<6x2xf32>
    %313 = arith.addf %311, %312 : vector<6x2xf32>
    %314 = arith.mulf %313, %306 : vector<6x2xf32>
    %315 = arith.addf %297, %298 : vector<6x2xf32>
    %cst_156 = arith.constant 9.99999974E-5 : f32
    %316 = vector.broadcast %cst_156 : f32 to vector<6x2xf32>
    %317 = arith.addf %315, %316 : vector<6x2xf32>
    %318 = arith.mulf %317, %309 : vector<6x2xf32>
    %319 = arith.divf %314, %318 : vector<6x2xf32>
    %320 = arith.divf %306, %309 : vector<6x2xf32>
    %c8_i32 = arith.constant 8 : i32
    %321 = vector.broadcast %c8_i32 : i32 to vector<16x128xi32>
    %322 = arith.cmpi eq, %4, %321 : vector<16x128xi32>
    %323 = vector.shape_cast %319 : vector<6x2xf32> to vector<1x6x2xf32>
    %cst_157 = arith.constant dense<0.000000e+00> : vector<1xf32>
    %324 = vector.multi_reduction <add>, %323, %cst_157 [1, 2] : vector<1x6x2xf32> to vector<1xf32>
    %325 = vector.shape_cast %324 : vector<1xf32> to vector<1x1x1xf32>
    %326 = vector.extract %325[0, 0, 0] : f32 from vector<1x1x1xf32>
    %cst_158 = arith.constant 1.200000e+01 : f32
    %327 = arith.divf %326, %cst_158 : f32
    %328 = vector.broadcast %327 : f32 to vector<16x128xf32>
    %329 = arith.select %322, %328, %271 : vector<16x128xi1>, vector<16x128xf32>
    %c9_i32 = arith.constant 9 : i32
    %330 = vector.broadcast %c9_i32 : i32 to vector<16x128xi32>
    %331 = arith.cmpi eq, %4, %330 : vector<16x128xi32>
    %332 = vector.shape_cast %320 : vector<6x2xf32> to vector<1x6x2xf32>
    %cst_159 = arith.constant dense<0.000000e+00> : vector<1xf32>
    %333 = vector.multi_reduction <add>, %332, %cst_159 [1, 2] : vector<1x6x2xf32> to vector<1xf32>
    %334 = vector.shape_cast %333 : vector<1xf32> to vector<1x1x1xf32>
    %335 = vector.extract %334[0, 0, 0] : f32 from vector<1x1x1xf32>
    %cst_160 = arith.constant 1.200000e+01 : f32
    %336 = arith.divf %335, %cst_160 : f32
    %337 = vector.broadcast %336 : f32 to vector<16x128xf32>
    %338 = arith.select %331, %337, %329 : vector<16x128xi1>, vector<16x128xf32>
    %c0_161 = arith.constant 0 : index
    %c0_162 = arith.constant 0 : index
    %c0_163 = arith.constant 0 : index
    %339 = vector.load %arg7[%c0_161, %c0_162, %c0_163] : memref<1x16x128xf32, #tpu.memory_space<vmem>>, vector<1x16x128xf32>
    %340 = vector.shape_cast %339 : vector<1x16x128xf32> to vector<16x128xf32>
    %341 = vector.shape_cast %338 : vector<16x128xf32> to vector<1x16x128xf32>
    tpu.vector_store %arg7[%c0_161, %c0_162, %c0_163], %341 {strides = array<i32>} : memref<1x16x128xf32, #tpu.memory_space<vmem>>, vector<1x16x128xf32>,
    return
  }
  func.func @transform_0(%arg0: i32) -> (i32, i32, i32, i32) {
    %c0_i32 = arith.constant 0 : i32
    %c0_i32_0 = arith.constant 0 : i32
    %c0_i32_1 = arith.constant 0 : i32
    %c0_i32_2 = arith.constant 0 : i32
    return %arg0, %c0_i32, %c0_i32_0, %c0_i32_1 : i32, i32, i32, i32
  }
  func.func @transform_1(%arg0: i32) -> (i32, i32, i32, i32) {
    %c0_i32 = arith.constant 0 : i32
    %c0_i32_0 = arith.constant 0 : i32
    %c0_i32_1 = arith.constant 0 : i32
    %c0_i32_2 = arith.constant 0 : i32
    return %arg0, %c0_i32, %c0_i32_0, %c0_i32_1 : i32, i32, i32, i32
  }
  func.func @transform_2(%arg0: i32) -> (i32, i32, i32) {
    %c0_i32 = arith.constant 0 : i32
    %c0_i32_0 = arith.constant 0 : i32
    %c0_i32_1 = arith.constant 0 : i32
    %c0_i32_2 = arith.constant 0 : i32
    return %c0_i32, %c0_i32_0, %c0_i32_1 : i32, i32, i32
  }
  func.func @transform_3(%arg0: i32) -> (i32, i32, i32) {
    %c0_i32 = arith.constant 0 : i32
    %c0_i32_0 = arith.constant 0 : i32
    %c0_i32_1 = arith.constant 0 : i32
    %c0_i32_2 = arith.constant 0 : i32
    return %c0_i32, %c0_i32_0, %c0_i32_1 : i32, i32, i32
  }
  func.func @transform_4(%arg0: i32) -> (i32, i32, i32) {
    %c0_i32 = arith.constant 0 : i32
    %c0_i32_0 = arith.constant 0 : i32
    %c0_i32_1 = arith.constant 0 : i32
    %c0_i32_2 = arith.constant 0 : i32
    return %c0_i32, %c0_i32_0, %c0_i32_1 : i32, i32, i32
  }
  func.func @transform_5(%arg0: i32) -> (i32, i32, i32) {
    %c0_i32 = arith.constant 0 : i32
    %c0_i32_0 = arith.constant 0 : i32
    %c0_i32_1 = arith.constant 0 : i32
    %c0_i32_2 = arith.constant 0 : i32
    return %c0_i32, %c0_i32_0, %c0_i32_1 : i32, i32, i32
  }
  func.func @transform_6(%arg0: i32) -> (i32, i32, i32) {
    %c0_i32 = arith.constant 0 : i32
    %c0_i32_0 = arith.constant 0 : i32
    %c0_i32_1 = arith.constant 0 : i32
    return %arg0, %c0_i32, %c0_i32_0 : i32, i32, i32
  }
}

</mosaic_0001>

<bundles_post_ra>
// kernel: msssim_metric.1
= control target key start
LH: loop header
LB: loop body
LE: loop exit
PB: predicated region body
PF: predicated region fallthrough
CT: control target
= control target key end

     0   :  { %11 = vsyncpa [#allocation3], 0  ;;  %s11310_s0 = inlined_call_operand.hbm [shape: f32[2,3,32,32], index: 0, kind: input, shape index: {}]   ;;  %s11311_s1 = inlined_call_operand.hbm [shape: f32[2,3,32,32], index: 1, kind: input, shape index: {}]   ;;  %s11312_s2 = inlined_call_operand.hbm [shape: f32[5,32,32], index: 2, kind: input, shape index: {}]   ;;  %s11313_s3 = inlined_call_operand.hbm [shape: f32[5,96,96], index: 3, kind: input, shape index: {}]   ;;  %s11314_s4 = inlined_call_operand.hbm [shape: f32[4,32,16], index: 4, kind: input, shape index: {}]   ;;  %s11315_s5 = inlined_call_operand.hbm [shape: f32[4,48,96], index: 5, kind: input, shape index: {}]   ;;  %s11316_s6 = inlined_call_operand.vmem [shape: f32[2,16,128], index: 6, kind: output, shape index: {}]  }
   0x1   :  { %13 = vsyncpa [#allocation3 + $0x1], 0 }
   0x2   :  { %14 = vsyncpa [#allocation5], 0 }
   0x3   :  { %16 = vsyncpa [#allocation5 + $0x1], 0 }
   0x4   :  { %17 = vsyncpa [#allocation8], 0 }
   0x5   :  { %18 = vsyncpa [#allocation11], 0  ;;  %s9622_s21 = smov 0   ;;  %s9624_s22 = smov 0  }
   0x6   :  { %s9626_s23 = smov 0   ;;  %s9628_s24 = smov 0  }
   0x7 LB: > { %s9641_s25 = sadd.s32 4294967295, %s9573_s24   ;;  %p44_p0 = scmp.ne.s32.totalorder %s9565_s22, %s9561_s21  ;;  %s9573_s24 = sphi %s9628_s24, %s11367_s24   ;;  %s9569_s23 = sphi %s9626_s23, %s11366_s23   ;;  %s9565_s22 = sphi %s9624_s22, %s11365_s22   ;;  %s9561_s21 = sphi %s9622_s21, %s11364_s21  }
   0x8   : > { %p11317_p1 = scmp.eq.s32.totalorder %s9641_s25, 0  ;;  %p6991_p2 = scmp.ge.s32.totalorder %s9573_s24, 1 }
   0x9   : > { %p191_p3 = scmp.lt.s32.totalorder %s9573_s24, 3  ;;  %s9575_s28 = smov [#allocation6]  }
   0xa   : > { %p9649_p4 = por %p11317_p1, %p44_p0  ;;  %s203_s29 = sshll.u32 %s9575_s28, 4  ;;  %s9657_s29 = int_to_ptr.vmem [resolvable:$true] %s203_s29 }
   0xb   : > { %p9653_p5 = pnand %p6991_p2, %p191_p3  ;;  %s9576_s7 = smov [#allocation7]  }
   0xc   : > { %s11326_s26 = scalar_select %p9649_p4, 1, 0 }
   0xd   : > { %s11327_s27 = scalar_select %p9653_p5, 1, 0 }
   0xe   : > { %p9184_p6 = pneg %p9653_p5  ;;  %s216_s8 = sshll.u32 %s9576_s7, 4  ;;  %s9667_s8 = int_to_ptr.vmem [resolvable:$true] %s216_s8 }
   0xf   : > { %s9577_s9 = smov [#allocation9]   ;;  %s9351_s13 = scalar_lea.hbm %s11312_s2, 2560 }
  0x10   : > { %p9663_p7 = pnand %p9184_p6, %p11317_p1  ;;  %s9669_s10 = sshll.u32 %s9577_s9, 4  ;;  %s230_s10 = int_to_ptr.vmem [resolvable:$true] %s9669_s10 }
  0x11   : > { %p9352_p8 = scmp.ne.s32.totalorder %s11312_s2, %s9351_s13  ;;  %p9358_p12 = scmp.lt.u32.totalorder %s9351_s13, %s11312_s2 }
  0x12   : > { %p9679_p9 = pneg %p9663_p7 }
  0x14   : > { %p9354_p10 = pnand %p9679_p9, %p9352_p8 }
  0x16   : > { %p9355_p11 = pneg %p9354_p10 }
  0x18   : > { %p9360_p13 = pnand %p9358_p12, %p9355_p11 }
  0x1a   : > { %9363 = shalt.err (!%p9360_p13)
}
  0x1b   : > { %s9364_s19 = scalar_lea.vmem %s9657_s29, 2560  ;;  %p9372_p6 = scmp.lt.s32.totalorder %s9657_s29, %s9657_s29 }
  0x1c   : > { %p9365_p0 = scmp.ne.s32.totalorder %s9657_s29, %s9364_s19  ;;  %p9373_p1 = scmp.lt.s32.totalorder %s9364_s19, %s9364_s19 }
  0x1e   : > { %p9367_p2 = pnand %p9365_p0, %p9679_p9  ;;  %p9374_p8 = por %p9373_p1, %p9372_p6 }
  0x20   : > { %p9368_p3 = pneg %p9367_p2 }
  0x22   : > { %p9375_p10 = pnand %p9374_p8, %p9368_p3 }
  0x24   : > { %9378 = shalt.err (!%p9375_p10)
}
  0x25   : > { %s9578_s20 = smov 128   ;;  %s9579_s21 = smov 8  }
  0x26   : > { %9187 = dma.hbm_to_vmem [thread:$0]  (!%p9663_p7), %s11312_s2, 2560, %s9657_s29, [#allocation5], %s9578_s20, %s9578_s20, %s9579_s21  }
  0x27   : > { %s9379_s12 = scalar_lea.hbm %s11313_s3, 7680 }
  0x28   : > { %p9380_p1 = scmp.ne.s32.totalorder %s11313_s3, %s9379_s12  ;;  %p9386_p13 = scmp.lt.u32.totalorder %s9379_s12, %s11313_s3 }
  0x2a   : > { %p9382_p11 = pnand %p9380_p1, %p9679_p9 }
  0x2c   : > { %p9383_p12 = pneg %p9382_p11 }
  0x2e   : > { %p9388_p0 = pnand %p9386_p13, %p9383_p12 }
  0x30   : > { %9391 = shalt.err (!%p9388_p0)
}
  0x31   : > { %s9392_s29 = scalar_lea.vmem %s9667_s8, 7680  ;;  %p9400_p8 = scmp.lt.s32.totalorder %s9667_s8, %s9667_s8 }
  0x32   : > { %p9393_p2 = scmp.ne.s32.totalorder %s9667_s8, %s9392_s29  ;;  %p9401_p10 = scmp.lt.s32.totalorder %s9392_s29, %s9392_s29 }
  0x34   : > { %p9395_p3 = pnand %p9393_p2, %p9679_p9  ;;  %p9402_p1 = por %p9401_p10, %p9400_p8 }
  0x36   : > { %p9396_p6 = pneg %p9395_p3 }
  0x38   : > { %p9403_p11 = pnand %p9402_p1, %p9396_p6 }
  0x3a   : > { %9406 = shalt.err (!%p9403_p11)
}
  0x3b   : > { %9190 = dma.hbm_to_vmem [thread:$0]  (!%p9663_p7), %s11313_s3, 7680, %s9667_s8, [#allocation8], %s9578_s20, %s9578_s20, %s9579_s21  }
  0x3c   : > { %s9407_s9 = scalar_lea.hbm %s11314_s4, 2048 }
  0x3d   : > { %p9408_p12 = scmp.ne.s32.totalorder %s11314_s4, %s9407_s9  ;;  %p9414_p2 = scmp.lt.u32.totalorder %s9407_s9, %s11314_s4 }
  0x3f   : > { %p9410_p13 = pnand %p9408_p12, %p9679_p9 }
  0x41   : > { %p9411_p0 = pneg %p9410_p13 }
  0x43   : > { %p9416_p3 = pnand %p9414_p2, %p9411_p0 }
  0x45   : > { %9419 = shalt.err (!%p9416_p3)
}
  0x46   : > { %s9420_s15 = scalar_lea.vmem %s230_s10, 2048  ;;  %p9428_p1 = scmp.lt.s32.totalorder %s230_s10, %s230_s10 }
  0x47   : > { %p9421_p6 = scmp.ne.s32.totalorder %s230_s10, %s9420_s15  ;;  %p9429_p11 = scmp.lt.s32.totalorder %s9420_s15, %s9420_s15 }
  0x49   : > { %p9423_p8 = pnand %p9421_p6, %p9679_p9  ;;  %p9430_p4 = por %p9429_p11, %p9428_p1 }
  0x4b   : > { %p9424_p10 = pneg %p9423_p8 }
  0x4d   : > { %p9431_p5 = pnand %p9430_p4, %p9424_p10 }
  0x4f   : > { %9434 = shalt.err (!%p9431_p5)
}
  0x50   : > { %9193 = dma.hbm_to_vmem [thread:$0]  (!%p9663_p7), %s11314_s4, 2048, %s230_s10, [#allocation8], %s9578_s20, %s9578_s20, %s9579_s21  }
  0x51   : > { %s9580_s29 = smov [#allocation10]   ;;  %s9435_s7 = scalar_lea.hbm %s11315_s5, 3072 }
  0x52   : > { %s242_s18 = sshll.u32 %s9580_s29, 4  ;;  %p9436_p4 = scmp.ne.s32.totalorder %s11315_s5, %s9435_s7  ;;  %s243_s18 = int_to_ptr.vmem [resolvable:$true] %s242_s18 }
  0x53   : > { %p9442_p13 = scmp.lt.u32.totalorder %s9435_s7, %s11315_s5 }
  0x54   : > { %p9438_p5 = pnand %p9436_p4, %p9679_p9 }
  0x56   : > { %p9439_p12 = pneg %p9438_p5 }
  0x58   : > { %p9444_p0 = pnand %p9442_p13, %p9439_p12 }
  0x5a   : > { %9447 = shalt.err (!%p9444_p0)
}
  0x5b   : > { %s9448_s10 = scalar_lea.vmem %s243_s18, 3072  ;;  %p9456_p8 = scmp.lt.s32.totalorder %s243_s18, %s243_s18 }
  0x5c   : > { %p9449_p2 = scmp.ne.s32.totalorder %s243_s18, %s9448_s10  ;;  %p9457_p10 = scmp.lt.s32.totalorder %s9448_s10, %s9448_s10 }
  0x5e   : > { %p9451_p3 = pnand %p9449_p2, %p9679_p9  ;;  %p9458_p1 = por %p9457_p10, %p9456_p8 }
  0x60   : > { %p9452_p6 = pneg %p9451_p3 }
  0x62   : > { %p9459_p11 = pnand %p9458_p1, %p9452_p6 }
  0x64   : > { %9462 = shalt.err (!%p9459_p11)
}
  0x65   : > { %9196 = dma.hbm_to_vmem [thread:$0]  (!%p9663_p7), %s11315_s5, 3072, %s243_s18, [#allocation11], %s9578_s20, %s9578_s20, %s9579_s21  }
  0x66   : > { %s9773_s30 = sadd.s32 1, %s9573_s24   ;;  %s31_s16 = sadd.s32 1, %s9569_s23 }
  0x67   : > { %s28_s8 = ssub.s32 %s9573_s24, %s9773_s30  ;;  %p38_p9 = scmp.ne.s32.totalorder %s9569_s23, %s9565_s22 }
  0x68   : > { %p29_p4 = scmp.eq.s32.totalorder %s28_s8, 0  ;;  %p39_p5 = scmp.eq.s32.totalorder %s9573_s24, 0 }
  0x69   : > { %p9208_p12 = scmp.lt.s32.totalorder %s9573_s24, 2  ;;  %s256_s17 = sand.u32 1, %s9569_s23  }
  0x6a   : > { %s9784_s29 = scalar_select %p29_p4, %s9569_s23, %s31_s16  }
  0x6b   : > { %p40_p13 = por %p39_p5, %p38_p9  ;;  %s9786_s19 = smul.u32 96, %s256_s17 }
  0x6c   : > { %s9140_s7 = smul.u32 1536, %s9573_s24  ;;  %s9804_s14 = scalar_lea.sflag [#allocation3], %s256_s17 }
  0x6d   : > { %p9790_p0 = pnand %p9208_p12, %p40_p13  ;;  %s260_s13 = scalar_lea.vmem [#allocation2], %s9786_s19 }
  0x6e   : > { %s9799_s12 = scalar_lea.hbm %s11310_s0, %s9140_s7  ;;  %s267_s10 = sshll.u32 %s260_s13, 4  ;;  %s9802_s10 = int_to_ptr.vmem [resolvable:$true] %s267_s10 }
  0x6f   : > { %s9463_s15 = scalar_lea.hbm %s9799_s12, 1536  ;;  %p9465_p2 = pneg %p9790_p0 }
  0x70   : > { %p9464_p7 = scmp.ne.s32.totalorder %s9799_s12, %s9463_s15  ;;  %s9468_s9 = scalar_lea.hbm %s11310_s0, 3072 }
  0x71   : > { %p9469_p8 = scmp.lt.u32.totalorder %s9799_s12, %s11310_s0  ;;  %p9470_p10 = scmp.lt.u32.totalorder %s9468_s9, %s9463_s15 }
  0x72   : > { %p9466_p3 = pnand %p9465_p2, %p9464_p7  ;;  %p9472_p11 = scmp.lt.u32.totalorder %s9463_s15, %s9799_s12 }
  0x73   : > { %p9471_p1 = por %p9470_p10, %p9469_p8 }
  0x74   : > { %p9467_p6 = pneg %p9466_p3 }
  0x75   : > { %p9473_p9 = por %p9472_p11, %p9471_p1 }
  0x77   : > { %p9474_p4 = pnand %p9473_p9, %p9467_p6 }
  0x79   : > { %9477 = shalt.err (!%p9474_p4)
}
  0x7a   : > { %s9478_s17 = scalar_lea.vmem %s9802_s10, 1536  ;;  %s9581_s13 = smov [#allocation2]  }
  0x7b   : > { %p9479_p5 = scmp.ne.s32.totalorder %s9802_s10, %s9478_s17  ;;  %s9483_s16 = sshll.u32 %s9581_s13, 4  ;;  %s9484_s16 = int_to_ptr.vmem [resolvable:$false] %s9483_s16 }
  0x7c   : > { %s9485_s28 = scalar_lea.vmem %s9484_s16, 3072  ;;  %p9486_p7 = scmp.lt.s32.totalorder %s9802_s10, %s9484_s16 }
  0x7d   : > { %p9481_p12 = pnand %p9479_p5, %p9465_p2  ;;  %p9487_p3 = scmp.lt.s32.totalorder %s9485_s28, %s9478_s17 }
  0x7f   : > { %p9482_p13 = pneg %p9481_p12  ;;  %p9488_p8 = por %p9487_p3, %p9486_p7 }
  0x81   : > { %p9489_p10 = pnand %p9488_p8, %p9482_p13 }
  0x83   : > { %9492 = shalt.err (!%p9489_p10)
}
  0x84   : > { %9200 = dma.hbm_to_vmem [thread:$0]  (!%p9790_p0), %s9799_s12, 1536, %s9802_s10, %s9804_s14, %s9578_s20, %s9578_s20, %s9579_s21  }
  0x85   : > { %s9840_s9 = scalar_lea.hbm %s11311_s1, %s9140_s7  ;;  %s281_s11 = scalar_lea.vmem [#allocation4], %s9786_s19 }
  0x86   : > { %s288_s17 = sshll.u32 %s281_s11, 4  ;;  %s11331_s13 = sand.u32 1, %s9573_s24   ;;  %s9843_s17 = int_to_ptr.vmem [resolvable:$true] %s288_s17 }
  0x87   : > { %s9847_s16 = scalar_lea.sflag [#allocation5], %s11331_s13  ;;  %s9493_s28 = scalar_lea.hbm %s9840_s9, 1536 }
  0x88   : > { %p9494_p6 = scmp.ne.s32.totalorder %s9840_s9, %s9493_s28  ;;  %s9498_s10 = scalar_lea.hbm %s11311_s1, 3072 }
  0x89   : > { %p9499_p9 = scmp.lt.u32.totalorder %s9840_s9, %s11311_s1  ;;  %p9500_p4 = scmp.lt.u32.totalorder %s9498_s10, %s9493_s28 }
  0x8a   : > { %p9496_p1 = pnand %p9494_p6, %p9465_p2  ;;  %p9502_p12 = scmp.lt.u32.totalorder %s9493_s28, %s9840_s9 }
  0x8b   : > { %p9501_p5 = por %p9500_p4, %p9499_p9 }
  0x8c   : > { %p9497_p11 = pneg %p9496_p1 }
  0x8d   : > { %p9503_p13 = por %p9502_p12, %p9501_p5 }
  0x8f   : > { %p9504_p7 = pnand %p9503_p13, %p9497_p11 }
  0x91   : > { %9507 = shalt.err (!%p9504_p7)
}
  0x92   : > { %s9508_s24 = scalar_lea.vmem %s9843_s17, 1536  ;;  %s9582_s19 = smov [#allocation4]  }
  0x93   : > { %p9509_p3 = scmp.ne.s32.totalorder %s9843_s17, %s9508_s24  ;;  %s9513_s8 = sshll.u32 %s9582_s19, 4  ;;  %s9514_s8 = int_to_ptr.vmem [resolvable:$false] %s9513_s8 }
  0x94   : > { %s9515_s11 = scalar_lea.vmem %s9514_s8, 3072  ;;  %p9516_p6 = scmp.lt.s32.totalorder %s9843_s17, %s9514_s8 }
  0x95   : > { %p9511_p8 = pnand %p9509_p3, %p9465_p2  ;;  %p9517_p1 = scmp.lt.s32.totalorder %s9515_s11, %s9508_s24 }
  0x97   : > { %p9512_p10 = pneg %p9511_p8  ;;  %p9518_p9 = por %p9517_p1, %p9516_p6 }
  0x99   : > { %p9519_p4 = pnand %p9518_p9, %p9512_p10 }
  0x9b   : > { %9522 = shalt.err (!%p9519_p4)
}
  0x9c   : > { %9203 = dma.hbm_to_vmem [thread:$0]  (!%p9790_p0), %s9840_s9, 1536, %s9843_s17, %s9847_s16, %s9578_s20, %s9578_s20, %s9579_s21  }
  0x9d   : > { %p11332_p2 = scmp.ne.s32.totalorder %s11327_s27, 0 }
  0x9f   : > { %300 = sbr.rel (%p11332_p2) target bundleno = 3121 (0xc31), region = 44 }
  0xa6   : > { %s302_s13 = sand.u32 1, %s9565_s22   ;;  %p11333_p11 = scmp.ne.s32.totalorder %s11326_s26, 0 }
  0xa7   : > { %s9143_s28 = smul.u32 96, %s302_s13  ;;  %s303_s12 = scalar_lea.sflag [#allocation3], %s302_s13 }
  0xa9   : > { %s9879_s7 = scalar_lea.vmem [#allocation2], %s9143_s28 }
  0xaa   : > { %9540 = dma.done.wait (%p11333_p11), %s303_s12, 1536  }
  0xab   : > { %9542 = vsyncadd (%p11333_p11), %s303_s12, 4294965760  ;;  %s311_s18 = sand.u32 1, %s9641_s25   ;;  %s9886_s20 = scalar_lea.vmem [#allocation4], %s9143_s28 }
  0xac   : > { %s312_s10 = scalar_lea.sflag [#allocation5], %s311_s18 }
  0xad   : > { %9544 = dma.done.wait (%p11333_p11), %s312_s10, 1536  }
  0xae   : > { %9546 = vsyncadd (%p11333_p11), %s312_s10, 4294965760  ;;  %p11334_p0 = scmp.eq.s32.totalorder %s9641_s25, 0 }
  0xb0   : > { %9548 = dma.done.wait (%p11334_p0), [#allocation5], 2560   ;;  %p11335_p5 = pmov %p11334_p0 }
  0xb1   : > { %p11336_p12 = pmov %p11334_p0 }
  0xb2   : > { %9550 = vsyncadd (%p11335_p5), [#allocation5], 4294964736 }
  0xb3   : > { %9552 = dma.done.wait (%p11336_p12), [#allocation8], 9728   ;;  %p11337_p13 = pmov %p11334_p0 }
  0xb4   : > { %p11338_p7 = pmov %p11334_p0 }
  0xb5   : > { %9554 = vsyncadd (%p11337_p13), [#allocation8], 4294957568 }
  0xb6   : > { %9556 = dma.done.wait (%p11338_p7), [#allocation11], 3072   ;;  %p11339_p3 = pmov %p11334_p0 }
  0xb7   : > { %vm449_vm0 = vcmask 261120   ;;  %v397_v0 = vld [vmem:[#allocation6] sm:$0xff]  ;;  %v398_v1 = vld [vmem:[#allocation6 + $0x8] sm:$0xff]  ;;  %v399_v2 = vld [vmem:[#allocation6 + $0x10] sm:$0xff]  ;;  %vm995_vm1 = vcmask 785408   ;;  %vm2473_vm2 = vcmask 130048  }
  0xb8   : > { %9558 = vsyncadd (%p11339_p3), [#allocation11], 4294964224  ;;  %v8796_v3 = vpack.c.bf16 %v398_v1, %v397_v0  ;;  %v400_v4 = vld [vmem:[#allocation6 + $0x18] sm:$0xff]  ;;  %v9905_v5 = vld [vmem:[%s9879_s7] sm:$0xff]  ;;  %vm2779_vm3 = vcmask 392192   ;;  %vm9584_vm4 = vmmov 0  }
  0xb9   : > { %v8800_v6 = vpack.c.bf16 %v400_v4, %v399_v2  ;;  %7860 = vmatprep.mubr.msk.f32.mxu0 %vm449_vm0, %v9905_v5  ;;  %v1977_v7 = vld [vmem:[#allocation9] sm:$0xff]  ;;  %v1978_v8 = vld [vmem:[#allocation9 + $0x8] sm:$0xff]  ;;  %v9915_v11 = vld [vmem:[%s9879_s7 + $0x10] sm:$0xff]  ;;  %v413_v36 = vmul.f32 %v9905_v5, %v9905_v5  ;;  %vm3830_vm5 = vcmask 64512   ;;  %vm4016_vm6 = vcmask 195584   ;;  %p365_p8 = scmp.lt.s32.totalorder %s9641_s25, 1 }
  0xba   : > { %8797 = vmatprep.subr.bf16.mxu0 %v8796_v3  ;;  %v9909_v9 = vpack.c.bf16 %v1978_v8, %v1977_v7  ;;  %v9912_v10 = vld [vmem:[%s9879_s7 + $0x8] sm:$0xff]  ;;  %v1979_v12 = vld [vmem:[#allocation9 + $0x10] sm:$0xff]  ;;  %v1980_v13 = vld [vmem:[#allocation9 + $0x18] sm:$0xff]  ;;  %v415_v38 = vmul.f32 %v9915_v11, %v9915_v11  ;;  %vm4863_vm7 = vcmask 1043456   ;;  %vm4856_vm8 = vcmask 31744  }
  0xbb   : > { %8799 = vmatpush3.bf16.msra.mxu0 %v8796_v3  ;;  %v9920_v14 = vpack.c.bf16 %v1980_v13, %v1979_v12  ;;  %v9925_v15 = vld [vmem:[%s9879_s7 + $0x18] sm:$0xff]  ;;  %v9929_v16 = vld [vmem:[%s9879_s7 + $0x20] sm:$0xff]  ;;  %v9937_v17 = vld [vmem:[%s9879_s7 + $0x28] sm:$0xff]  ;;  %v414_v37 = vmul.f32 %v9912_v10, %v9912_v10  ;;  %vm9586_vm9 = vmmov 1   ;;  %vm4942_vm11 = vcmask 97280   ;;  %s11369_s25 = smov (!%p365_p8, %s9641_s25), 1 }
  0xbc   : > { %8801 = vmatprep.subr.bf16.mxu0 %v8800_v6  ;;  %v9941_v18 = vld [vmem:[%s9879_s7 + $0x30] sm:$0xff]  ;;  %v9949_v19 = vld [vmem:[%s9879_s7 + $0x38] sm:$0xff]  ;;  %v9952_v20 = vld [vmem:[%s9879_s7 + $0x40] sm:$0xff]  ;;  %v416_v39 = vmul.f32 %v9925_v15, %v9925_v15  ;;  %v417_v40 = vmul.f32 %v9929_v16, %v9929_v16  ;;  %v418_v41 = vmul.f32 %v9937_v17, %v9937_v17  ;;  %vm6064_vm12 = vcmask 1041408   ;;  %s7342_s28 = sshll.u32 %s11369_s25, 4 }
  0xbd   : > { %v9959_v21 = vld [vmem:[%s9879_s7 + $0x48] sm:$0xff]  ;;  %v9962_v22 = vld [vmem:[%s9879_s7 + $0x50] sm:$0xff]  ;;  %v9969_v23 = vld [vmem:[%s9879_s7 + $0x58] sm:$0xff]  ;;  %v419_v42 = vmul.f32 %v9941_v18, %v9941_v18  ;;  %v420_v43 = vmul.f32 %v9949_v19, %v9949_v19  ;;  %v421_v44 = vmul.f32 %v9952_v20, %v9952_v20  ;;  %vm6060_vm13 = vcmask 15360  }
  0xbe   : > { %v9972_v24 = vld [vmem:[%s9886_s20] sm:$0xff]  ;;  %v9979_v25 = vld [vmem:[%s9886_s20 + $0x8] sm:$0xff]  ;;  %v9982_v26 = vld [vmem:[%s9886_s20 + $0x10] sm:$0xff]  ;;  %v422_v45 = vmul.f32 %v9959_v21, %v9959_v21  ;;  %v423_v46 = vmul.f32 %v9962_v22, %v9962_v22  ;;  %v424_v47 = vmul.f32 %v9969_v23, %v9969_v23  ;;  %vm5712_vm14 = vcmask 27648  }
  0xbf   : > { %8803 = vmatpush3.bf16.msra.mxu0 %v8800_v6  ;;  %v9989_v27 = vld [vmem:[%s9886_s20 + $0x18] sm:$0xff]  ;;  %v9992_v28 = vld [vmem:[%s9886_s20 + $0x20] sm:$0xff]  ;;  %v9999_v29 = vld [vmem:[%s9886_s20 + $0x28] sm:$0xff]  ;;  %v425_v48 = vmul.f32 %v9972_v24, %v9972_v24  ;;  %v426_v49 = vmul.f32 %v9979_v25, %v9979_v25  ;;  %v427_v50 = vmul.f32 %v9982_v26, %v9982_v26  ;;  %v437_v60 = vmul.f32 %v9972_v24, %v9905_v5 }
  0xc0   : > { %8925 = vmatprep.subr.bf16.mxu0 %v9909_v9  ;;  %v10002_v30 = vld [vmem:[%s9886_s20 + $0x30] sm:$0xff]  ;;  %v10009_v31 = vld [vmem:[%s9886_s20 + $0x38] sm:$0xff]  ;;  %v10012_v32 = vld [vmem:[%s9886_s20 + $0x40] sm:$0xff]  ;;  %v428_v51 = vmul.f32 %v9989_v27, %v9989_v27  ;;  %v429_v52 = vmul.f32 %v9992_v28, %v9992_v28  ;;  %v430_v53 = vmul.f32 %v9999_v29, %v9999_v29  ;;  %v438_v61 = vmul.f32 %v9979_v25, %v9912_v10 }
  0xc1   : > { %v10019_v33 = vld [vmem:[%s9886_s20 + $0x48] sm:$0xff]  ;;  %v10022_v34 = vld [vmem:[%s9886_s20 + $0x50] sm:$0xff]  ;;  %v10029_v35 = vld [vmem:[%s9886_s20 + $0x58] sm:$0xff]  ;;  %v431_v54 = vmul.f32 %v10002_v30, %v10002_v30  ;;  %v432_v55 = vmul.f32 %v10009_v31, %v10009_v31  ;;  %v433_v56 = vmul.f32 %v10012_v32, %v10012_v32  ;;  %v439_v62 = vmul.f32 %v9982_v26, %v9915_v11  ;;  %s11283_s20 = scalar_lea.vmem %s11316_s6, %s7342_s28 }
  0xc2   : > { %7861 = vmatmul.mubr.msk.f32.vlgmr.msra.gmra.mrb[0].mxu0 %vm449_vm0, %v9912_v10  ;;  %v434_v57 = vmul.f32 %v10019_v33, %v10019_v33  ;;  %v435_v58 = vmul.f32 %v10022_v34, %v10022_v34  ;;  %v436_v59 = vmul.f32 %v10029_v35, %v10029_v35  ;;  %v440_v63 = vmul.f32 %v9989_v27, %v9925_v15  ;;  %v10136_v8 = vld [vmem:[#allocation7] sm:$0xff]  ;;  %vm11138_vm10 = vmpackc.low %vm4863_vm7, %vm9586_vm9 }
  0xc3   : > { %7863 = vmatprep.mubr.msk.f32.mxu0 %vm449_vm0, %v9915_v11  ;;  %8927 = vmatpush3.bf16.msra.mxu0 %v9909_v9  ;;  %v441_v0 = vmul.f32 %v9992_v28, %v9929_v16  ;;  %v442_v1 = vmul.f32 %v9999_v29, %v9937_v17  ;;  %v443_v2 = vmul.f32 %v10002_v30, %v9941_v18 }
  0xc4   : > { %8929 = vmatprep.subr.bf16.mxu0 %v9920_v14  ;;  %v444_v3 = vmul.f32 %v10009_v31, %v9949_v19  ;;  %v445_v4 = vmul.f32 %v10012_v32, %v9952_v20  ;;  %v446_v6 = vmul.f32 %v10019_v33, %v9959_v21  ;;  %v447_v7 = vmul.f32 %v10022_v34, %v9962_v22 }
  0xc5   : > { %7974 = vmatprep.mubr.msk.f32.mxu1 %vm995_vm1, %v10136_v8  ;;  %v448_v12 = vmul.f32 %v10029_v35, %v9969_v23 }
  0xc6   : > { %7864 = vmatmul.mubr.msk.f32.gmra.mrb[2].mxu0 %vm449_vm0, %v9925_v15 }
  0xc7   : > { %7866 = vmatprep.mubr.msk.f32.mxu0 %vm449_vm0, %v9929_v16  ;;  %8931 = vmatpush3.bf16.msra.mxu0 %v9920_v14 }
  0xc8   : > { %8957 = vmatprep.subr.bf16.mxu0 %v9909_v9 }
  0xca   : > { %7867 = vmatmul.mubr.msk.f32.gmra.mrb[4].mxu0 %vm449_vm0, %v9937_v17 }
  0xcb   : > { %7869 = vmatprep.mubr.msk.f32.mxu0 %vm449_vm0, %v9941_v18 }
  0xce   : > { %7870 = vmatmul.mubr.msk.f32.gmra.mrb[6].mxu0 %vm449_vm0, %v9949_v19 }
  0xcf   : > { %7872 = vmatprep.mubr.msk.f32.mxu0 %vm449_vm0, %v9952_v20 }
  0xd2   : > { %7873 = vmatmul.mubr.msk.f32.gmra.mrb[8].mxu0 %vm449_vm0, %v9959_v21 }
  0xd3   : > { %7875 = vmatprep.mubr.msk.f32.mxu0 %vm449_vm0, %v9962_v22 }
  0xd6   : > { %7876 = vmatmul.mubr.msk.f32.gmra.mrb[10].mxu0 %vm449_vm0, %v9969_v23 }
  0xd7   : > { %7878 = vmatprep.mubr.msk.f32.mxu0 %vm449_vm0, %v9972_v24 }
  0xda   : > { %7879 = vmatmul.mubr.msk.f32.gmra.mrb[12].mxu0 %vm449_vm0, %v9979_v25 }
  0xdb   : > { %7881 = vmatprep.mubr.msk.f32.mxu0 %vm449_vm0, %v9982_v26 }
  0xde   : > { %7882 = vmatmul.mubr.msk.f32.gmra.mrb[14].mxu0 %vm449_vm0, %v9989_v27 }
  0xdf   : > { %7884 = vmatprep.mubr.msk.f32.mxu0 %vm449_vm0, %v9992_v28 }
  0xe2   : > { %7885 = vmatmul.mubr.msk.f32.gmra.mrb[16].mxu0 %vm449_vm0, %v9999_v29 }
  0xe3   : > { %7887 = vmatprep.mubr.msk.f32.mxu0 %vm449_vm0, %v10002_v30 }
  0xe6   : > { %7888 = vmatmul.mubr.msk.f32.gmra.mrb[18].mxu0 %vm449_vm0, %v10009_v31 }
  0xe7   : > { %7890 = vmatprep.mubr.msk.f32.mxu0 %vm449_vm0, %v10012_v32 }
  0xea   : > { %7891 = vmatmul.mubr.msk.f32.gmra.mrb[20].mxu0 %vm449_vm0, %v10019_v33 }
  0xeb   : > { %7893 = vmatprep.mubr.msk.f32.mxu0 %vm449_vm0, %v10022_v34 }
  0xee   : > { %7894 = vmatmul.mubr.msk.f32.gmra.mrb[22].mxu0 %vm449_vm0, %v10029_v35 }
  0xef   : > { %7896 = vmatprep.mubr.msk.f32.mxu0 %vm449_vm0, %v413_v36  ;;  %v10206_v36 = vld [vmem:[#allocation7 + $0x20] sm:$0xff] }
  0xf2   : > { %7897 = vmatmul.mubr.msk.f32.gmra.mrb[24].mxu0 %vm449_vm0, %v414_v37 }
  0xf3   : > { %7899 = vmatprep.mubr.msk.f32.mxu0 %vm449_vm0, %v415_v38 }
  0xf6   : > { %7900 = vmatmul.mubr.msk.f32.gmra.mrb[26].mxu0 %vm449_vm0, %v416_v39  ;;  %v10212_v39 = vld [vmem:[#allocation7 + $0x28] sm:$0xff] }
  0xf7   : > { %7902 = vmatprep.mubr.msk.f32.mxu0 %vm449_vm0, %v417_v40 }
  0xfa   : > { %7903 = vmatmul.mubr.msk.f32.gmra.mrb[28].mxu0 %vm449_vm0, %v418_v41  ;;  %v10214_v41 = vld [vmem:[#allocation7 + $0x30] sm:$0xff] }
  0xfb   : > { %7905 = vmatprep.mubr.msk.f32.mxu0 %vm449_vm0, %v419_v42 }
  0xfe   : > { %7906 = vmatmul.mubr.msk.f32.gmra.mrb[30].mxu0 %vm449_vm0, %v420_v43 }
  0xff   : > { %7908 = vmatprep.mubr.msk.f32.mxu0 %vm449_vm0, %v421_v44  ;;  %v10220_v44 = vld [vmem:[#allocation7 + $0x38] sm:$0xff] }
 0x102   : > { %7909 = vmatmul.mubr.msk.f32.gmra.mrb[32].mxu0 %vm449_vm0, %v422_v45 }
 0x103   : > { %7911 = vmatprep.mubr.msk.f32.mxu0 %vm449_vm0, %v423_v46  ;;  %v10222_v46 = vld [vmem:[#allocation7 + $0x40] sm:$0xff] }
 0x106   : > { %7912 = vmatmul.mubr.msk.f32.gmra.mrb[34].mxu0 %vm449_vm0, %v424_v47 }
 0x107   : > { %7914 = vmatprep.mubr.msk.f32.mxu0 %vm449_vm0, %v425_v48 }
 0x10a   : > { %7915 = vmatmul.mubr.msk.f32.gmra.mrb[36].mxu0 %vm449_vm0, %v426_v49  ;;  %v10228_v49 = vld [vmem:[#allocation7 + $0x48] sm:$0xff] }
 0x10b   : > { %7917 = vmatprep.mubr.msk.f32.mxu0 %vm449_vm0, %v427_v50 }
 0x10e   : > { %7918 = vmatmul.mubr.msk.f32.gmra.mrb[38].mxu0 %vm449_vm0, %v428_v51  ;;  %v10230_v51 = vld [vmem:[#allocation7 + $0x50] sm:$0xff] }
 0x10f   : > { %7920 = vmatprep.mubr.msk.f32.mxu0 %vm449_vm0, %v429_v52 }
 0x112   : > { %7921 = vmatmul.mubr.msk.f32.gmra.mrb[40].mxu0 %vm449_vm0, %v430_v53 }
 0x113   : > { %7923 = vmatprep.mubr.msk.f32.mxu0 %vm449_vm0, %v431_v54  ;;  %v10236_v54 = vld [vmem:[#allocation7 + $0x58] sm:$0xff] }
 0x116   : > { %7924 = vmatmul.mubr.msk.f32.gmra.mrb[42].mxu0 %vm449_vm0, %v432_v55 }
 0x117   : > { %7926 = vmatprep.mubr.msk.f32.mxu0 %vm449_vm0, %v433_v56 }
 0x11a   : > { %7927 = vmatmul.mubr.msk.f32.gmra.mrb[44].mxu0 %vm449_vm0, %v434_v57 }
 0x11b   : > { %7929 = vmatprep.mubr.msk.f32.mxu0 %vm449_vm0, %v435_v58 }
 0x11e   : > { %7930 = vmatmul.mubr.msk.f32.gmra.mrb[46].mxu0 %vm449_vm0, %v436_v59 }
 0x11f   : > { %7932 = vmatprep.mubr.msk.f32.mxu0 %vm449_vm0, %v437_v60 }
 0x122   : > { %7933 = vmatmul.mubr.msk.f32.gmra.mrb[48].mxu0 %vm449_vm0, %v438_v61 }
 0x123   : > { %7935 = vmatprep.mubr.msk.f32.mxu0 %vm449_vm0, %v439_v62 }
 0x126   : > { %7936 = vmatmul.mubr.msk.f32.gmra.mrb[50].mxu0 %vm449_vm0, %v440_v63 }
 0x127   : > { %7938 = vmatprep.mubr.msk.f32.mxu0 %vm449_vm0, %v441_v0 }
 0x12a   : > { %7939 = vmatmul.mubr.msk.f32.gmra.mrb[52].mxu0 %vm449_vm0, %v442_v1 }
 0x12b   : > { %7941 = vmatprep.mubr.msk.f32.mxu0 %vm449_vm0, %v443_v2 }
 0x12e   : > { %7942 = vmatmul.mubr.msk.f32.gmra.mrb[54].mxu0 %vm449_vm0, %v444_v3 }
 0x12f   : > { %7944 = vmatprep.mubr.msk.f32.mxu0 %vm449_vm0, %v445_v4 }
 0x132   : > { %7945 = vmatmul.mubr.msk.f32.gmra.mrb[56].mxu0 %vm449_vm0, %v446_v6 }
 0x133   : > { %7947 = vmatprep.mubr.msk.f32.mxu0 %vm449_vm0, %v447_v7 }
 0x136   : > { %7948 = vmatmul.mubr.msk.f32.gmra.mrb[58].mxu0 %vm449_vm0, %v448_v12 }
 0x137   : > { %8168 = vmatprep.mubr.msk.f32.mxu0 %vm449_vm0, %v9905_v5 }
 0x13a   : > { %8169 = vmatmul.mubr.msk.f32.vlgmr.msra.gmra.mrb[60].mxu0 %vm449_vm0, %v9912_v10 }
 0x13b   : > { %8171 = vmatprep.mubr.msk.f32.mxu0 %vm449_vm0, %v9915_v11  ;;  %8959 = vmatpush3.bf16.msra.mxu0 %v9909_v9 }
 0x13c   : > { %8961 = vmatprep.subr.bf16.mxu0 %v9920_v14 }
 0x13e   : > { %8172 = vmatmul.mubr.msk.f32.gmra.mrb[62].mxu0 %vm449_vm0, %v9925_v15 }
 0x13f   : > { %8174 = vmatprep.mubr.msk.f32.mxu0 %vm449_vm0, %v9929_v16  ;;  %8963 = vmatpush3.bf16.msra.mxu0 %v9920_v14 }
 0x142   : > { %8175 = vmatmul.mubr.msk.f32.gmra.mrb[64].mxu0 %vm449_vm0, %v9937_v17 }
 0x143   : > { %8177 = vmatprep.mubr.msk.f32.mxu0 %vm449_vm0, %v9941_v18 }
 0x146   : > { %8178 = vmatmul.mubr.msk.f32.gmra.mrb[66].mxu0 %vm449_vm0, %v9949_v19 }
 0x147   : > { %8180 = vmatprep.mubr.msk.f32.mxu0 %vm449_vm0, %v9952_v20 }
 0x14a   : > { %8181 = vmatmul.mubr.msk.f32.gmra.mrb[68].mxu0 %vm449_vm0, %v9959_v21 }
 0x14b   : > { %8183 = vmatprep.mubr.msk.f32.mxu0 %vm449_vm0, %v9962_v22 }
 0x14e   : > { %8184 = vmatmul.mubr.msk.f32.gmra.mrb[70].mxu0 %vm449_vm0, %v9969_v23 }
 0x14f   : > { %8227 = vmatprep.mubr.msk.f32.mxu0 %vm449_vm0, %v9972_v24 }
 0x152   : > { %8228 = vmatmul.mubr.msk.f32.vlgmr.msra.gmra.mrb[72].mxu0 %vm449_vm0, %v9979_v25 }
 0x153   : > { %8230 = vmatprep.mubr.msk.f32.mxu0 %vm449_vm0, %v9982_v26 }
 0x156   : > { %8231 = vmatmul.mubr.msk.f32.gmra.mrb[74].mxu0 %vm449_vm0, %v9989_v27 }
 0x157   : > { %8233 = vmatprep.mubr.msk.f32.mxu0 %vm449_vm0, %v9992_v28 }
 0x15a   : > { %8234 = vmatmul.mubr.msk.f32.gmra.mrb[76].mxu0 %vm449_vm0, %v9999_v29  ;;  %v10196_v29 = vld [vmem:[#allocation7 + $0x8] sm:$0xff] }
 0x15b   : > { %8236 = vmatprep.mubr.msk.f32.mxu0 %vm449_vm0, %v10002_v30 }
 0x15e   : > { %8237 = vmatmul.mubr.msk.f32.gmra.mrb[78].mxu0 %vm449_vm0, %v10009_v31  ;;  %v10198_v31 = vld [vmem:[#allocation7 + $0x10] sm:$0xff] }
 0x15f   : > { %8239 = vmatprep.mubr.msk.f32.mxu0 %vm449_vm0, %v10012_v32 }
 0x162   : > { %8240 = vmatmul.mubr.msk.f32.gmra.mrb[80].mxu0 %vm449_vm0, %v10019_v33 }
 0x163   : > { %8242 = vmatprep.mubr.msk.f32.mxu0 %vm449_vm0, %v10022_v34  ;;  %v10204_v34 = vld [vmem:[#allocation7 + $0x18] sm:$0xff] }
 0x166   : > { %8243 = vmatmul.mubr.msk.f32.gmra.mrb[82].mxu0 %vm449_vm0, %v10029_v35 }
 0x195   : > { %v7862_v5 = vpop.f32.mrb[0].mxu0 }
 0x196   : > { %v696_v9 = vpop.f32.mrb[1].mxu0 }
 0x197   : > { %v8804_v10 = vpack.c.bf16 %v7862_v5, %v696_v9 }
 0x199   : > { %v7865_v11 = vpop.f32.mrb[2].mxu0  ;;  %8805 = vmatprep.subr.bf16.mxu1 %v8804_v10 }
 0x19a   : > { %v706_v13 = vpop.f32.mrb[3].mxu0  ;;  %8807 = vmatpush3.bf16.msra.mxu1 %v8804_v10 }
 0x19b   : > { %v8808_v14 = vpack.c.bf16 %v7865_v11, %v706_v13 }
 0x19d   : > { %v7868_v15 = vpop.f32.mrb[4].mxu0  ;;  %8809 = vmatprep.subr.bf16.mxu1 %v8808_v14 }
 0x19e   : > { %v716_v16 = vpop.f32.mrb[5].mxu0  ;;  %8811 = vmatpush3.bf16.msra.mxu1 %v8808_v14 }
 0x19f   : > { %v8812_v17 = vpack.c.bf16 %v7868_v15, %v716_v16 }
 0x1a1   : > { %v7871_v18 = vpop.f32.mrb[6].mxu0  ;;  %8813 = vmatprep.subr.bf16.mxu1 %v8812_v17 }
 0x1a2   : > { %v726_v19 = vpop.f32.mrb[7].mxu0  ;;  %8815 = vmatpush3.bf16.msra.mxu1 %v8812_v17 }
 0x1a3   : > { %v8816_v20 = vpack.c.bf16 %v7871_v18, %v726_v19 }
 0x1a5   : > { %v7874_v21 = vpop.f32.mrb[8].mxu0  ;;  %8817 = vmatprep.subr.bf16.mxu1 %v8816_v20 }
 0x1a6   : > { %v736_v22 = vpop.f32.mrb[9].mxu0  ;;  %8819 = vmatpush3.bf16.msra.mxu1 %v8816_v20 }
 0x1a7   : > { %v8820_v23 = vpack.c.bf16 %v7874_v21, %v736_v22 }
 0x1a9   : > { %v7877_v24 = vpop.f32.mrb[10].mxu0  ;;  %8821 = vmatprep.subr.bf16.mxu1 %v8820_v23 }
 0x1aa   : > { %v746_v25 = vpop.f32.mrb[11].mxu0  ;;  %8823 = vmatpush3.bf16.msra.mxu1 %v8820_v23 }
 0x1ab   : > { %v8824_v26 = vpack.c.bf16 %v7877_v24, %v746_v25 }
 0x1ad   : > { %v7880_v27 = vpop.f32.mrb[12].mxu0  ;;  %8825 = vmatprep.subr.bf16.mxu1 %v8824_v26 }
 0x1ae   : > { %v756_v28 = vpop.f32.mrb[13].mxu0  ;;  %8827 = vmatpush3.bf16.msra.mxu1 %v8824_v26 }
 0x1af   : > { %v8828_v30 = vpack.c.bf16 %v7880_v27, %v756_v28 }
 0x1b1   : > { %v7883_v32 = vpop.f32.mrb[14].mxu0  ;;  %7975 = vmatmul.mubr.msk.f32.vlgmr.msra.gmra.mrb[0].mxu1 %vm995_vm1, %v10196_v29  ;;  %8829 = vmatprep.subr.bf16.mxu1 %v8828_v30 }
 0x1b2   : > { %v766_v33 = vpop.f32.mrb[15].mxu0  ;;  %8831 = vmatpush3.bf16.msra.mxu1 %v8828_v30  ;;  %7977 = vmatprep.mubr.msk.f32.mxu1 %vm995_vm1, %v10198_v31 }
 0x1b3   : > { %v8832_v35 = vpack.c.bf16 %v7883_v32, %v766_v33 }
 0x1b5   : > { %v7886_v37 = vpop.f32.mrb[16].mxu0  ;;  %7978 = vmatmul.mubr.msk.f32.gmra.mrb[2].mxu1 %vm995_vm1, %v10204_v34  ;;  %8833 = vmatprep.subr.bf16.mxu1 %v8832_v35 }
 0x1b6   : > { %v776_v38 = vpop.f32.mrb[17].mxu0  ;;  %8835 = vmatpush3.bf16.msra.mxu1 %v8832_v35  ;;  %7980 = vmatprep.mubr.msk.f32.mxu1 %vm995_vm1, %v10206_v36 }
 0x1b7   : > { %v8836_v40 = vpack.c.bf16 %v7886_v37, %v776_v38 }
 0x1b9   : > { %v7889_v42 = vpop.f32.mrb[18].mxu0  ;;  %7981 = vmatmul.mubr.msk.f32.gmra.mrb[4].mxu1 %vm995_vm1, %v10212_v39  ;;  %8837 = vmatprep.subr.bf16.mxu1 %v8836_v40 }
 0x1ba   : > { %v786_v43 = vpop.f32.mrb[19].mxu0  ;;  %8839 = vmatpush3.bf16.msra.mxu1 %v8836_v40  ;;  %7983 = vmatprep.mubr.msk.f32.mxu1 %vm995_vm1, %v10214_v41 }
 0x1bb   : > { %v8840_v45 = vpack.c.bf16 %v7889_v42, %v786_v43 }
 0x1bd   : > { %v7892_v47 = vpop.f32.mrb[20].mxu0  ;;  %7984 = vmatmul.mubr.msk.f32.gmra.mrb[6].mxu1 %vm995_vm1, %v10220_v44  ;;  %8841 = vmatprep.subr.bf16.mxu1 %v8840_v45 }
 0x1be   : > { %v796_v48 = vpop.f32.mrb[21].mxu0  ;;  %8843 = vmatpush3.bf16.msra.mxu1 %v8840_v45  ;;  %7986 = vmatprep.mubr.msk.f32.mxu1 %vm995_vm1, %v10222_v46 }
 0x1bf   : > { %v8844_v50 = vpack.c.bf16 %v7892_v47, %v796_v48 }
 0x1c1   : > { %v7895_v52 = vpop.f32.mrb[22].mxu0  ;;  %7987 = vmatmul.mubr.msk.f32.gmra.mrb[8].mxu1 %vm995_vm1, %v10228_v49  ;;  %8845 = vmatprep.subr.bf16.mxu1 %v8844_v50 }
 0x1c2   : > { %v806_v53 = vpop.f32.mrb[23].mxu0  ;;  %8847 = vmatpush3.bf16.msra.mxu1 %v8844_v50  ;;  %7989 = vmatprep.mubr.msk.f32.mxu1 %vm995_vm1, %v10230_v51 }
 0x1c3   : > { %v8848_v55 = vpack.c.bf16 %v7895_v52, %v806_v53 }
 0x1c5   : > { %v7898_v56 = vpop.f32.mrb[24].mxu0  ;;  %7990 = vmatmul.mubr.msk.f32.gmra.mrb[10].mxu1 %vm995_vm1, %v10236_v54  ;;  %8849 = vmatprep.subr.bf16.mxu1 %v8848_v55 }
 0x1c6   : > { %v816_v57 = vpop.f32.mrb[25].mxu0  ;;  %8851 = vmatpush3.bf16.msra.mxu1 %v8848_v55  ;;  %8016 = vmatprep.mubr.msk.f32.mxu1 %vm995_vm1, %v10136_v8 }
 0x1c7   : > { %v8852_v58 = vpack.c.bf16 %v7898_v56, %v816_v57 }
 0x1c9   : > { %v7901_v59 = vpop.f32.mrb[26].mxu0  ;;  %8017 = vmatmul.mubr.msk.f32.vlgmr.msra.gmra.mrb[12].mxu1 %vm995_vm1, %v10196_v29  ;;  %8853 = vmatprep.subr.bf16.mxu1 %v8852_v58 }
 0x1ca   : > { %v826_v60 = vpop.f32.mrb[27].mxu0  ;;  %8855 = vmatpush3.bf16.msra.mxu1 %v8852_v58  ;;  %8019 = vmatprep.mubr.msk.f32.mxu1 %vm995_vm1, %v10198_v31 }
 0x1cb   : > { %v8856_v61 = vpack.c.bf16 %v7901_v59, %v826_v60 }
 0x1cd   : > { %v7904_v62 = vpop.f32.mrb[28].mxu0  ;;  %8020 = vmatmul.mubr.msk.f32.gmra.mrb[14].mxu1 %vm995_vm1, %v10204_v34  ;;  %8857 = vmatprep.subr.bf16.mxu1 %v8856_v61 }
 0x1ce   : > { %v836_v63 = vpop.f32.mrb[29].mxu0  ;;  %8859 = vmatpush3.bf16.msra.mxu1 %v8856_v61  ;;  %8022 = vmatprep.mubr.msk.f32.mxu1 %vm995_vm1, %v10206_v36 }
 0x1cf   : > { %v8860_v0 = vpack.c.bf16 %v7904_v62, %v836_v63 }
 0x1d1   : > { %v7907_v1 = vpop.f32.mrb[30].mxu0  ;;  %8023 = vmatmul.mubr.msk.f32.gmra.mrb[16].mxu1 %vm995_vm1, %v10212_v39  ;;  %8861 = vmatprep.subr.bf16.mxu1 %v8860_v0 }
 0x1d2   : > { %v846_v2 = vpop.f32.mrb[31].mxu0  ;;  %8863 = vmatpush3.bf16.msra.mxu1 %v8860_v0  ;;  %8025 = vmatprep.mubr.msk.f32.mxu1 %vm995_vm1, %v10214_v41 }
 0x1d3   : > { %v8864_v3 = vpack.c.bf16 %v7907_v1, %v846_v2 }
 0x1d5   : > { %v7910_v4 = vpop.f32.mrb[32].mxu0  ;;  %8026 = vmatmul.mubr.msk.f32.gmra.mrb[18].mxu1 %vm995_vm1, %v10220_v44  ;;  %8865 = vmatprep.subr.bf16.mxu1 %v8864_v3 }
 0x1d6   : > { %v856_v6 = vpop.f32.mrb[33].mxu0  ;;  %8867 = vmatpush3.bf16.msra.mxu1 %v8864_v3  ;;  %8028 = vmatprep.mubr.msk.f32.mxu1 %vm995_vm1, %v10222_v46 }
 0x1d7   : > { %v8868_v7 = vpack.c.bf16 %v7910_v4, %v856_v6 }
 0x1d9   : > { %v7913_v12 = vpop.f32.mrb[34].mxu0  ;;  %8029 = vmatmul.mubr.msk.f32.gmra.mrb[20].mxu1 %vm995_vm1, %v10228_v49  ;;  %8869 = vmatprep.subr.bf16.mxu1 %v8868_v7 }
 0x1da   : > { %v866_v5 = vpop.f32.mrb[35].mxu0  ;;  %8871 = vmatpush3.bf16.msra.mxu1 %v8868_v7  ;;  %8031 = vmatprep.mubr.msk.f32.mxu1 %vm995_vm1, %v10230_v51  ;;  %v1982_v7 = vld [vmem:[#allocation10 + $0x8] sm:$0xff] }
 0x1db   : > { %v8872_v9 = vpack.c.bf16 %v7913_v12, %v866_v5  ;;  %v1983_v12 = vld [vmem:[#allocation10 + $0x10] sm:$0xff] }
 0x1dd   : > { %v7916_v10 = vpop.f32.mrb[36].mxu0  ;;  %8032 = vmatmul.mubr.msk.f32.gmra.mrb[22].mxu1 %vm995_vm1, %v10236_v54  ;;  %8873 = vmatprep.subr.bf16.mxu1 %v8872_v9 }
 0x1de   : > { %v876_v11 = vpop.f32.mrb[37].mxu0  ;;  %8875 = vmatpush3.bf16.msra.mxu1 %v8872_v9  ;;  %8058 = vmatprep.mubr.msk.f32.mxu1 %vm995_vm1, %v10136_v8 }
 0x1df   : > { %v8876_v13 = vpack.c.bf16 %v7916_v10, %v876_v11 }
 0x1e1   : > { %v7919_v14 = vpop.f32.mrb[38].mxu0  ;;  %8059 = vmatmul.mubr.msk.f32.vlgmr.msra.gmra.mrb[24].mxu1 %vm995_vm1, %v10196_v29  ;;  %8877 = vmatprep.subr.bf16.mxu1 %v8876_v13 }
 0x1e2   : > { %v886_v15 = vpop.f32.mrb[39].mxu0  ;;  %8879 = vmatpush3.bf16.msra.mxu1 %v8876_v13  ;;  %8061 = vmatprep.mubr.msk.f32.mxu1 %vm995_vm1, %v10198_v31 }
 0x1e3   : > { %v8880_v16 = vpack.c.bf16 %v7919_v14, %v886_v15  ;;  %v1986_v14 = vld [vmem:[#allocation10 + $0x28] sm:$0xff] }
 0x1e5   : > { %v7922_v17 = vpop.f32.mrb[40].mxu0  ;;  %8062 = vmatmul.mubr.msk.f32.gmra.mrb[26].mxu1 %vm995_vm1, %v10204_v34  ;;  %8881 = vmatprep.subr.bf16.mxu1 %v8880_v16 }
 0x1e6   : > { %v896_v18 = vpop.f32.mrb[41].mxu0  ;;  %8883 = vmatpush3.bf16.msra.mxu1 %v8880_v16  ;;  %8064 = vmatprep.mubr.msk.f32.mxu1 %vm995_vm1, %v10206_v36 }
 0x1e7   : > { %v8884_v19 = vpack.c.bf16 %v7922_v17, %v896_v18 }
 0x1e9   : > { %v7925_v20 = vpop.f32.mrb[42].mxu0  ;;  %8065 = vmatmul.mubr.msk.f32.gmra.mrb[28].mxu1 %vm995_vm1, %v10212_v39  ;;  %8885 = vmatprep.subr.bf16.mxu1 %v8884_v19 }
 0x1ea   : > { %v906_v21 = vpop.f32.mrb[43].mxu0  ;;  %8887 = vmatpush3.bf16.msra.mxu1 %v8884_v19  ;;  %8067 = vmatprep.mubr.msk.f32.mxu1 %vm995_vm1, %v10214_v41 }
 0x1eb   : > { %v8888_v22 = vpack.c.bf16 %v7925_v20, %v906_v21 }
 0x1ed   : > { %v7928_v23 = vpop.f32.mrb[44].mxu0  ;;  %8068 = vmatmul.mubr.msk.f32.gmra.mrb[30].mxu1 %vm995_vm1, %v10220_v44  ;;  %8889 = vmatprep.subr.bf16.mxu1 %v8888_v22 }
 0x1ee   : > { %v916_v24 = vpop.f32.mrb[45].mxu0  ;;  %8891 = vmatpush3.bf16.msra.mxu1 %v8888_v22  ;;  %8070 = vmatprep.mubr.msk.f32.mxu1 %vm995_vm1, %v10222_v46 }
 0x1ef   : > { %v8892_v25 = vpack.c.bf16 %v7928_v23, %v916_v24 }
 0x1f1   : > { %v7931_v26 = vpop.f32.mrb[46].mxu0  ;;  %8071 = vmatmul.mubr.msk.f32.gmra.mrb[32].mxu1 %vm995_vm1, %v10228_v49  ;;  %8893 = vmatprep.subr.bf16.mxu1 %v8892_v25 }
 0x1f2   : > { %v926_v27 = vpop.f32.mrb[47].mxu0  ;;  %8895 = vmatpush3.bf16.msra.mxu1 %v8892_v25  ;;  %8073 = vmatprep.mubr.msk.f32.mxu1 %vm995_vm1, %v10230_v51  ;;  %v2446_v25 = vld [vmem:[#allocation6 + $0x20] sm:$0xff] }
 0x1f3   : > { %v8896_v28 = vpack.c.bf16 %v7931_v26, %v926_v27  ;;  %v2447_v26 = vld [vmem:[#allocation6 + $0x28] sm:$0xff] }
 0x1f4   : > { %v8988_v27 = vpack.c.bf16 %v2447_v26, %v2446_v25 }
 0x1f5   : > { %v7934_v30 = vpop.f32.mrb[48].mxu0  ;;  %8074 = vmatmul.mubr.msk.f32.gmra.mrb[34].mxu1 %vm995_vm1, %v10236_v54  ;;  %8897 = vmatprep.subr.bf16.mxu1 %v8896_v28 }
 0x1f6   : > { %v936_v32 = vpop.f32.mrb[49].mxu0  ;;  %8899 = vmatpush3.bf16.msra.mxu1 %v8896_v28  ;;  %8100 = vmatprep.mubr.msk.f32.mxu1 %vm995_vm1, %v10136_v8 }
 0x1f7   : > { %v8900_v33 = vpack.c.bf16 %v7934_v30, %v936_v32  ;;  %8989 = vmatprep.subr.bf16.mxu0 %v8988_v27 }
 0x1f8   : > { %8991 = vmatpush3.bf16.msra.mxu0 %v8988_v27 }
 0x1f9   : > { %v7937_v35 = vpop.f32.mrb[50].mxu0  ;;  %8101 = vmatmul.mubr.msk.f32.vlgmr.msra.gmra.mrb[36].mxu1 %vm995_vm1, %v10196_v29  ;;  %8901 = vmatprep.subr.bf16.mxu1 %v8900_v33 }
 0x1fa   : > { %v946_v37 = vpop.f32.mrb[51].mxu0  ;;  %8903 = vmatpush3.bf16.msra.mxu1 %v8900_v33  ;;  %8103 = vmatprep.mubr.msk.f32.mxu1 %vm995_vm1, %v10198_v31 }
 0x1fb   : > { %v8904_v38 = vpack.c.bf16 %v7937_v35, %v946_v37 }
 0x1fd   : > { %v7940_v40 = vpop.f32.mrb[52].mxu0  ;;  %8104 = vmatmul.mubr.msk.f32.gmra.mrb[38].mxu1 %vm995_vm1, %v10204_v34  ;;  %8905 = vmatprep.subr.bf16.mxu1 %v8904_v38 }
 0x1fe   : > { %v956_v42 = vpop.f32.mrb[53].mxu0  ;;  %8907 = vmatpush3.bf16.msra.mxu1 %v8904_v38  ;;  %8106 = vmatprep.mubr.msk.f32.mxu1 %vm995_vm1, %v10206_v36  ;;  %v3450_v38 = vld [vmem:[#allocation9 + $0x20] sm:$0xff] }
 0x1ff   : > { %v8908_v43 = vpack.c.bf16 %v7940_v40, %v956_v42  ;;  %v3451_v40 = vld [vmem:[#allocation9 + $0x28] sm:$0xff] }
 0x201   : > { %v7943_v45 = vpop.f32.mrb[54].mxu0  ;;  %8107 = vmatmul.mubr.msk.f32.gmra.mrb[40].mxu1 %vm995_vm1, %v10212_v39  ;;  %8909 = vmatprep.subr.bf16.mxu1 %v8908_v43 }
 0x202   : > { %v966_v47 = vpop.f32.mrb[55].mxu0  ;;  %8911 = vmatpush3.bf16.msra.mxu1 %v8908_v43  ;;  %8109 = vmatprep.mubr.msk.f32.mxu1 %vm995_vm1, %v10214_v41  ;;  %v10348_v43 = vpack.c.bf16 %v3451_v40, %v3450_v38 }
 0x203   : > { %v8912_v48 = vpack.c.bf16 %v7943_v45, %v966_v47 }
 0x204   : > { %11340 = vst [vmem:[#allocation17_spill] sm:$0xff] %v10348_v43  ;;  %9053 = vmatprep.subr.bf16.mxu0 %v10348_v43 }
 0x205   : > { %v7946_v50 = vpop.f32.mrb[56].mxu0  ;;  %8110 = vmatmul.mubr.msk.f32.gmra.mrb[42].mxu1 %vm995_vm1, %v10220_v44  ;;  %8913 = vmatprep.subr.bf16.mxu1 %v8912_v48 }
 0x206   : > { %v976_v52 = vpop.f32.mrb[57].mxu0  ;;  %8915 = vmatpush3.bf16.msra.mxu1 %v8912_v48  ;;  %8112 = vmatprep.mubr.msk.f32.mxu1 %vm995_vm1, %v10222_v46 }
 0x207   : > { %v8916_v53 = vpack.c.bf16 %v7946_v50, %v976_v52 }
 0x209   : > { %v7949_v55 = vpop.f32.mrb[58].mxu0  ;;  %8113 = vmatmul.mubr.msk.f32.gmra.mrb[44].mxu1 %vm995_vm1, %v10228_v49  ;;  %8917 = vmatprep.subr.bf16.mxu1 %v8916_v53 }
 0x20a   : > { %v986_v56 = vpop.f32.mrb[59].mxu0  ;;  %8919 = vmatpush3.bf16.msra.mxu1 %v8916_v53  ;;  %8115 = vmatprep.mubr.msk.f32.mxu1 %vm995_vm1, %v10230_v51 }
 0x20b   : > { %v8920_v57 = vpack.c.bf16 %v7949_v55, %v986_v56 }
 0x20d   : > { %8116 = vmatmul.mubr.msk.f32.gmra.mrb[46].mxu1 %vm995_vm1, %v10236_v54  ;;  %8921 = vmatprep.subr.bf16.mxu1 %v8920_v57  ;;  %v8170_v58 = vpop.f32.mrb[60].mxu0 }
 0x20e   : > { %8923 = vmatpush3.bf16.msra.mxu1 %v8920_v57  ;;  %v2053_v59 = vpop.f32.mrb[61].mxu0  ;;  %8142 = vmatprep.mubr.msk.f32.mxu1 %vm995_vm1, %v10136_v8 }
 0x20f   : > { %v8932_v60 = vpack.c.bf16 %v8170_v58, %v2053_v59 }
 0x211   : > { %8143 = vmatmul.mubr.msk.f32.vlgmr.msra.gmra.mrb[48].mxu1 %vm995_vm1, %v10196_v29  ;;  %v8173_v61 = vpop.f32.mrb[62].mxu0  ;;  %8933 = vmatprep.subr.bf16.mxu1 %v8932_v60 }
 0x212   : > { %v2063_v62 = vpop.f32.mrb[63].mxu0  ;;  %8935 = vmatpush3.bf16.msra.mxu1 %v8932_v60  ;;  %8145 = vmatprep.mubr.msk.f32.mxu1 %vm995_vm1, %v10198_v31 }
 0x213   : > { %v8936_v63 = vpack.c.bf16 %v8173_v61, %v2063_v62 }
 0x215   : > { %8146 = vmatmul.mubr.msk.f32.gmra.mrb[50].mxu1 %vm995_vm1, %v10204_v34  ;;  %v8176_v0 = vpop.f32.mrb[64].mxu0  ;;  %8937 = vmatprep.subr.bf16.mxu1 %v8936_v63 }
 0x216   : > { %v2073_v1 = vpop.f32.mrb[65].mxu0  ;;  %8939 = vmatpush3.bf16.msra.mxu1 %v8936_v63  ;;  %8148 = vmatprep.mubr.msk.f32.mxu1 %vm995_vm1, %v10206_v36 }
 0x217   : > { %v8940_v8 = vpack.c.bf16 %v8176_v0, %v2073_v1 }
 0x219   : > { %8149 = vmatmul.mubr.msk.f32.gmra.mrb[52].mxu1 %vm995_vm1, %v10212_v39  ;;  %v8179_v29 = vpop.f32.mrb[66].mxu0  ;;  %8941 = vmatprep.subr.bf16.mxu1 %v8940_v8 }
 0x21a   : > { %v2083_v2 = vpop.f32.mrb[67].mxu0  ;;  %8943 = vmatpush3.bf16.msra.mxu1 %v8940_v8  ;;  %8151 = vmatprep.mubr.msk.f32.mxu1 %vm995_vm1, %v10214_v41 }
 0x21b   : > { %v8944_v31 = vpack.c.bf16 %v8179_v29, %v2083_v2 }
 0x21d   : > { %8152 = vmatmul.mubr.msk.f32.gmra.mrb[54].mxu1 %vm995_vm1, %v10220_v44  ;;  %v8182_v34 = vpop.f32.mrb[68].mxu0  ;;  %8945 = vmatprep.subr.bf16.mxu1 %v8944_v31  ;;  %v1981_v44 = vld [vmem:[#allocation10] sm:$0xff] }
 0x21e   : > { %v2093_v3 = vpop.f32.mrb[69].mxu0  ;;  %8947 = vmatpush3.bf16.msra.mxu1 %v8944_v31  ;;  %8154 = vmatprep.mubr.msk.f32.mxu1 %vm995_vm1, %v10222_v46 }
 0x21f   : > { %v8948_v36 = vpack.c.bf16 %v8182_v34, %v2093_v3 }
 0x221   : > { %8155 = vmatmul.mubr.msk.f32.gmra.mrb[56].mxu1 %vm995_vm1, %v10228_v49  ;;  %v8185_v39 = vpop.f32.mrb[70].mxu0  ;;  %8949 = vmatprep.subr.bf16.mxu1 %v8948_v36 }
 0x222   : > { %v2103_v4 = vpop.f32.mrb[71].mxu0  ;;  %8951 = vmatpush3.bf16.msra.mxu1 %v8948_v36  ;;  %8157 = vmatprep.mubr.msk.f32.mxu1 %vm995_vm1, %v10230_v51  ;;  %v1984_v51 = vld [vmem:[#allocation10 + $0x18] sm:$0xff] }
 0x223   : > { %v8952_v41 = vpack.c.bf16 %v8185_v39, %v2103_v4 }
 0x225   : > { %8158 = vmatmul.mubr.msk.f32.gmra.mrb[58].mxu1 %vm995_vm1, %v10236_v54  ;;  %8953 = vmatprep.subr.bf16.mxu1 %v8952_v41  ;;  %v8229_v6 = vpop.f32.mrb[72].mxu0  ;;  %v1985_v54 = vld [vmem:[#allocation10 + $0x20] sm:$0xff] }
 0x226   : > { %8955 = vmatpush3.bf16.msra.mxu1 %v8952_v41  ;;  %v2291_v46 = vpop.f32.mrb[73].mxu0  ;;  %8210 = vmatprep.mubr.msk.f32.mxu1 %vm995_vm1, %v1981_v44 }
 0x227   : > { %v8964_v49 = vpack.c.bf16 %v8229_v6, %v2291_v46 }
 0x229   : > { %8211 = vmatmul.mubr.msk.f32.vlgmr.msra.gmra.mrb[60].mxu1 %vm995_vm1, %v1982_v7  ;;  %v8232_v5 = vpop.f32.mrb[74].mxu0  ;;  %8965 = vmatprep.subr.bf16.mxu1 %v8964_v49 }
 0x22a   : > { %v2301_v9 = vpop.f32.mrb[75].mxu0  ;;  %8967 = vmatpush3.bf16.msra.mxu1 %v8964_v49  ;;  %8213 = vmatprep.mubr.msk.f32.mxu1 %vm995_vm1, %v1983_v12 }
 0x22b   : > { %v8968_v10 = vpack.c.bf16 %v8232_v5, %v2301_v9 }
 0x22d   : > { %v8235_v11 = vpop.f32.mrb[76].mxu0  ;;  %8969 = vmatprep.subr.bf16.mxu1 %v8968_v10  ;;  %8214 = vmatmul.mubr.msk.f32.gmra.mrb[62].mxu1 %vm995_vm1, %v1984_v51 }
 0x22e   : > { %v2311_v13 = vpop.f32.mrb[77].mxu0  ;;  %8971 = vmatpush3.bf16.msra.mxu1 %v8968_v10  ;;  %8216 = vmatprep.mubr.msk.f32.mxu1 %vm995_vm1, %v1985_v54 }
 0x22f   : > { %v8972_v15 = vpack.c.bf16 %v8235_v11, %v2311_v13 }
 0x231   : > { %v8238_v16 = vpop.f32.mrb[78].mxu0  ;;  %8973 = vmatprep.subr.bf16.mxu1 %v8972_v15  ;;  %8217 = vmatmul.mubr.msk.f32.gmra.mrb[64].mxu1 %vm995_vm1, %v1986_v14 }
 0x232   : > { %v2321_v17 = vpop.f32.mrb[79].mxu0  ;;  %8975 = vmatpush3.bf16.msra.mxu1 %v8972_v15  ;;  %8269 = vmatprep.mubr.msk.f32.mxu1 %vm995_vm1, %v1981_v44 }
 0x233   : > { %v8976_v18 = vpack.c.bf16 %v8238_v16, %v2321_v17 }
 0x235   : > { %v8241_v19 = vpop.f32.mrb[80].mxu0  ;;  %8977 = vmatprep.subr.bf16.mxu1 %v8976_v18 }
 0x236   : > { %v2331_v20 = vpop.f32.mrb[81].mxu0  ;;  %8979 = vmatpush3.bf16.msra.mxu1 %v8976_v18 }
 0x237   : > { %v8980_v21 = vpack.c.bf16 %v8241_v19, %v2331_v20 }
 0x239   : > { %v8244_v22 = vpop.f32.mrb[82].mxu0  ;;  %8981 = vmatprep.subr.bf16.mxu1 %v8980_v21 }
 0x23a   : > { %v2341_v23 = vpop.f32.mrb[83].mxu0  ;;  %8983 = vmatpush3.bf16.msra.mxu1 %v8980_v21 }
 0x23b   : > { %v8984_v24 = vpack.c.bf16 %v8244_v22, %v2341_v23 }
 0x23d   : > { %8985 = vmatprep.subr.bf16.mxu1 %v8984_v24 }
 0x23e   : > { %8987 = vmatpush3.bf16.msra.mxu1 %v8984_v24 }
 0x241   : > { %8270 = vmatmul.mubr.msk.f32.vlgmr.msra.gmra.mrb[66].mxu1 %vm995_vm1, %v1982_v7 }
 0x242   : > { %8272 = vmatprep.mubr.msk.f32.mxu1 %vm995_vm1, %v1983_v12 }
 0x245   : > { %8273 = vmatmul.mubr.msk.f32.gmra.mrb[68].mxu1 %vm995_vm1, %v1984_v51 }
 0x246   : > { %8275 = vmatprep.mubr.msk.f32.mxu1 %vm995_vm1, %v1985_v54 }
 0x249   : > { %8276 = vmatmul.mubr.msk.f32.gmra.mrb[70].mxu1 %vm995_vm1, %v1986_v14  ;;  %vm6138_vm1 = vcmask 48128  }
 0x284   : > { %v7976_v28 = vpop.f32.mrb[0].mxu1 }
 0x285   : > { %v1098_v30 = vpop.f32.mrb[1].mxu1  ;;  %v10351_v55 = vmul.f32 %v7976_v28, %v7976_v28 }
 0x286   : > { %v10357_v59 = vmul.f32 %v1098_v30, %v1098_v30 }
 0x288   : > { %v7979_v32 = vpop.f32.mrb[2].mxu1 }
 0x289   : > { %v1108_v33 = vpop.f32.mrb[3].mxu1  ;;  %v10371_v1 = vmul.f32 %v7979_v32, %v7979_v32 }
 0x28a   : > { %v10377_v31 = vmul.f32 %v1108_v33, %v1108_v33 }
 0x28c   : > { %v7982_v35 = vpop.f32.mrb[4].mxu1 }
 0x28d   : > { %v1118_v37 = vpop.f32.mrb[5].mxu1  ;;  %v10391_v41 = vmul.f32 %v7982_v35, %v7982_v35 }
 0x28e   : > { %v10397_v7 = vmul.f32 %v1118_v37, %v1118_v37 }
 0x290   : > { %v7985_v42 = vpop.f32.mrb[6].mxu1 }
 0x291   : > { %v1128_v45 = vpop.f32.mrb[7].mxu1  ;;  %v10411_v10 = vmul.f32 %v7985_v42, %v7985_v42 }
 0x292   : > { %v10417_v14 = vmul.f32 %v1128_v45, %v1128_v45 }
 0x294   : > { %v7988_v47 = vpop.f32.mrb[8].mxu1 }
 0x295   : > { %v1138_v48 = vpop.f32.mrb[9].mxu1  ;;  %v10431_v20 = vmul.f32 %v7988_v47, %v7988_v47 }
 0x296   : > { %v10437_v24 = vmul.f32 %v1138_v48, %v1138_v48 }
 0x298   : > { %v7991_v50 = vpop.f32.mrb[10].mxu1 }
 0x299   : > { %v1148_v52 = vpop.f32.mrb[11].mxu1 }
 0x29a   : > { %v10457_v38 = vmul.f32 %v1148_v52, %v1148_v52 }
 0x29c   : > { %v8018_v53 = vpop.f32.mrb[12].mxu1 }
 0x29d   : > { %v10353_v56 = vmul.f32 %v8018_v53, %v8018_v53  ;;  %v10355_v57 = vmul.f32 %v8018_v53, %v7976_v28  ;;  %v1223_v58 = vpop.f32.mrb[13].mxu1 }
 0x29e   : > { %v10359_v60 = vmul.f32 %v1223_v58, %v1223_v58  ;;  %v10361_v61 = vmul.f32 %v1223_v58, %v1098_v30 }
 0x29f   : > { %11341 = vst [vmem:[#allocation18_spill] sm:$0xff] %v10355_v57  ;;  %v10365_v62 = vadd.f32 %v10353_v56, %v10351_v55 }
 0x2a0   : > { %11342 = vst [vmem:[#allocation19_spill] sm:$0xff] %v10361_v61  ;;  %v10369_v63 = vadd.f32 %v10359_v60, %v10357_v59  ;;  %v8021_v0 = vpop.f32.mrb[14].mxu1 }
 0x2a1   : > { %v10373_v8 = vmul.f32 %v8021_v0, %v8021_v0  ;;  %v10375_v29 = vmul.f32 %v8021_v0, %v7979_v32  ;;  %v1233_v2 = vpop.f32.mrb[15].mxu1  ;;  %v10451_v32 = vmul.f32 %v7991_v50, %v7991_v50 }
 0x2a2   : > { %v10379_v34 = vmul.f32 %v1233_v2, %v1233_v2  ;;  %v10381_v3 = vmul.f32 %v1233_v2, %v1108_v33 }
 0x2a3   : > { %v10385_v36 = vadd.f32 %v10373_v8, %v10371_v1 }
 0x2a4   : > { %v10389_v39 = vadd.f32 %v10379_v34, %v10377_v31  ;;  %v8024_v4 = vpop.f32.mrb[16].mxu1 }
 0x2a5   : > { %v10393_v44 = vmul.f32 %v8024_v4, %v8024_v4  ;;  %v10395_v6 = vmul.f32 %v8024_v4, %v7982_v35  ;;  %v1243_v46 = vpop.f32.mrb[17].mxu1 }
 0x2a6   : > { %v10399_v49 = vmul.f32 %v1243_v46, %v1243_v46  ;;  %v10401_v12 = vmul.f32 %v1243_v46, %v1118_v37 }
 0x2a7   : > { %v10405_v5 = vadd.f32 %v10393_v44, %v10391_v41 }
 0x2a8   : > { %v10409_v9 = vadd.f32 %v10399_v49, %v10397_v7  ;;  %v8027_v51 = vpop.f32.mrb[18].mxu1 }
 0x2a9   : > { %v10413_v54 = vmul.f32 %v8027_v51, %v8027_v51  ;;  %v10415_v11 = vmul.f32 %v8027_v51, %v7985_v42  ;;  %v1253_v13 = vpop.f32.mrb[19].mxu1 }
 0x2aa   : > { %v10419_v15 = vmul.f32 %v1253_v13, %v1253_v13  ;;  %v10421_v16 = vmul.f32 %v1253_v13, %v1128_v45 }
 0x2ab   : > { %v10425_v17 = vadd.f32 %v10413_v54, %v10411_v10 }
 0x2ac   : > { %v10429_v18 = vadd.f32 %v10419_v15, %v10417_v14  ;;  %v8030_v19 = vpop.f32.mrb[20].mxu1 }
 0x2ad   : > { %v10433_v21 = vmul.f32 %v8030_v19, %v8030_v19  ;;  %v10435_v22 = vmul.f32 %v8030_v19, %v7988_v47  ;;  %v1263_v23 = vpop.f32.mrb[21].mxu1 }
 0x2ae   : > { %v10439_v25 = vmul.f32 %v1263_v23, %v1263_v23  ;;  %v10441_v26 = vmul.f32 %v1263_v23, %v1138_v48 }
 0x2af   : > { %v10445_v27 = vadd.f32 %v10433_v21, %v10431_v20 }
 0x2b0   : > { %v10449_v28 = vadd.f32 %v10439_v25, %v10437_v24  ;;  %v8033_v30 = vpop.f32.mrb[22].mxu1 }
 0x2b1   : > { %v10453_v33 = vmul.f32 %v8033_v30, %v8033_v30  ;;  %v10455_v35 = vmul.f32 %v8033_v30, %v7991_v50  ;;  %v1273_v37 = vpop.f32.mrb[23].mxu1 }
 0x2b2   : > { %v10459_v40 = vmul.f32 %v1273_v37, %v1273_v37  ;;  %v10461_v42 = vmul.f32 %v1273_v37, %v1148_v52 }
 0x2b3   : > { %11343 = vst [vmem:[#allocation20_spill] sm:$0xff] %v10455_v35  ;;  %v10465_v45 = vadd.f32 %v10453_v33, %v10451_v32  ;;  %v1826_v35 = vadd.f32 0.0001, %v10365_v62  ;;  %v1828_v62 = vadd.f32 0.0001, %v10385_v36 }
 0x2b4   : > { %11344 = vst [vmem:[#allocation21_spill] sm:$0xff] %v10461_v42  ;;  %v10469_v47 = vadd.f32 %v10459_v40, %v10457_v38  ;;  %v8060_v48 = vpop.f32.mrb[24].mxu1 }
 0x2b5   : > { %11345 = vst [vmem:[#allocation22_spill] sm:$0xff] %v10465_v45  ;;  %v1694_v53 = vsub.f32 %v8060_v48, %v10351_v55  ;;  %v1348_v50 = vpop.f32.mrb[25].mxu1  ;;  %v1780_v55 = vmul.f32 2.0, %v10375_v29 }
 0x2b6   : > { %11346 = vst [vmem:[#allocation23_spill] sm:$0xff] %v10469_v47  ;;  %v1693_v58 = vsub.f32 %v1348_v50, %v10357_v59  ;;  %v1779_v47 = vmul.f32 2.0, %v10381_v3 }
 0x2b8   : > { %v8063_v0 = vpop.f32.mrb[26].mxu1 }
 0x2b9   : > { %v1696_v2 = vsub.f32 %v8063_v0, %v10371_v1  ;;  %v1358_v4 = vpop.f32.mrb[27].mxu1 }
 0x2ba   : > { %v1695_v52 = vsub.f32 %v1358_v4, %v10377_v31  ;;  %v1778_v31 = vmul.f32 2.0, %v10355_v57  ;;  %v1825_v57 = vadd.f32 0.0001, %v10369_v63 }
 0x2bc   : > { %v8066_v46 = vpop.f32.mrb[28].mxu1 }
 0x2bd   : > { %v1698_v51 = vsub.f32 %v8066_v46, %v10391_v41  ;;  %v1368_v13 = vpop.f32.mrb[29].mxu1  ;;  %v1777_v41 = vmul.f32 2.0, %v10361_v61 }
 0x2be   : > { %v1697_v19 = vsub.f32 %v1368_v13, %v10397_v7 }
 0x2bf   : > { %v10513_v61 = vadd.f32 0.0001, %v1777_v41 }
 0x2c0   : > { %v10477_v23 = vpop.f32.mrb[30].mxu1 }
 0x2c1   : > { %v10481_v30 = vpop.f32.mrb[31].mxu1 }
 0x2c4   : > { %v10485_v1 = vpop.f32.mrb[32].mxu1 }
 0x2c5   : > { %v10489_v37 = vpop.f32.mrb[33].mxu1 }
 0x2c8   : > { %v10493_v7 = vpop.f32.mrb[34].mxu1 }
 0x2c9   : > { %v10497_v50 = vpop.f32.mrb[35].mxu1 }
 0x2cc   : > { %v8102_v4 = vpop.f32.mrb[36].mxu1 }
 0x2cd   : > { %v1706_v46 = vsub.f32 %v8102_v4, %v10353_v56  ;;  %v1473_v13 = vpop.f32.mrb[37].mxu1  ;;  %v10509_v4 = vadd.f32 0.0001, %v1778_v31  ;;  %v10519_v31 = vadd.f32 0.0001, %v1779_v47 }
 0x2ce   : > { %v1705_v59 = vsub.f32 %v1473_v13, %v10359_v60 }
 0x2cf   : > { %v1754_v43 = vadd.f32 %v1706_v46, %v1694_v53  ;;  %11347 = vst [vmem:[#allocation24_spill] sm:$0xff] %v10509_v4  ;;  %v10515_v53 = vadd.f32 0.0001, %v1780_v55 }
 0x2d0   : > { %v1753_v42 = vadd.f32 %v1705_v59, %v1693_v58  ;;  %v8105_v48 = vpop.f32.mrb[38].mxu1 }
 0x2d1   : > { %v1766_v0 = vadd.f32 0.0009, %v1754_v43  ;;  %v1708_v45 = vsub.f32 %v8105_v48, %v10373_v8  ;;  %v1483_v56 = vpop.f32.mrb[39].mxu1  ;;  %v1782_v43 = vmul.f32 2.0, %v10395_v6 }
 0x2d2   : > { %v1765_v60 = vadd.f32 0.0009, %v1753_v42  ;;  %v1707_v13 = vsub.f32 %v1483_v56, %v10379_v34  ;;  %v1827_v34 = vadd.f32 0.0001, %v10389_v39 }
 0x2d3   : > { %v1838_v58 = vmul.f32 %v1826_v35, %v1766_v0  ;;  %v1756_v59 = vadd.f32 %v1708_v45, %v1696_v2  ;;  %9255 = vrcp.f32 %v1766_v0  ;;  %v1781_v45 = vmul.f32 2.0, %v10401_v12 }
 0x2d4   : > { %v1837_v46 = vmul.f32 %v1825_v57, %v1765_v60  ;;  %v1755_v8 = vadd.f32 %v1707_v13, %v1695_v52  ;;  %v8108_v48 = vpop.f32.mrb[40].mxu1  ;;  %9257 = vrcp.f32 %v1765_v60  ;;  %v10525_v57 = vadd.f32 0.0001, %v1782_v43 }
 0x2d5   : > { %v1768_v4 = vadd.f32 0.0009, %v1756_v59  ;;  %v1710_v63 = vsub.f32 %v8108_v48, %v10393_v44  ;;  %v1493_v42 = vpop.f32.mrb[41].mxu1  ;;  %9259 = vrcp.f32 %v1838_v58  ;;  %v1830_v44 = vadd.f32 0.0001, %v10405_v5 }
 0x2d6   : > { %v1767_v55 = vadd.f32 0.0009, %v1755_v8  ;;  %v1709_v35 = vsub.f32 %v1493_v42, %v10399_v49  ;;  %9261 = vrcp.f32 %v1837_v46  ;;  %v1829_v49 = vadd.f32 0.0001, %v10409_v9 }
 0x2d7   : > { %v1840_v36 = vmul.f32 %v1828_v62, %v1768_v4  ;;  %v1758_v2 = vadd.f32 %v1710_v63, %v1698_v51  ;;  %9263 = vrcp.f32 %v1768_v4  ;;  %v10531_v51 = vadd.f32 0.0001, %v1781_v45 }
 0x2d8   : > { %v1839_v47 = vmul.f32 %v1827_v34, %v1767_v55  ;;  %v1757_v52 = vadd.f32 %v1709_v35, %v1697_v19  ;;  %v8111_v41 = vpop.f32.mrb[42].mxu1  ;;  %9265 = vrcp.f32 %v1767_v55  ;;  %v11348_v19 = vsub.f32 %v10477_v23, %v10411_v10 }
 0x2d9   : > { %v1770_v56 = vadd.f32 0.0009, %v1758_v2  ;;  %v1712_v39 = vsub.f32 %v8111_v41, %v10413_v54  ;;  %v1503_v0 = vpop.f32.mrb[43].mxu1  ;;  %v1784_v5 = vmul.f32 2.0, %v10415_v11  ;;  %9267 = vrcp.f32 %v1840_v36 }
 0x2da   : > { %v1769_v13 = vadd.f32 0.0009, %v1757_v52  ;;  %v1711_v60 = vsub.f32 %v1503_v0, %v10419_v15  ;;  %v11349_v54 = vsub.f32 %v10481_v30, %v10417_v14  ;;  %v1832_v43 = vadd.f32 0.0001, %v10425_v17 }
 0x2db   : > { %v1842_v58 = vmul.f32 %v1830_v44, %v1770_v56  ;;  %v1760_v59 = vadd.f32 %v1712_v39, %v11348_v19  ;;  %9269 = vrcp.f32 %v1839_v47  ;;  %v1831_v48 = vadd.f32 0.0001, %v10429_v18 }
 0x2dc   : > { %v1841_v62 = vmul.f32 %v1829_v49, %v1769_v13  ;;  %v1759_v9 = vadd.f32 %v1711_v60, %v11349_v54  ;;  %v8114_v4 = vpop.f32.mrb[44].mxu1  ;;  %9271 = vrcp.f32 %v1770_v56  ;;  %v1783_v63 = vmul.f32 2.0, %v10421_v16  ;;  %v11354_v60 = vld [vmem:[#allocation22_spill] sm:$0xff] }
 0x2dd   : > { %v1772_v15 = vadd.f32 0.0009, %v1760_v59  ;;  %v1714_v46 = vsub.f32 %v8114_v4, %v10433_v21  ;;  %v1513_v8 = vpop.f32.mrb[45].mxu1  ;;  %9273 = vrcp.f32 %v1769_v13  ;;  %v11350_v14 = vsub.f32 %v10485_v1, %v10431_v20  ;;  %v10548_v17 = vpop.eup %9255  ;;  %v11355_v59 = vld [vmem:[#allocation18_spill] sm:$0xff]  ;;  %v11357_v4 = vld [vmem:[#allocation19_spill] sm:$0xff] }
 0x2de   : > { %v1771_v10 = vadd.f32 0.0009, %v1759_v9  ;;  %v1713_v23 = vsub.f32 %v1513_v8, %v10439_v25  ;;  %v10550_v34 = vadd.f32 0.0001, %v1784_v5  ;;  %9275 = vrcp.f32 %v1842_v58  ;;  %v10555_v25 = vpop.eup %9257 }
 0x2df   : > { %v1844_v42 = vmul.f32 %v1832_v43, %v1772_v15  ;;  %v1762_v30 = vadd.f32 %v1714_v46, %v11350_v14  ;;  %v11351_v18 = vsub.f32 %v10489_v37, %v10437_v24  ;;  %v1834_v45 = vadd.f32 0.0001, %v10445_v27  ;;  %v9260_v2 = vpop.eup %9259 }
 0x2e0   : > { %v1843_v21 = vmul.f32 %v1831_v48, %v1771_v10  ;;  %v8117_v35 = vpop.f32.mrb[46].mxu1  ;;  %9277 = vrcp.f32 %v1841_v62  ;;  %v1833_v47 = vadd.f32 0.0001, %v10449_v28  ;;  %v9262_v44 = vpop.eup %9261  ;;  %v1786_v24 = vmul.f32 2.0, %v10435_v22  ;;  %v11356_v62 = vld [vmem:[#allocation23_spill] sm:$0xff] }
 0x2e1   : > { %v1761_v55 = vadd.f32 %v1713_v23, %v11351_v18  ;;  %v1774_v36 = vadd.f32 0.0009, %v1762_v30  ;;  %v1716_v20 = vsub.f32 %v8117_v35, %v10453_v33  ;;  %v1523_v1 = vpop.f32.mrb[47].mxu1  ;;  %9279 = vrcp.f32 %v1772_v15  ;;  %v10565_v39 = vpop.eup %9263  ;;  %v11358_v35 = vld [vmem:[#allocation20_spill] sm:$0xff] }
 0x2e2   : > { %v1715_v41 = vsub.f32 %v1523_v1, %v10459_v40  ;;  %9281 = vrcp.f32 %v1771_v10  ;;  %v11352_v27 = vsub.f32 %v10493_v7, %v10451_v32  ;;  %v1785_v33 = vmul.f32 2.0, %v10441_v26  ;;  %v10571_v13 = vpop.eup %9265 }
 0x2e3   : > { %v1773_v52 = vadd.f32 0.0009, %v1761_v55  ;;  %v1846_v37 = vmul.f32 %v1834_v45, %v1774_v36  ;;  %9283 = vrcp.f32 %v1844_v42  ;;  %v11353_v28 = vsub.f32 %v10497_v50, %v10457_v38  ;;  %v10575_v5 = vpop.eup %9267 }
 0x2e4   : > { %v1764_v56 = vadd.f32 %v1716_v20, %v11352_v27  ;;  %v8144_v40 = vpop.f32.mrb[48].mxu1  ;;  %v1836_v58 = vadd.f32 0.0001, %v11354_v60  ;;  %9285 = vrcp.f32 %v1843_v21  ;;  %v1835_v54 = vadd.f32 0.0001, %v11356_v62 }
 0x2e5   : > { %v1845_v0 = vmul.f32 %v1833_v47, %v1773_v52  ;;  %v1763_v49 = vadd.f32 %v1715_v41, %v11353_v28  ;;  %v1718_v32 = vsub.f32 %v8144_v40, %v11355_v59  ;;  %v1598_v7 = vpop.f32.mrb[49].mxu1  ;;  %9287 = vrcp.f32 %v1774_v36  ;;  %v9270_v38 = vpop.eup %9269  ;;  %v11359_v47 = vld [vmem:[#allocation24_spill] sm:$0xff] }
 0x2e6   : > { %v1776_v19 = vadd.f32 0.0009, %v1764_v56  ;;  %v1717_v43 = vsub.f32 %v1598_v7, %v11357_v4  ;;  %v10579_v50 = vadd.f32 0.0001, %v1783_v63  ;;  %9289 = vrcp.f32 %v1773_v52  ;;  %v10581_v8 = vpop.eup %9271 }
 0x2e7   : > { %v1775_v9 = vadd.f32 0.0009, %v1763_v49  ;;  %v1730_v46 = vmul.f32 2.0, %v1718_v32  ;;  %v10583_v48 = vadd.f32 0.0001, %v1786_v24  ;;  %9291 = vrcp.f32 %v1846_v37  ;;  %v10585_v14 = vpop.eup %9273 }
 0x2e8   : > { %v1848_v15 = vmul.f32 %v1836_v58, %v1776_v19  ;;  %v1729_v23 = vmul.f32 2.0, %v1717_v43  ;;  %v8147_v42 = vpop.f32.mrb[50].mxu1  ;;  %v10587_v30 = vadd.f32 0.0001, %v1785_v33  ;;  %9293 = vrcp.f32 %v1845_v0  ;;  %v10590_v55 = vpop.eup %9275 }
 0x2e9   : > { %v1847_v10 = vmul.f32 %v1835_v54, %v1775_v9  ;;  %v1742_v21 = vadd.f32 0.0009, %v1730_v46  ;;  %v1720_v63 = vsub.f32 %v8147_v42, %v10375_v29  ;;  %v1608_v18 = vpop.f32.mrb[51].mxu1  ;;  %v10593_v45 = vmul.f32 2.0, %v11358_v35 }
 0x2ea   : > { %9295 = vrcp.f32 %v1776_v19  ;;  %v1741_v36 = vadd.f32 0.0009, %v1729_v23  ;;  %v1719_v20 = vsub.f32 %v1608_v18, %v10381_v3  ;;  %v10596_v1 = vpop.eup %9277 }
 0x2eb   : > { %9297 = vrcp.f32 %v1775_v9  ;;  %v1802_v52 = vmul.f32 %v11359_v47, %v1742_v21  ;;  %v1876_v41 = vmul.f32 %v10548_v17, %v1742_v21  ;;  %v1732_v24 = vmul.f32 2.0, %v1720_v63  ;;  %v10600_v37 = vpop.eup %9279 }
 0x2ec   : > { %9299 = vrcp.f32 %v1848_v15  ;;  %v1801_v29 = vmul.f32 %v10513_v61, %v1741_v36  ;;  %v1874_v27 = vmul.f32 %v10555_v25, %v1741_v36  ;;  %v1731_v56 = vmul.f32 2.0, %v1719_v20  ;;  %v8150_v33 = vpop.f32.mrb[52].mxu1  ;;  %v10604_v0 = vpop.eup %9281 }
 0x2ed   : > { %v1852_v3 = vmul.f32 %v9260_v2, %v1802_v52  ;;  %v1940_v28 = vsel %vm449_vm0, %v1876_v41, 0.0  ;;  %v1744_v49 = vadd.f32 0.0009, %v1732_v24  ;;  %v1722_v40 = vsub.f32 %v8150_v33, %v10395_v6  ;;  %v1618_v60 = vpop.f32.mrb[53].mxu1  ;;  %v10608_v17 = vpop.eup %9283 }
 0x2ee   : > { %v1850_v58 = vmul.f32 %v9262_v44, %v1801_v29  ;;  %v1939_v19 = vsel %vm449_vm0, %v1874_v27, 0.0  ;;  %v1743_v59 = vadd.f32 0.0009, %v1731_v56  ;;  %v1721_v61 = vsub.f32 %v1618_v60, %v10401_v12  ;;  %v10612_v25 = vpop.eup %9285 }
 0x2ef   : > { %v1900_v32 = vsel %vm449_vm0, %v1852_v3, 0.0  ;;  %v1941_v7 = vadd.f32 %v1940_v28, %v1939_v19  ;;  %v1804_v2 = vmul.f32 %v10515_v53, %v1744_v49  ;;  %v1880_v62 = vmul.f32 %v10565_v39, %v1744_v49  ;;  %v10617_v54 = vpop.eup %9287 }
 0x2f0   : > { %v1899_v6 = vsel %vm449_vm0, %v1850_v58, 0.0  ;;  %v1803_v44 = vmul.f32 %v10519_v31, %v1743_v59  ;;  %v1878_v9 = vmul.f32 %v10571_v13, %v1743_v59  ;;  %v1734_v4 = vmul.f32 2.0, %v1722_v40  ;;  %v8153_v43 = vpop.f32.mrb[54].mxu1  ;;  %v10622_v12 = vpop.eup %9289 }
 0x2f1   : > { %9301 = vrcp.f32 %v1847_v10  ;;  %v1901_v15 = vadd.f32 %v1900_v32, %v1899_v6  ;;  %v1856_v46 = vmul.f32 %v10575_v5, %v1804_v2  ;;  %v1733_v23 = vmul.f32 2.0, %v1721_v61  ;;  %v1628_v53 = vpop.f32.mrb[55].mxu1  ;;  %v10625_v42 = vpop.eup %9291 }
 0x2f2   : > { %v1854_v39 = vmul.f32 %v9270_v38, %v1803_v44  ;;  %v1942_v21 = vsel %vm449_vm0, %v1878_v9, 0.0  ;;  %v1746_v63 = vadd.f32 0.0009, %v1734_v4  ;;  %v1724_v31 = vsub.f32 %v8153_v43, %v10415_v11  ;;  %v10629_v18 = vpop.eup %9293 }
 0x2f3   : > { %v1944_v13 = vsel %vm449_vm0, %v1880_v62, 0.0  ;;  %v1943_v36 = vadd.f32 %v1942_v21, %v1941_v7  ;;  %v1745_v20 = vadd.f32 0.0009, %v1733_v23  ;;  %v1723_v10 = vsub.f32 %v1628_v53, %v10421_v16 }
 0x2f4   : > { %v10633_v5 = vpop.eup %9295  ;;  %v1902_v47 = vsel %vm449_vm0, %v1854_v39, 0.0  ;;  %v1806_v38 = vmul.f32 %v10525_v57, %v1746_v63  ;;  %v1884_v52 = vmul.f32 %v10581_v8, %v1746_v63  ;;  %v1736_v41 = vmul.f32 2.0, %v1724_v31  ;;  %v8156_v24 = vpop.f32.mrb[56].mxu1 }
 0x2f5   : > { %v10638_v11 = vpop.eup %9297  ;;  %v1903_v29 = vadd.f32 %v1902_v47, %v1901_v15  ;;  %v1805_v27 = vmul.f32 %v10531_v51, %v1745_v20  ;;  %v1882_v56 = vmul.f32 %v10585_v14, %v1745_v20  ;;  %v1945_v33 = vadd.f32 %v1944_v13, %v1943_v36  ;;  %v1638_v16 = vpop.f32.mrb[57].mxu1 }
 0x2f6   : > { %v10642_v3 = vpop.eup %9299  ;;  %v1904_v28 = vsel %vm449_vm0, %v1856_v46, 0.0  ;;  %v1860_v49 = vmul.f32 %v10590_v55, %v1806_v38  ;;  %v1748_v57 = vadd.f32 0.0009, %v1736_v41  ;;  %v1735_v40 = vmul.f32 2.0, %v1723_v10  ;;  %v11360_v46 = vld [vmem:[#allocation21_spill] sm:$0xff] }
 0x2f7   : > { %v1858_v8 = vmul.f32 %v10596_v1, %v1805_v27  ;;  %v1905_v60 = vadd.f32 %v1904_v28, %v1903_v29  ;;  %v1946_v58 = vsel %vm449_vm0, %v1882_v56, 0.0  ;;  %v1726_v19 = vsub.f32 %v8156_v24, %v10435_v22  ;;  %v11361_v29 = vld [vmem:[#allocation17_spill] sm:$0xff] }
 0x2f8   : > { %v1948_v51 = vsel %vm449_vm0, %v1884_v52, 0.0  ;;  %v1947_v14 = vadd.f32 %v1946_v58, %v1945_v33  ;;  %v1808_v59 = vmul.f32 %v10550_v34, %v1748_v57  ;;  %v1888_v61 = vmul.f32 %v10600_v37, %v1748_v57  ;;  %v8159_v32 = vpop.f32.mrb[58].mxu1 }
 0x2f9   : > { %v1906_v7 = vsel %vm449_vm0, %v1858_v8, 0.0  ;;  %v1747_v55 = vadd.f32 0.0009, %v1735_v40  ;;  %v1738_v2 = vmul.f32 2.0, %v1726_v19  ;;  %v1725_v62 = vsub.f32 %v1638_v16, %v10441_v26  ;;  %v1648_v1 = vpop.f32.mrb[59].mxu1 }
 0x2fa   : > { %v1908_v6 = vsel %vm449_vm0, %v1860_v49, 0.0  ;;  %v1907_v44 = vadd.f32 %v1906_v7, %v1905_v60  ;;  %v1864_v22 = vmul.f32 %v10608_v17, %v1808_v59  ;;  %v1949_v9 = vadd.f32 %v1948_v51, %v1947_v14 }
 0x2fb   : > { %v9302_v4 = vpop.eup %9301  ;;  %v1807_v43 = vmul.f32 %v10579_v50, %v1747_v55  ;;  %v1886_v34 = vmul.f32 %v10604_v0, %v1747_v55  ;;  %v1750_v37 = vadd.f32 0.0009, %v1738_v2  ;;  %v1737_v15 = vmul.f32 2.0, %v1725_v62 }
 0x2fc   : > { %v1787_v23 = vmul.f32 2.0, %v11360_v46  ;;  %v1909_v53 = vadd.f32 %v1908_v6, %v1907_v44  ;;  %v1728_v39 = vsub.f32 %v8159_v32, %v11358_v35  ;;  %v1727_v26 = vsub.f32 %v1648_v1, %v11360_v46  ;;  %v10661_v21 = vpop.f32.mrb[60].mxu1 }
 0x2fd   : > { %v1862_v63 = vmul.f32 %v10612_v25, %v1807_v43  ;;  %v1950_v17 = vsel %vm449_vm0, %v1886_v34, 0.0  ;;  %v1810_v31 = vmul.f32 %v10583_v48, %v1750_v37  ;;  %v1892_v50 = vmul.f32 %v10617_v54, %v1750_v37  ;;  %v10667_v0 = vpop.f32.mrb[61].mxu1 }
 0x2fe   : > { %v1951_v13 = vadd.f32 %v1950_v17, %v1949_v9  ;;  %v1749_v36 = vadd.f32 0.0009, %v1737_v15  ;;  %v1740_v20 = vmul.f32 2.0, %v1728_v39  ;;  %v1739_v10 = vmul.f32 2.0, %v1727_v26  ;;  %8282 = vmatprep.mubr.msk.f32.mxu0 %vm2473_vm2, %v10667_v0 }
 0x2ff   : > { %v1800_v35 = vadd.f32 0.0001, %v10593_v45  ;;  %v1952_v47 = vsel %vm449_vm0, %v1888_v61, 0.0  ;;  %v1910_v25 = vsel %vm449_vm0, %v1862_v63, 0.0  ;;  %v1868_v38 = vmul.f32 %v10625_v42, %v1810_v31  ;;  %8283 = vmatmul.mubr.msk.f32.vlgmr.msra.gmra.mrb[84].mxu0 %vm2473_vm2, %v10661_v21 }
 0x300   : > { %v1911_v48 = vadd.f32 %v1910_v25, %v1909_v53  ;;  %v1809_v54 = vmul.f32 %v10587_v30, %v1749_v36  ;;  %v1890_v52 = vmul.f32 %v10622_v12, %v1749_v36  ;;  %v1752_v41 = vadd.f32 0.0009, %v1740_v20  ;;  %v10679_v24 = vpop.f32.mrb[62].mxu1  ;;  %9055 = vmatpush3.bf16.msra.mxu0 %v11361_v29 }
 0x301   : > { %v1799_v45 = vadd.f32 0.0001, %v1787_v23  ;;  %v1751_v27 = vadd.f32 0.0009, %v1739_v10  ;;  %v1953_v56 = vadd.f32 %v1952_v47, %v1951_v13  ;;  %v10682_v33 = vpop.f32.mrb[63].mxu1  ;;  %9066 = vmatprep.subr.bf16.mxu0 %v11361_v29  ;;  %v1912_v12 = vsel %vm449_vm0, %v1864_v22, 0.0 }
 0x302   : > { %v1866_v42 = vmul.f32 %v10629_v18, %v1809_v54  ;;  %v1954_v16 = vsel %vm449_vm0, %v1890_v52, 0.0  ;;  %v1812_v28 = vmul.f32 %v1800_v35, %v1752_v41  ;;  %v1896_v30 = vmul.f32 %v10633_v5, %v1752_v41  ;;  %8285 = vmatprep.mubr.msk.f32.mxu0 %vm2473_vm2, %v10682_v33 }
 0x303   : > { %v1811_v49 = vmul.f32 %v1799_v45, %v1751_v27  ;;  %v1894_v57 = vmul.f32 %v10638_v11, %v1751_v27  ;;  %v1955_v40 = vadd.f32 %v1954_v16, %v1953_v56  ;;  %8286 = vmatmul.mubr.msk.f32.gmra.mrb[86].mxu0 %vm2473_vm2, %v10679_v24  ;;  %v1956_v18 = vsel %vm449_vm0, %v1892_v50, 0.0 }
 0x304   : > { %v1914_v8 = vsel %vm449_vm0, %v1866_v42, 0.0  ;;  %v1872_v60 = vmul.f32 %v10642_v3, %v1812_v28  ;;  %v1913_v58 = vadd.f32 %v1912_v12, %v1911_v48  ;;  %v10697_v5 = vpop.f32.mrb[64].mxu1  ;;  %v1916_v32 = vsel %vm449_vm0, %v1868_v38, 0.0 }
 0x305   : > { %v1870_v19 = vmul.f32 %v9302_v4, %v1811_v49  ;;  %v1957_v51 = vadd.f32 %v1956_v18, %v1955_v40  ;;  %v1958_v14 = vsel %vm449_vm0, %v1894_v57, 0.0  ;;  %v10700_v59 = vpop.f32.mrb[65].mxu1  ;;  %v1960_v3 = vsel %vm449_vm0, %v1896_v30, 0.0 }
 0x306   : > { %v1915_v11 = vadd.f32 %v1914_v8, %v1913_v58  ;;  %8288 = vmatprep.mubr.msk.f32.mxu0 %vm2473_vm2, %v10700_v59  ;;  %v1920_v1 = vsel %vm449_vm0, %v1872_v60, 0.0  ;;  %v2455_v39 = vmul.f32 %v10667_v0, %v10667_v0  ;;  %v2456_v63 = vmul.f32 %v10661_v21, %v10661_v21 }
 0x307   : > { %v1959_v61 = vadd.f32 %v1958_v14, %v1957_v51  ;;  %v1918_v7 = vsel %vm449_vm0, %v1870_v19, 0.0  ;;  %8289 = vmatmul.mubr.msk.f32.gmra.mrb[88].mxu0 %vm2473_vm2, %v10697_v5  ;;  %v2457_v17 = vmul.f32 %v10682_v33, %v10682_v33  ;;  %v2458_v31 = vmul.f32 %v10679_v24, %v10679_v24  ;;  %v10780_v19 = vld [vmem:[#allocation7 + $0x70] sm:$0xff]  ;;  %v10786_v51 = vld [vmem:[#allocation7 + $0x78] sm:$0xff]  ;;  %v10788_v14 = vld [vmem:[#allocation7 + $0x80] sm:$0xff] }
 0x308   : > { %v1917_v55 = vadd.f32 %v1916_v32, %v1915_v11  ;;  %v2459_v50 = vmul.f32 %v10700_v59, %v10700_v59  ;;  %v2460_v13 = vmul.f32 %v10697_v5, %v10697_v5  ;;  %v9583_v28 = vmov 0.0  }
 0x309   : > { %v1961_v2 = vadd.f32 %v1960_v3, %v1959_v61  ;;  %vm6142_vm0 = vcmask 1045504  }
 0x30a   : > { %v1919_v62 = vadd.f32 %v1918_v7, %v1917_v55 }
 0x30b   : > { %1962 = vadd.xlane.f32.xlu0 %v1961_v2 }
 0x30c   : > { %v1921_v6 = vadd.f32 %v1920_v1, %v1919_v62 }
 0x30f   : > { %1922 = vadd.xlane.f32.xlu0 %v1921_v6 }
 0x314   : > { %v8271_v44 = vpop.f32.mrb[66].mxu1 }
 0x315   : > { %v2468_v22 = vmul.f32 %v8271_v44, %v10661_v21  ;;  %v2416_v9 = vpop.f32.mrb[67].mxu1  ;;  %v2462_v20 = vmul.f32 %v8271_v44, %v8271_v44 }
 0x316   : > { %v2467_v4 = vmul.f32 %v2416_v9, %v10667_v0  ;;  %8291 = vmatprep.mubr.msk.f32.mxu0 %vm2473_vm2, %v2416_v9  ;;  %v2461_v36 = vmul.f32 %v2416_v9, %v2416_v9 }
 0x317   : > { %8292 = vmatmul.mubr.msk.f32.gmra.mrb[90].mxu0 %vm2473_vm2, %v8271_v44 }
 0x318   : > { %v8274_v43 = vpop.f32.mrb[68].mxu1 }
 0x319   : > { %v2470_v34 = vmul.f32 %v8274_v43, %v10679_v24  ;;  %v2426_v37 = vpop.f32.mrb[69].mxu1  ;;  %v2464_v35 = vmul.f32 %v8274_v43, %v8274_v43 }
 0x31a   : > { %v2469_v15 = vmul.f32 %v2426_v37, %v10682_v33  ;;  %8294 = vmatprep.mubr.msk.f32.mxu0 %vm2473_vm2, %v2426_v37  ;;  %v2463_v10 = vmul.f32 %v2426_v37, %v2426_v37 }
 0x31b   : > { %8295 = vmatmul.mubr.msk.f32.gmra.mrb[92].mxu0 %vm2473_vm2, %v8274_v43 }
 0x31c   : > { %v8277_v46 = vpop.f32.mrb[70].mxu1 }
 0x31d   : > { %v2472_v23 = vmul.f32 %v8277_v46, %v10697_v5  ;;  %v2436_v53 = vpop.f32.mrb[71].mxu1  ;;  %v2466_v25 = vmul.f32 %v8277_v46, %v8277_v46 }
 0x31e   : > { %v2471_v26 = vmul.f32 %v2436_v53, %v10700_v59  ;;  %8297 = vmatprep.mubr.msk.f32.mxu0 %vm2473_vm2, %v2436_v53  ;;  %v2465_v47 = vmul.f32 %v2436_v53, %v2436_v53 }
 0x31f   : > { %8298 = vmatmul.mubr.msk.f32.gmra.mrb[94].mxu0 %vm2473_vm2, %v8277_v46 }
 0x320   : > { %8300 = vmatprep.mubr.msk.f32.mxu0 %vm2473_vm2, %v2455_v39 }
 0x323   : > { %8301 = vmatmul.mubr.msk.f32.gmra.mrb[96].mxu0 %vm2473_vm2, %v2456_v63 }
 0x324   : > { %8303 = vmatprep.mubr.msk.f32.mxu0 %vm2473_vm2, %v2457_v17 }
 0x327   : > { %8304 = vmatmul.mubr.msk.f32.gmra.mrb[98].mxu0 %vm2473_vm2, %v2458_v31 }
 0x328   : > { %8306 = vmatprep.mubr.msk.f32.mxu0 %vm2473_vm2, %v2459_v50 }
 0x32b   : > { %8307 = vmatmul.mubr.msk.f32.gmra.mrb[100].mxu0 %vm2473_vm2, %v2460_v13 }
 0x32c   : > { %8309 = vmatprep.mubr.msk.f32.mxu0 %vm2473_vm2, %v2461_v36 }
 0x32f   : > { %8310 = vmatmul.mubr.msk.f32.gmra.mrb[102].mxu0 %vm2473_vm2, %v2462_v20 }
 0x330   : > { %8312 = vmatprep.mubr.msk.f32.mxu0 %vm2473_vm2, %v2463_v10 }
 0x333   : > { %8313 = vmatmul.mubr.msk.f32.gmra.mrb[104].mxu0 %vm2473_vm2, %v2464_v35 }
 0x334   : > { %8315 = vmatprep.mubr.msk.f32.mxu0 %vm2473_vm2, %v2465_v47 }
 0x337   : > { %8316 = vmatmul.mubr.msk.f32.gmra.mrb[106].mxu0 %vm2473_vm2, %v2466_v25 }
 0x338   : > { %8318 = vmatprep.mubr.msk.f32.mxu0 %vm2473_vm2, %v2467_v4 }
 0x33b   : > { %8319 = vmatmul.mubr.msk.f32.gmra.mrb[108].mxu0 %vm2473_vm2, %v2468_v22 }
 0x33c   : > { %8321 = vmatprep.mubr.msk.f32.mxu0 %vm2473_vm2, %v2469_v15 }
 0x33f   : > { %8322 = vmatmul.mubr.msk.f32.gmra.mrb[110].mxu0 %vm2473_vm2, %v2470_v34 }
 0x340   : > { %8324 = vmatprep.mubr.msk.f32.mxu0 %vm2473_vm2, %v2471_v26 }
 0x343   : > { %8325 = vmatmul.mubr.msk.f32.gmra.mrb[112].mxu0 %vm2473_vm2, %v2472_v23 }
 0x344   : > { %8436 = vmatprep.mubr.msk.f32.mxu0 %vm2473_vm2, %v10667_v0 }
 0x347   : > { %8437 = vmatmul.mubr.msk.f32.vlgmr.msra.gmra.mrb[114].mxu0 %vm2473_vm2, %v10661_v21  ;;  %v10771_v21 = vld [vmem:[#allocation7 + $0x60] sm:$0xff] }
 0x348   : > { %8439 = vmatprep.mubr.msk.f32.mxu0 %vm2473_vm2, %v10682_v33  ;;  %9068 = vmatpush3.bf16.msra.mxu0 %v11361_v29 }
 0x349   : > { %8339 = vmatprep.mubr.msk.f32.mxu1 %vm2779_vm3, %v10771_v21  ;;  %8500 = vmatprep.subr.mxu0 %v9583_v28 }
 0x34b   : > { %8440 = vmatmul.mubr.msk.f32.gmra.mrb[116].mxu0 %vm2473_vm2, %v10679_v24 }
 0x34c   : > { %8442 = vmatprep.mubr.msk.f32.mxu0 %vm2473_vm2, %v10700_v59  ;;  %v10794_v59 = vld [vmem:[#allocation7 + $0x88] sm:$0xff] }
 0x34f   : > { %8443 = vmatmul.mubr.msk.f32.gmra.mrb[118].mxu0 %vm2473_vm2, %v10697_v5  ;;  %v10778_v5 = vld [vmem:[#allocation7 + $0x68] sm:$0xff] }
 0x350   : > { %8470 = vmatprep.mubr.msk.f32.mxu0 %vm2473_vm2, %v2416_v9 }
 0x353   : > { %8471 = vmatmul.mubr.msk.f32.vlgmr.msra.gmra.mrb[120].mxu0 %vm2473_vm2, %v8271_v44 }
 0x354   : > { %8473 = vmatprep.mubr.msk.f32.mxu0 %vm2473_vm2, %v2426_v37 }
 0x357   : > { %8474 = vmatmul.mubr.msk.f32.gmra.mrb[122].mxu0 %vm2473_vm2, %v8274_v43 }
 0x358   : > { %8476 = vmatprep.mubr.msk.f32.mxu0 %vm2473_vm2, %v2436_v53 }
 0x35b   : > { %8477 = vmatmul.mubr.msk.f32.gmra.mrb[124].mxu0 %vm2473_vm2, %v8277_v46 }
 0x35c   : > { %8502 = vmatprep.mubr.msk.f32.mxu0 %vm9584_vm4, %v9583_v28 }
 0x398   : > { %v1963_v0 = vpop.xlane.xlu0 %1962 }
 0x399   : > { %v1964_v38 = vrot.slane %v1963_v0, 4 }
 0x39b   : > { %v1965_v48 = vadd.f32 %v1964_v38, %v1963_v0 }
 0x39c   : > { %v1923_v54 = vpop.xlane.xlu0 %1922 }
 0x39d   : > { %v1966_v52 = vrot.slane %v1965_v48, 2  ;;  %v1924_v41 = vrot.slane %v1923_v54, 4 }
 0x39f   : > { %v1925_v24 = vadd.f32 %v1924_v41, %v1923_v54  ;;  %v1967_v29 = vadd.f32 %v1966_v52, %v1965_v48  ;;  %v9585_v41 = vmov 0.0|0.0  }
 0x3a1   : > { %v1926_v45 = vrot.slane %v1925_v24, 2  ;;  %v1968_v56 = vrot.slane %v1967_v29, 1 }
 0x3a3   : > { %v1927_v27 = vadd.f32 %v1926_v45, %v1925_v24  ;;  %v1969_v16 = vadd.f32 %v1968_v56, %v1967_v29 }
 0x3a5   : > { %v1928_v33 = vrot.slane %v1927_v27, 1 }
 0x3a7   : > { %v1929_v42 = vadd.f32 %v1928_v33, %v1927_v27 }
 0x3a9   : > { %9144 = vpush %v1929_v42 }
 0x3aa   : > { %9146 = vpush %v1969_v16  ;;  %v3453_v16 = vld [vmem:[#allocation10 + $0x30] sm:$0xff] }
 0x3d2   : > { %v8284_v30 = vpop.f32.mrb[84].mxu0 }
 0x3d3   : > { %v2630_v12 = vpop.f32.mrb[85].mxu0 }
 0x3d4   : > { %v8992_v49 = vpack.c.bf16 %v8284_v30, %v2630_v12 }
 0x3d6   : > { %8993 = vmatprep.subr.bf16.mxu1 %v8992_v49  ;;  %v8287_v57 = vpop.f32.mrb[86].mxu0 }
 0x3d7   : > { %8995 = vmatpush3.bf16.msra.mxu1 %v8992_v49  ;;  %v2640_v40 = vpop.f32.mrb[87].mxu0 }
 0x3d8   : > { %v8996_v8 = vpack.c.bf16 %v8287_v57, %v2640_v40  ;;  %v3454_v57 = vld [vmem:[#allocation10 + $0x38] sm:$0xff] }
 0x3da   : > { %v8290_v18 = vpop.f32.mrb[88].mxu0  ;;  %8997 = vmatprep.subr.bf16.mxu1 %v8996_v8  ;;  %s9145_s26 = spop %9144 }
 0x3db   : > { %v2650_v60 = vpop.f32.mrb[89].mxu0  ;;  %8999 = vmatpush3.bf16.msra.mxu1 %v8996_v8  ;;  %s1933_s27 = smul.f32 0.00032552084, %s9145_s26  ;;  %s9147_s21 = spop %9146 }
 0x3dc   : > { %v9000_v58 = vpack.c.bf16 %v8290_v18, %v2650_v60  ;;  %v3455_v60 = vld [vmem:[#allocation10 + $0x40] sm:$0xff]  ;;  %s1973_s17 = smul.f32 0.00032552084, %s9147_s21 }
 0x3de   : > { %9001 = vmatprep.subr.bf16.mxu1 %v9000_v58 }
 0x3df   : > { %9003 = vmatpush3.bf16.msra.mxu1 %v9000_v58 }
 0x3e2   : > { %8340 = vmatmul.mubr.msk.f32.vlgmr.msra.gmra.mrb[72].mxu1 %vm2779_vm3, %v10778_v5 }
 0x3e3   : > { %8342 = vmatprep.mubr.msk.f32.mxu1 %vm2779_vm3, %v10780_v19 }
 0x3e6   : > { %8343 = vmatmul.mubr.msk.f32.gmra.mrb[74].mxu1 %vm2779_vm3, %v10786_v51 }
 0x3e7   : > { %8345 = vmatprep.mubr.msk.f32.mxu1 %vm2779_vm3, %v10788_v14 }
 0x3ea   : > { %v8293_v11 = vpop.f32.mrb[90].mxu0  ;;  %8346 = vmatmul.mubr.msk.f32.gmra.mrb[76].mxu1 %vm2779_vm3, %v10794_v59 }
 0x3eb   : > { %v2660_v61 = vpop.f32.mrb[91].mxu0  ;;  %8360 = vmatprep.mubr.msk.f32.mxu1 %vm2779_vm3, %v10771_v21 }
 0x3ec   : > { %v9004_v32 = vpack.c.bf16 %v8293_v11, %v2660_v61 }
 0x3ee   : > { %v8296_v7 = vpop.f32.mrb[92].mxu0  ;;  %9005 = vmatprep.subr.bf16.mxu1 %v9004_v32 }
 0x3ef   : > { %v2670_v3 = vpop.f32.mrb[93].mxu0  ;;  %9007 = vmatpush3.bf16.msra.mxu1 %v9004_v32 }
 0x3f0   : > { %v9008_v55 = vpack.c.bf16 %v8296_v7, %v2670_v3 }
 0x3f2   : > { %v8299_v2 = vpop.f32.mrb[94].mxu0  ;;  %9009 = vmatprep.subr.bf16.mxu1 %v9008_v55 }
 0x3f3   : > { %v2680_v62 = vpop.f32.mrb[95].mxu0  ;;  %9011 = vmatpush3.bf16.msra.mxu1 %v9008_v55 }
 0x3f4   : > { %v9012_v1 = vpack.c.bf16 %v8299_v2, %v2680_v62 }
 0x3f6   : > { %v8302_v6 = vpop.f32.mrb[96].mxu0  ;;  %9013 = vmatprep.subr.bf16.mxu1 %v9012_v1 }
 0x3f7   : > { %v2690_v44 = vpop.f32.mrb[97].mxu0  ;;  %9015 = vmatpush3.bf16.msra.mxu1 %v9012_v1 }
 0x3f8   : > { %v9016_v22 = vpack.c.bf16 %v8302_v6, %v2690_v44 }
 0x3fa   : > { %v8305_v9 = vpop.f32.mrb[98].mxu0  ;;  %8361 = vmatmul.mubr.msk.f32.vlgmr.msra.gmra.mrb[78].mxu1 %vm2779_vm3, %v10778_v5  ;;  %9017 = vmatprep.subr.bf16.mxu1 %v9016_v22 }
 0x3fb   : > { %v2700_v4 = vpop.f32.mrb[99].mxu0  ;;  %9019 = vmatpush3.bf16.msra.mxu1 %v9016_v22  ;;  %8363 = vmatprep.mubr.msk.f32.mxu1 %vm2779_vm3, %v10780_v19 }
 0x3fc   : > { %v9020_v43 = vpack.c.bf16 %v8305_v9, %v2700_v4 }
 0x3fe   : > { %v8308_v34 = vpop.f32.mrb[100].mxu0  ;;  %8364 = vmatmul.mubr.msk.f32.gmra.mrb[80].mxu1 %vm2779_vm3, %v10786_v51  ;;  %9021 = vmatprep.subr.bf16.mxu1 %v9020_v43 }
 0x3ff   : > { %v2710_v37 = vpop.f32.mrb[101].mxu0  ;;  %9023 = vmatpush3.bf16.msra.mxu1 %v9020_v43  ;;  %8366 = vmatprep.mubr.msk.f32.mxu1 %vm2779_vm3, %v10788_v14 }
 0x400   : > { %v9024_v15 = vpack.c.bf16 %v8308_v34, %v2710_v37 }
 0x402   : > { %v8311_v46 = vpop.f32.mrb[102].mxu0  ;;  %8367 = vmatmul.mubr.msk.f32.gmra.mrb[82].mxu1 %vm2779_vm3, %v10794_v59  ;;  %9025 = vmatprep.subr.bf16.mxu1 %v9024_v15 }
 0x403   : > { %v2720_v23 = vpop.f32.mrb[103].mxu0  ;;  %9027 = vmatpush3.bf16.msra.mxu1 %v9024_v15  ;;  %8381 = vmatprep.mubr.msk.f32.mxu1 %vm2779_vm3, %v10771_v21 }
 0x404   : > { %v9028_v53 = vpack.c.bf16 %v8311_v46, %v2720_v23 }
 0x406   : > { %v8314_v39 = vpop.f32.mrb[104].mxu0  ;;  %8382 = vmatmul.mubr.msk.f32.vlgmr.msra.gmra.mrb[84].mxu1 %vm2779_vm3, %v10778_v5  ;;  %9029 = vmatprep.subr.bf16.mxu1 %v9028_v53 }
 0x407   : > { %v2730_v26 = vpop.f32.mrb[105].mxu0  ;;  %9031 = vmatpush3.bf16.msra.mxu1 %v9028_v53  ;;  %8384 = vmatprep.mubr.msk.f32.mxu1 %vm2779_vm3, %v10780_v19 }
 0x408   : > { %v9032_v63 = vpack.c.bf16 %v8314_v39, %v2730_v26 }
 0x40a   : > { %v8317_v17 = vpop.f32.mrb[106].mxu0  ;;  %8385 = vmatmul.mubr.msk.f32.gmra.mrb[86].mxu1 %vm2779_vm3, %v10786_v51  ;;  %9033 = vmatprep.subr.bf16.mxu1 %v9032_v63 }
 0x40b   : > { %v2740_v31 = vpop.f32.mrb[107].mxu0  ;;  %9035 = vmatpush3.bf16.msra.mxu1 %v9032_v63  ;;  %8387 = vmatprep.mubr.msk.f32.mxu1 %vm2779_vm3, %v10788_v14 }
 0x40c   : > { %v9036_v50 = vpack.c.bf16 %v8317_v17, %v2740_v31 }
 0x40e   : > { %v8320_v13 = vpop.f32.mrb[108].mxu0  ;;  %8388 = vmatmul.mubr.msk.f32.gmra.mrb[88].mxu1 %vm2779_vm3, %v10794_v59  ;;  %9037 = vmatprep.subr.bf16.mxu1 %v9036_v50 }
 0x40f   : > { %v2750_v36 = vpop.f32.mrb[109].mxu0  ;;  %9039 = vmatpush3.bf16.msra.mxu1 %v9036_v50  ;;  %8402 = vmatprep.mubr.msk.f32.mxu1 %vm2779_vm3, %v10771_v21 }
 0x410   : > { %v9040_v20 = vpack.c.bf16 %v8320_v13, %v2750_v36 }
 0x412   : > { %v8323_v10 = vpop.f32.mrb[110].mxu0  ;;  %8403 = vmatmul.mubr.msk.f32.vlgmr.msra.gmra.mrb[90].mxu1 %vm2779_vm3, %v10778_v5  ;;  %9041 = vmatprep.subr.bf16.mxu1 %v9040_v20 }
 0x413   : > { %v2760_v35 = vpop.f32.mrb[111].mxu0  ;;  %9043 = vmatpush3.bf16.msra.mxu1 %v9040_v20  ;;  %8405 = vmatprep.mubr.msk.f32.mxu1 %vm2779_vm3, %v10780_v19 }
 0x414   : > { %v9044_v47 = vpack.c.bf16 %v8323_v10, %v2760_v35 }
 0x416   : > { %v8326_v25 = vpop.f32.mrb[112].mxu0  ;;  %8406 = vmatmul.mubr.msk.f32.gmra.mrb[92].mxu1 %vm2779_vm3, %v10786_v51  ;;  %9045 = vmatprep.subr.bf16.mxu1 %v9044_v47 }
 0x417   : > { %v2770_v0 = vpop.f32.mrb[113].mxu0  ;;  %9047 = vmatpush3.bf16.msra.mxu1 %v9044_v47  ;;  %8408 = vmatprep.mubr.msk.f32.mxu1 %vm2779_vm3, %v10788_v14 }
 0x418   : > { %v9048_v38 = vpack.c.bf16 %v8326_v25, %v2770_v0 }
 0x41a   : > { %8409 = vmatmul.mubr.msk.f32.gmra.mrb[94].mxu1 %vm2779_vm3, %v10794_v59  ;;  %9049 = vmatprep.subr.bf16.mxu1 %v9048_v38  ;;  %v8438_v48 = vpop.f32.mrb[114].mxu0 }
 0x41b   : > { %9051 = vmatpush3.bf16.msra.mxu1 %v9048_v38  ;;  %v3522_v54 = vpop.f32.mrb[115].mxu0  ;;  %8423 = vmatprep.mubr.msk.f32.mxu1 %vm2779_vm3, %v10771_v21 }
 0x41c   : > { %v9057_v52 = vpack.c.bf16 %v8438_v48, %v3522_v54  ;;  %9056 = vmatprep.subr.bf16.mxu1 %v9585_v41 }
 0x41e   : > { %8424 = vmatmul.mubr.msk.f32.vlgmr.msra.gmra.mrb[96].mxu1 %vm2779_vm3, %v10778_v5  ;;  %v8441_v24 = vpop.f32.mrb[116].mxu0  ;;  %v3816_v5 = vld [vmem:[#allocation6 + $0x40] sm:$0xff] }
 0x41f   : > { %v3532_v29 = vpop.f32.mrb[117].mxu0  ;;  %9058 = vmatpush3.bf16.msra.mxu1 %v9057_v52  ;;  %8426 = vmatprep.mubr.msk.f32.mxu1 %vm2779_vm3, %v10780_v19 }
 0x420   : > { %v9060_v45 = vpack.c.bf16 %v8441_v24, %v3532_v29  ;;  %9059 = vmatprep.subr.bf16.mxu1 %v9585_v41  ;;  %8501 = vmatpush3.msra.mxu0 %v3816_v5 }
 0x421   : > { %8622 = vmatprep.subr.mxu0 %v9583_v28 }
 0x422   : > { %8427 = vmatmul.mubr.msk.f32.gmra.mrb[98].mxu1 %vm2779_vm3, %v10786_v51  ;;  %v8444_v21 = vpop.f32.mrb[118].mxu0 }
 0x423   : > { %v3542_v27 = vpop.f32.mrb[119].mxu0  ;;  %9061 = vmatpush3.bf16.msra.mxu1 %v9060_v45  ;;  %8429 = vmatprep.mubr.msk.f32.mxu1 %vm2779_vm3, %v10788_v14 }
 0x424   : > { %v9063_v56 = vpack.c.bf16 %v8444_v21, %v3542_v27  ;;  %9062 = vmatprep.subr.bf16.mxu1 %v9585_v41 }
 0x426   : > { %8430 = vmatmul.mubr.msk.f32.gmra.mrb[100].mxu1 %vm2779_vm3, %v10794_v59  ;;  %v8472_v33 = vpop.f32.mrb[120].mxu0 }
 0x427   : > { %9064 = vmatpush3.bf16.msra.mxu1 %v9063_v56  ;;  %v3706_v42 = vpop.f32.mrb[121].mxu0  ;;  %8457 = vmatprep.mubr.msk.f32.mxu1 %vm9584_vm4, %v9583_v28 }
 0x428   : > { %v9070_v30 = vpack.c.bf16 %v8472_v33, %v3706_v42  ;;  %9069 = vmatprep.subr.bf16.mxu1 %v9585_v41 }
 0x42a   : > { %8458 = vmatmul.mubr.msk.f32.vlgmr.msra.gmra.mrb[102].mxu1 %vm2779_vm3, %v3453_v16  ;;  %v8475_v12 = vpop.f32.mrb[122].mxu0 }
 0x42b   : > { %v3716_v49 = vpop.f32.mrb[123].mxu0  ;;  %9071 = vmatpush3.bf16.msra.mxu1 %v9070_v30  ;;  %8460 = vmatprep.mubr.msk.f32.mxu1 %vm9584_vm4, %v9583_v28 }
 0x42c   : > { %v9073_v40 = vpack.c.bf16 %v8475_v12, %v3716_v49  ;;  %9072 = vmatprep.subr.bf16.mxu1 %v9585_v41 }
 0x42e   : > { %8461 = vmatmul.mubr.msk.f32.gmra.mrb[104].mxu1 %vm2779_vm3, %v3454_v57  ;;  %v8478_v8 = vpop.f32.mrb[124].mxu0 }
 0x42f   : > { %v3726_v18 = vpop.f32.mrb[125].mxu0  ;;  %9074 = vmatpush3.bf16.msra.mxu1 %v9073_v40  ;;  %8463 = vmatprep.mubr.msk.f32.mxu1 %vm9584_vm4, %v9583_v28 }
 0x430   : > { %v9076_v58 = vpack.c.bf16 %v8478_v8, %v3726_v18  ;;  %9075 = vmatprep.subr.bf16.mxu1 %v9585_v41 }
 0x432   : > { %8464 = vmatmul.mubr.msk.f32.gmra.mrb[106].mxu1 %vm2779_vm3, %v3455_v60 }
 0x433   : > { %9077 = vmatpush3.bf16.msra.mxu1 %v9076_v58  ;;  %8491 = vmatprep.mubr.msk.f32.mxu1 %vm9584_vm4, %v9583_v28 }
 0x434   : > { %9078 = vmatprep.subr.bf16.mxu1 %v9585_v41 }
 0x436   : > { %8492 = vmatmul.mubr.msk.f32.vlgmr.msra.gmra.mrb[108].mxu1 %vm2779_vm3, %v3453_v16 }
 0x437   : > { %8494 = vmatprep.mubr.msk.f32.mxu1 %vm9584_vm4, %v9583_v28 }
 0x43a   : > { %8495 = vmatmul.mubr.msk.f32.gmra.mrb[110].mxu1 %vm2779_vm3, %v3454_v57 }
 0x43b   : > { %8497 = vmatprep.mubr.msk.f32.mxu1 %vm9584_vm4, %v9583_v28 }
 0x43e   : > { %8498 = vmatmul.mubr.msk.f32.gmra.mrb[112].mxu1 %vm2779_vm3, %v3455_v60 }
 0x43f   : > { %8553 = vmatprep.mubr.msk.f32.mxu1 %vm9584_vm4, %v9583_v28 }
 0x4b5   : > { %v8341_v19 = vpop.f32.mrb[72].mxu1 }
 0x4b6   : > { %v2864_v51 = vpop.f32.mrb[73].mxu1  ;;  %v3274_v7 = vmul.f32 %v8341_v19, %v8341_v19 }
 0x4b7   : > { %v3273_v62 = vmul.f32 %v2864_v51, %v2864_v51 }
 0x4b9   : > { %v8344_v14 = vpop.f32.mrb[74].mxu1 }
 0x4ba   : > { %v2874_v59 = vpop.f32.mrb[75].mxu1  ;;  %v3276_v4 = vmul.f32 %v8344_v14, %v8344_v14 }
 0x4bb   : > { %v3275_v15 = vmul.f32 %v2874_v59, %v2874_v59 }
 0x4bd   : > { %v8347_v11 = vpop.f32.mrb[76].mxu1 }
 0x4be   : > { %v2884_v61 = vpop.f32.mrb[77].mxu1  ;;  %v3278_v63 = vmul.f32 %v8347_v11, %v8347_v11 }
 0x4bf   : > { %v3277_v13 = vmul.f32 %v2884_v61, %v2884_v61 }
 0x4cd   : > { %v8362_v32 = vpop.f32.mrb[78].mxu1 }
 0x4ce   : > { %v3280_v3 = vmul.f32 %v8362_v32, %v8362_v32  ;;  %v10874_v55 = vmul.f32 %v8362_v32, %v8341_v19  ;;  %v2959_v2 = vpop.f32.mrb[79].mxu1 }
 0x4cf   : > { %v3279_v1 = vmul.f32 %v2959_v2, %v2959_v2  ;;  %v10876_v6 = vmul.f32 %v2959_v2, %v2864_v51 }
 0x4d0   : > { %v3352_v44 = vadd.f32 %v3280_v3, %v3274_v7  ;;  %v3334_v19 = vmul.f32 2.0, %v10874_v55 }
 0x4d1   : > { %v3351_v22 = vadd.f32 %v3279_v1, %v3273_v62  ;;  %v8365_v9 = vpop.f32.mrb[80].mxu1 }
 0x4d2   : > { %v3282_v43 = vmul.f32 %v8365_v9, %v8365_v9  ;;  %v10878_v34 = vmul.f32 %v8365_v9, %v8344_v14  ;;  %v2969_v37 = vpop.f32.mrb[81].mxu1  ;;  %v3358_v57 = vadd.f32 0.0001, %v3352_v44 }
 0x4d3   : > { %v3281_v46 = vmul.f32 %v2969_v37, %v2969_v37  ;;  %v10880_v23 = vmul.f32 %v2969_v37, %v2874_v59  ;;  %v3357_v60 = vadd.f32 0.0001, %v3351_v22  ;;  %v3333_v59 = vmul.f32 2.0, %v10876_v6 }
 0x4d4   : > { %v3354_v53 = vadd.f32 %v3282_v43, %v3276_v4  ;;  %v3336_v9 = vmul.f32 2.0, %v10878_v34 }
 0x4d5   : > { %v3353_v39 = vadd.f32 %v3281_v46, %v3275_v15  ;;  %v8368_v26 = vpop.f32.mrb[82].mxu1  ;;  %v3335_v37 = vmul.f32 2.0, %v10880_v23 }
 0x4d6   : > { %v3284_v17 = vmul.f32 %v8368_v26, %v8368_v26  ;;  %v10882_v31 = vmul.f32 %v8368_v26, %v8347_v11  ;;  %v2979_v50 = vpop.f32.mrb[83].mxu1 }
 0x4d7   : > { %v3283_v36 = vmul.f32 %v2979_v50, %v2979_v50  ;;  %v10884_v20 = vmul.f32 %v2979_v50, %v2884_v61 }
 0x4d8   : > { %v3356_v10 = vadd.f32 %v3284_v17, %v3278_v63 }
 0x4d9   : > { %v3355_v35 = vadd.f32 %v3283_v36, %v3277_v13  ;;  %v8383_v47 = vpop.f32.mrb[84].mxu1 }
 0x4da   : > { %v3292_v25 = vsub.f32 %v8383_v47, %v3274_v7  ;;  %v3054_v0 = vpop.f32.mrb[85].mxu1  ;;  %v3360_v7 = vadd.f32 0.0001, %v3354_v53  ;;  %v3362_v53 = vadd.f32 0.0001, %v3356_v10 }
 0x4db   : > { %v3291_v38 = vsub.f32 %v3054_v0, %v3273_v62  ;;  %v3361_v50 = vadd.f32 0.0001, %v3355_v35  ;;  %v3340_v47 = vadd.f32 0.0001, %v3334_v19 }
 0x4dd   : > { %v8386_v48 = vpop.f32.mrb[86].mxu1 }
 0x4de   : > { %v3294_v54 = vsub.f32 %v8386_v48, %v3276_v4  ;;  %v3064_v52 = vpop.f32.mrb[87].mxu1 }
 0x4df   : > { %v3293_v24 = vsub.f32 %v3064_v52, %v3275_v15 }
 0x4e1   : > { %v8389_v29 = vpop.f32.mrb[88].mxu1 }
 0x4e2   : > { %v3296_v45 = vsub.f32 %v8389_v29, %v3278_v63  ;;  %v3074_v21 = vpop.f32.mrb[89].mxu1 }
 0x4e3   : > { %v3295_v27 = vsub.f32 %v3074_v21, %v3277_v13  ;;  %v3341_v21 = vadd.f32 0.0001, %v3335_v37 }
 0x4e5   : > { %v8404_v56 = vpop.f32.mrb[90].mxu1 }
 0x4e6   : > { %v3298_v33 = vsub.f32 %v8404_v56, %v3280_v3  ;;  %v3149_v42 = vpop.f32.mrb[91].mxu1 }
 0x4e7   : > { %v3297_v16 = vsub.f32 %v3149_v42, %v3279_v1  ;;  %v3359_v1 = vadd.f32 0.0001, %v3353_v39 }
 0x4e8   : > { %v3322_v30 = vadd.f32 %v3298_v33, %v3292_v25  ;;  %v3338_v33 = vmul.f32 2.0, %v10882_v31 }
 0x4e9   : > { %v3321_v12 = vadd.f32 %v3297_v16, %v3291_v38  ;;  %v8407_v49 = vpop.f32.mrb[92].mxu1  ;;  %v3339_v38 = vadd.f32 0.0001, %v3333_v59 }
 0x4ea   : > { %v3328_v40 = vadd.f32 0.0009, %v3322_v30  ;;  %v3300_v8 = vsub.f32 %v8407_v49, %v3282_v43  ;;  %v3159_v18 = vpop.f32.mrb[93].mxu1  ;;  %v3337_v49 = vmul.f32 2.0, %v10884_v20 }
 0x4eb   : > { %v3327_v58 = vadd.f32 0.0009, %v3321_v12  ;;  %v3299_v5 = vsub.f32 %v3159_v18, %v3281_v46 }
 0x4ec   : > { %v3364_v51 = vmul.f32 %v3358_v57, %v3328_v40  ;;  %9303 = vrcp.f32 %v3328_v40  ;;  %v3324_v14 = vadd.f32 %v3300_v8, %v3294_v54 }
 0x4ed   : > { %v3363_v11 = vmul.f32 %v3357_v60, %v3327_v58  ;;  %9305 = vrcp.f32 %v3327_v58  ;;  %v3323_v61 = vadd.f32 %v3299_v5, %v3293_v24  ;;  %v8410_v32 = vpop.f32.mrb[94].mxu1  ;;  %v3342_v24 = vadd.f32 0.0001, %v3336_v9 }
 0x4ee   : > { %9307 = vrcp.f32 %v3364_v51  ;;  %v3330_v3 = vadd.f32 0.0009, %v3324_v14  ;;  %v3302_v2 = vsub.f32 %v8410_v32, %v3284_v17  ;;  %v3169_v62 = vpop.f32.mrb[95].mxu1 }
 0x4ef   : > { %9309 = vrcp.f32 %v3363_v11  ;;  %v3329_v44 = vadd.f32 0.0009, %v3323_v61  ;;  %v3301_v22 = vsub.f32 %v3169_v62, %v3283_v36 }
 0x4f0   : > { %v3366_v4 = vmul.f32 %v3360_v7, %v3330_v3  ;;  %9311 = vrcp.f32 %v3330_v3  ;;  %v3326_v43 = vadd.f32 %v3302_v2, %v3296_v45 }
 0x4f1   : > { %v3365_v15 = vmul.f32 %v3359_v1, %v3329_v44  ;;  %9313 = vrcp.f32 %v3329_v44  ;;  %v3325_v46 = vadd.f32 %v3301_v22, %v3295_v27  ;;  %v8425_v26 = vpop.f32.mrb[96].mxu1  ;;  %v10901_v1 = vld [vmem:[#allocation9 + $0x40] sm:$0xff] }
 0x4f2   : > { %9315 = vrcp.f32 %v3366_v4  ;;  %v3332_v63 = vadd.f32 0.0009, %v3326_v43  ;;  %v3304_v17 = vsub.f32 %v8425_v26, %v10874_v55  ;;  %v3244_v39 = vpop.f32.mrb[97].mxu1 }
 0x4f3   : > { %9317 = vrcp.f32 %v3365_v15  ;;  %v3331_v13 = vadd.f32 0.0009, %v3325_v46  ;;  %v3303_v36 = vsub.f32 %v3244_v39, %v10876_v6 }
 0x4f4   : > { %v3368_v25 = vmul.f32 %v3362_v53, %v3332_v63  ;;  %9319 = vrcp.f32 %v3332_v63  ;;  %v3310_v0 = vmul.f32 2.0, %v3304_v17  ;;  %v3344_v63 = vadd.f32 0.0001, %v3338_v33 }
 0x4f5   : > { %v3367_v48 = vmul.f32 %v3361_v50, %v3331_v13  ;;  %9321 = vrcp.f32 %v3331_v13  ;;  %v3309_v54 = vmul.f32 2.0, %v3303_v36  ;;  %v8428_v10 = vpop.f32.mrb[98].mxu1  ;;  %v3343_v36 = vadd.f32 0.0001, %v3337_v49 }
 0x4f6   : > { %v9304_v52 = vpop.eup %9303  ;;  %9323 = vrcp.f32 %v3368_v25  ;;  %v3316_v55 = vadd.f32 0.0009, %v3310_v0  ;;  %v3306_v35 = vsub.f32 %v8428_v10, %v10878_v34  ;;  %v3254_v29 = vpop.f32.mrb[99].mxu1 }
 0x4f7   : > { %v9306_v45 = vpop.eup %9305  ;;  %9325 = vrcp.f32 %v3367_v48  ;;  %v3315_v6 = vadd.f32 0.0009, %v3309_v54  ;;  %v3305_v27 = vsub.f32 %v3254_v29, %v10880_v23 }
 0x4f8   : > { %v9308_v56 = vpop.eup %9307  ;;  %v3346_v42 = vmul.f32 %v3340_v47, %v3316_v55  ;;  %v3384_v16 = vmul.f32 %v9304_v52, %v3316_v55  ;;  %v3312_v30 = vmul.f32 2.0, %v3306_v35 }
 0x4f9   : > { %v9310_v12 = vpop.eup %9309  ;;  %v3345_v57 = vmul.f32 %v3339_v38, %v3315_v6  ;;  %v3382_v40 = vmul.f32 %v9306_v45, %v3315_v6  ;;  %v3311_v8 = vmul.f32 2.0, %v3305_v27  ;;  %v8431_v34 = vpop.f32.mrb[100].mxu1 }
 0x4fa   : > { %v9312_v18 = vpop.eup %9311  ;;  %v3372_v60 = vmul.f32 %v9308_v56, %v3346_v42  ;;  %v3424_v58 = vsel %vm2473_vm2, %v3384_v16, 0.0  ;;  %v3318_v5 = vadd.f32 0.0009, %v3312_v30  ;;  %v3308_v23 = vsub.f32 %v8431_v34, %v10882_v31  ;;  %v3264_v19 = vpop.f32.mrb[101].mxu1 }
 0x4fb   : > { %v9314_v51 = vpop.eup %9313  ;;  %v3370_v14 = vmul.f32 %v9310_v12, %v3345_v57  ;;  %v3423_v59 = vsel %vm2473_vm2, %v3382_v40, 0.0  ;;  %v3317_v11 = vadd.f32 0.0009, %v3311_v8  ;;  %v3307_v61 = vsub.f32 %v3264_v19, %v10884_v20 }
 0x4fc   : > { %v9316_v32 = vpop.eup %9315  ;;  %v3396_v7 = vsel %vm2473_vm2, %v3372_v60, 0.0  ;;  %v3425_v3 = vadd.f32 %v3424_v58, %v3423_v59  ;;  %v3348_v2 = vmul.f32 %v3342_v24, %v3318_v5  ;;  %v3388_v62 = vmul.f32 %v9312_v18, %v3318_v5 }
 0x4fd   : > { %v9318_v44 = vpop.eup %9317  ;;  %v3395_v22 = vsel %vm2473_vm2, %v3370_v14, 0.0  ;;  %v3347_v31 = vmul.f32 %v3341_v21, %v3317_v11  ;;  %v3386_v9 = vmul.f32 %v9314_v51, %v3317_v11  ;;  %v3314_v4 = vmul.f32 2.0, %v3308_v23  ;;  %v10904_v43 = vpop.f32.mrb[102].mxu1 }
 0x4fe   : > { %v9320_v37 = vpop.eup %9319  ;;  %v3397_v15 = vadd.f32 %v3396_v7, %v3395_v22  ;;  %v3376_v46 = vmul.f32 %v9316_v32, %v3348_v2  ;;  %v3313_v20 = vmul.f32 2.0, %v3307_v61  ;;  %v8459_v26 = vpop.f32.mrb[103].mxu1  ;;  %8503 = vmatmul.mubr.msk.f32.vlgmr.msra.gmra.mrb[126].mxu0 %vm3830_vm5, %v10904_v43  ;;  %v3428_v52 = vsel %vm2473_vm2, %v3388_v62, 0.0 }
 0x4ff   : > { %v9322_v53 = vpop.eup %9321  ;;  %v3374_v17 = vmul.f32 %v9318_v44, %v3347_v31  ;;  %v3426_v39 = vsel %vm2473_vm2, %v3386_v9, 0.0  ;;  %v3320_v50 = vadd.f32 0.0009, %v3314_v4  ;;  %8505 = vmatprep.mubr.msk.f32.mxu0 %vm9584_vm4, %v9583_v28  ;;  %8623 = vmatpush3.msra.mxu0 %v10901_v1  ;;  %v3821_v11 = vmul.f32 %v10904_v43, %v10904_v43  ;;  %v10997_v9 = vld [vmem:[#allocation10 + $0x60] sm:$0xff] }
 0x500   : > { %v9324_v13 = vpop.eup %9323  ;;  %v3319_v47 = vadd.f32 0.0009, %v3313_v20  ;;  %v3427_v25 = vadd.f32 %v3426_v39, %v3425_v3  ;;  %v3400_v56 = vsel %vm2473_vm2, %v3376_v46, 0.0 }
 0x501   : > { %v9326_v0 = vpop.eup %9325  ;;  %v3398_v38 = vsel %vm2473_vm2, %v3374_v17, 0.0  ;;  %v3350_v48 = vmul.f32 %v3344_v63, %v3320_v50  ;;  %v10913_v54 = vpop.f32.mrb[104].mxu1  ;;  %v3392_v10 = vmul.f32 %v9320_v37, %v3320_v50 }
 0x502   : > { %v3349_v24 = vmul.f32 %v3343_v36, %v3319_v47  ;;  %v3390_v55 = vmul.f32 %v9322_v53, %v3319_v47  ;;  %v8462_v35 = vpop.f32.mrb[105].mxu1  ;;  %8506 = vmatmul.mubr.msk.f32.gmra.mrb[128].mxu0 %vm3830_vm5, %v10913_v54  ;;  %v3429_v29 = vadd.f32 %v3428_v52, %v3427_v25  ;;  %v3399_v21 = vadd.f32 %v3398_v38, %v3397_v15  ;;  %v11002_v38 = vld [vmem:[#allocation7 + $0xc0] sm:$0xff] }
 0x503   : > { %8508 = vmatprep.mubr.msk.f32.mxu0 %vm9584_vm4, %v9583_v28  ;;  %v3380_v45 = vmul.f32 %v9324_v13, %v3350_v48  ;;  %v3432_v12 = vsel %vm2473_vm2, %v3392_v10, 0.0  ;;  %v3822_v61 = vmul.f32 %v10913_v54, %v10913_v54  ;;  %v11009_v10 = vld [vmem:[#allocation7 + $0xc8] sm:$0xff]  ;;  %v11015_v35 = vld [vmem:[#allocation7 + $0xd0] sm:$0xff] }
 0x504   : > { %v3378_v6 = vmul.f32 %v9326_v0, %v3349_v24  ;;  %v3430_v27 = vsel %vm2473_vm2, %v3390_v55, 0.0  ;;  %v3401_v16 = vadd.f32 %v3400_v56, %v3399_v21 }
 0x505   : > { %v3636_v33 = vpop.f32.mrb[106].mxu1  ;;  %v3431_v42 = vadd.f32 %v3430_v27, %v3429_v29  ;;  %v3404_v8 = vsel %vm2473_vm2, %v3380_v45, 0.0 }
 0x506   : > { %v8465_v30 = vpop.f32.mrb[107].mxu1  ;;  %8509 = vmatmul.mubr.msk.f32.gmra.mrb[130].mxu0 %vm3830_vm5, %v3636_v33  ;;  %v3402_v49 = vsel %vm2473_vm2, %v3378_v6, 0.0  ;;  %v3823_v32 = vmul.f32 %v3636_v33, %v3636_v33 }
 0x507   : > { %v3433_v57 = vadd.f32 %v3432_v12, %v3431_v42  ;;  %8511 = vmatprep.mubr.msk.f32.mxu0 %vm9584_vm4, %v9583_v28  ;;  %v3403_v40 = vadd.f32 %v3402_v49, %v3401_v16 }
 0x509   : > { %3434 = vadd.xlane.f32.xlu1 %v3433_v57  ;;  %v10928_v34 = vpop.f32.mrb[108].mxu1  ;;  %v3405_v18 = vadd.f32 %v3404_v8, %v3403_v40 }
 0x50a   : > { %v3827_v60 = vmul.f32 %v10928_v34, %v10904_v43  ;;  %v8493_v58 = vpop.f32.mrb[109].mxu1  ;;  %8512 = vmatmul.mubr.msk.f32.gmra.mrb[132].mxu0 %vm3830_vm5, %v10928_v34  ;;  %v3824_v7 = vmul.f32 %v10928_v34, %v10928_v34 }
 0x50b   : > { %8514 = vmatprep.mubr.msk.f32.mxu0 %vm9584_vm4, %v9583_v28 }
 0x50d   : > { %3406 = vadd.xlane.f32.xlu1 %v3405_v18  ;;  %v10936_v5 = vpop.f32.mrb[110].mxu1 }
 0x50e   : > { %v3828_v23 = vmul.f32 %v10936_v5, %v10913_v54  ;;  %v8496_v19 = vpop.f32.mrb[111].mxu1  ;;  %8515 = vmatmul.mubr.msk.f32.gmra.mrb[134].mxu0 %vm3830_vm5, %v10936_v5  ;;  %v3825_v3 = vmul.f32 %v10936_v5, %v10936_v5 }
 0x50f   : > { %8517 = vmatprep.mubr.msk.f32.mxu0 %vm9584_vm4, %v9583_v28 }
 0x511   : > { %v10944_v51 = vpop.f32.mrb[112].mxu1 }
 0x512   : > { %v3829_v14 = vmul.f32 %v10944_v51, %v3636_v33  ;;  %v8499_v59 = vpop.f32.mrb[113].mxu1  ;;  %8518 = vmatmul.mubr.msk.f32.gmra.mrb[136].mxu0 %vm3830_vm5, %v10944_v51  ;;  %v3826_v2 = vmul.f32 %v10944_v51, %v10944_v51 }
 0x513   : > { %8520 = vmatprep.mubr.msk.f32.mxu0 %vm9584_vm4, %v9583_v28 }
 0x516   : > { %8521 = vmatmul.mubr.msk.f32.gmra.mrb[138].mxu0 %vm3830_vm5, %v3821_v11 }
 0x517   : > { %8523 = vmatprep.mubr.msk.f32.mxu0 %vm9584_vm4, %v9583_v28 }
 0x51a   : > { %8524 = vmatmul.mubr.msk.f32.gmra.mrb[140].mxu0 %vm3830_vm5, %v3822_v61 }
 0x51b   : > { %8526 = vmatprep.mubr.msk.f32.mxu0 %vm9584_vm4, %v9583_v28 }
 0x51e   : > { %8527 = vmatmul.mubr.msk.f32.gmra.mrb[142].mxu0 %vm3830_vm5, %v3823_v32 }
 0x51f   : > { %8529 = vmatprep.mubr.msk.f32.mxu0 %vm9584_vm4, %v9583_v28 }
 0x522   : > { %8530 = vmatmul.mubr.msk.f32.gmra.mrb[144].mxu0 %vm3830_vm5, %v3824_v7 }
 0x523   : > { %8532 = vmatprep.mubr.msk.f32.mxu0 %vm9584_vm4, %v9583_v28 }
 0x526   : > { %8533 = vmatmul.mubr.msk.f32.gmra.mrb[146].mxu0 %vm3830_vm5, %v3825_v3 }
 0x527   : > { %8535 = vmatprep.mubr.msk.f32.mxu0 %vm9584_vm4, %v9583_v28 }
 0x52a   : > { %8536 = vmatmul.mubr.msk.f32.gmra.mrb[148].mxu0 %vm3830_vm5, %v3826_v2 }
 0x52b   : > { %8538 = vmatprep.mubr.msk.f32.mxu0 %vm9584_vm4, %v9583_v28 }
 0x52e   : > { %8539 = vmatmul.mubr.msk.f32.gmra.mrb[150].mxu0 %vm3830_vm5, %v3827_v60 }
 0x52f   : > { %8541 = vmatprep.mubr.msk.f32.mxu0 %vm9584_vm4, %v9583_v28 }
 0x532   : > { %8542 = vmatmul.mubr.msk.f32.gmra.mrb[152].mxu0 %vm3830_vm5, %v3828_v23 }
 0x533   : > { %8544 = vmatprep.mubr.msk.f32.mxu0 %vm9584_vm4, %v9583_v28 }
 0x536   : > { %8545 = vmatmul.mubr.msk.f32.gmra.mrb[154].mxu0 %vm3830_vm5, %v3829_v14 }
 0x537   : > { %8624 = vmatprep.mubr.msk.f32.mxu0 %vm9584_vm4, %v9583_v28 }
 0x53a   : > { %8625 = vmatmul.mubr.msk.f32.vlgmr.msra.gmra.mrb[156].mxu0 %vm3830_vm5, %v10904_v43 }
 0x53b   : > { %8627 = vmatprep.mubr.msk.f32.mxu0 %vm9584_vm4, %v9583_v28 }
 0x53e   : > { %8628 = vmatmul.mubr.msk.f32.gmra.mrb[158].mxu0 %vm3830_vm5, %v10913_v54 }
 0x53f   : > { %8630 = vmatprep.mubr.msk.f32.mxu0 %vm9584_vm4, %v9583_v28 }
 0x542   : > { %8631 = vmatmul.mubr.msk.f32.gmra.mrb[160].mxu0 %vm3830_vm5, %v3636_v33 }
 0x543   : > { %8659 = vmatprep.mubr.msk.f32.mxu0 %vm4016_vm6, %v10997_v9 }
 0x596   : > { %v3435_v62 = vpop.xlane.xlu1 %3434 }
 0x597   : > { %v3436_v44 = vrot.slane %v3435_v62, 4 }
 0x599   : > { %v3437_v22 = vadd.f32 %v3436_v44, %v3435_v62 }
 0x59a   : > { %v3407_v31 = vpop.xlane.xlu1 %3406 }
 0x59b   : > { %v3438_v4 = vrot.slane %v3437_v22, 2  ;;  %v3408_v43 = vrot.slane %v3407_v31, 4 }
 0x59d   : > { %v3409_v37 = vadd.f32 %v3408_v43, %v3407_v31  ;;  %v3439_v15 = vadd.f32 %v3438_v4, %v3437_v22  ;;  %v11076_v22 = vld [vmem:[#allocation10 + $0x68] sm:$0xf]  ;;  %v11094_v31 = vld [vmem:[#allocation6 + $0x60] sm:$0xf] }
 0x59f   : > { %v3410_v46 = vrot.slane %v3409_v37, 2  ;;  %v3440_v26 = vrot.slane %v3439_v15, 1 }
 0x5a1   : > { %v3411_v20 = vadd.f32 %v3410_v46, %v3409_v37  ;;  %v3441_v17 = vadd.f32 %v3440_v26, %v3439_v15 }
 0x5a3   : > { %v3412_v53 = vrot.slane %v3411_v20, 1 }
 0x5a5   : > { %v3413_v63 = vadd.f32 %v3412_v53, %v3411_v20 }
 0x5a7   : > { %9148 = vpush %v3413_v63 }
 0x5a8   : > { %9150 = vpush %v3441_v17 }
 0x5d1   : > { %v3942_v39 = vpop.f32.mrb[126].mxu0 }
 0x5d2   : > { %v8504_v50 = vpop.f32.mrb[127].mxu0 }
 0x5d5   : > { %v3947_v13 = vpop.f32.mrb[128].mxu0 }
 0x5d6   : > { %v9079_v36 = vpack.c.bf16 %v3947_v13, %v3942_v39  ;;  %v8507_v47 = vpop.f32.mrb[129].mxu0 }
 0x5d8   : > { %9080 = vmatpush3.bf16.msra.mxu1 %v9079_v36  ;;  %s9149_s9 = spop %9148 }
 0x5d9   : > { %v3952_v25 = vpop.f32.mrb[130].mxu0  ;;  %8551 = vmatprep.subr.mxu1 %v9583_v28  ;;  %s9151_s16 = spop %9150  ;;  %s3417_s14 = smul.f32 0.0013020834, %s9149_s9 }
 0x5da   : > { %v8510_v0 = vpop.f32.mrb[131].mxu0  ;;  %s3445_s24 = smul.f32 0.0013020834, %s9151_s16 }
 0x5dc   : > { %8552 = vmatpush3.msra.mxu1 %v3952_v25 }
 0x5dd   : > { %v3957_v48 = vpop.f32.mrb[132].mxu0  ;;  %8554 = vmatmul.mubr.msk.f32.vlgmr.msra.gmra.mrb[114].mxu1 %vm4016_vm6, %v11002_v38  ;;  %9081 = vmatprep.subr.bf16.mxu1 %v9585_v41 }
 0x5de   : > { %v8513_v54 = vpop.f32.mrb[133].mxu0  ;;  %8556 = vmatprep.mubr.msk.f32.mxu1 %vm9584_vm4, %v9583_v28 }
 0x5e1   : > { %v3962_v52 = vpop.f32.mrb[134].mxu0  ;;  %8557 = vmatmul.mubr.msk.f32.gmra.mrb[116].mxu1 %vm4016_vm6, %v11009_v10 }
 0x5e2   : > { %v9082_v24 = vpack.c.bf16 %v3962_v52, %v3957_v48  ;;  %v8516_v55 = vpop.f32.mrb[135].mxu0  ;;  %8559 = vmatprep.mubr.msk.f32.mxu1 %vm9584_vm4, %v9583_v28 }
 0x5e4   : > { %9083 = vmatpush3.bf16.msra.mxu1 %v9082_v24 }
 0x5e5   : > { %v3967_v29 = vpop.f32.mrb[136].mxu0  ;;  %8560 = vmatmul.mubr.msk.f32.gmra.mrb[118].mxu1 %vm4016_vm6, %v11015_v35  ;;  %8566 = vmatprep.subr.mxu1 %v9583_v28 }
 0x5e6   : > { %v8519_v45 = vpop.f32.mrb[137].mxu0  ;;  %8568 = vmatprep.mubr.msk.f32.mxu1 %vm9584_vm4, %v9583_v28 }
 0x5e8   : > { %8567 = vmatpush3.msra.mxu1 %v3967_v29 }
 0x5e9   : > { %v3972_v21 = vpop.f32.mrb[138].mxu0  ;;  %8569 = vmatmul.mubr.msk.f32.vlgmr.msra.gmra.mrb[120].mxu1 %vm4016_vm6, %v11002_v38  ;;  %9084 = vmatprep.subr.bf16.mxu1 %v9585_v41 }
 0x5ea   : > { %v8522_v6 = vpop.f32.mrb[139].mxu0  ;;  %8571 = vmatprep.mubr.msk.f32.mxu1 %vm9584_vm4, %v9583_v28 }
 0x5ed   : > { %v3977_v27 = vpop.f32.mrb[140].mxu0  ;;  %8572 = vmatmul.mubr.msk.f32.gmra.mrb[122].mxu1 %vm4016_vm6, %v11009_v10 }
 0x5ee   : > { %v9085_v56 = vpack.c.bf16 %v3977_v27, %v3972_v21  ;;  %v8525_v33 = vpop.f32.mrb[141].mxu0  ;;  %8574 = vmatprep.mubr.msk.f32.mxu1 %vm9584_vm4, %v9583_v28 }
 0x5f0   : > { %9086 = vmatpush3.bf16.msra.mxu1 %v9085_v56 }
 0x5f1   : > { %v3982_v42 = vpop.f32.mrb[142].mxu0  ;;  %8575 = vmatmul.mubr.msk.f32.gmra.mrb[124].mxu1 %vm4016_vm6, %v11015_v35  ;;  %8581 = vmatprep.subr.mxu1 %v9583_v28 }
 0x5f2   : > { %v8528_v16 = vpop.f32.mrb[143].mxu0  ;;  %8583 = vmatprep.mubr.msk.f32.mxu1 %vm9584_vm4, %v9583_v28 }
 0x5f4   : > { %8582 = vmatpush3.msra.mxu1 %v3982_v42 }
 0x5f5   : > { %v3987_v30 = vpop.f32.mrb[144].mxu0  ;;  %8584 = vmatmul.mubr.msk.f32.vlgmr.msra.gmra.mrb[126].mxu1 %vm4016_vm6, %v11002_v38  ;;  %9087 = vmatprep.subr.bf16.mxu1 %v9585_v41 }
 0x5f6   : > { %v8531_v12 = vpop.f32.mrb[145].mxu0  ;;  %8586 = vmatprep.mubr.msk.f32.mxu1 %vm9584_vm4, %v9583_v28 }
 0x5f9   : > { %v3992_v49 = vpop.f32.mrb[146].mxu0  ;;  %8587 = vmatmul.mubr.msk.f32.gmra.mrb[128].mxu1 %vm4016_vm6, %v11009_v10 }
 0x5fa   : > { %v9088_v57 = vpack.c.bf16 %v3992_v49, %v3987_v30  ;;  %v8534_v40 = vpop.f32.mrb[147].mxu0  ;;  %8589 = vmatprep.mubr.msk.f32.mxu1 %vm9584_vm4, %v9583_v28 }
 0x5fc   : > { %9089 = vmatpush3.bf16.msra.mxu1 %v9088_v57 }
 0x5fd   : > { %v3997_v8 = vpop.f32.mrb[148].mxu0  ;;  %8590 = vmatmul.mubr.msk.f32.gmra.mrb[130].mxu1 %vm4016_vm6, %v11015_v35  ;;  %8596 = vmatprep.subr.mxu1 %v9583_v28 }
 0x5fe   : > { %v8537_v18 = vpop.f32.mrb[149].mxu0  ;;  %8598 = vmatprep.mubr.msk.f32.mxu1 %vm9584_vm4, %v9583_v28 }
 0x600   : > { %8597 = vmatpush3.msra.mxu1 %v3997_v8 }
 0x601   : > { %v4002_v60 = vpop.f32.mrb[150].mxu0  ;;  %8599 = vmatmul.mubr.msk.f32.vlgmr.msra.gmra.mrb[132].mxu1 %vm4016_vm6, %v11002_v38  ;;  %9090 = vmatprep.subr.bf16.mxu1 %v9585_v41 }
 0x602   : > { %v8540_v58 = vpop.f32.mrb[151].mxu0  ;;  %8601 = vmatprep.mubr.msk.f32.mxu1 %vm9584_vm4, %v9583_v28 }
 0x605   : > { %v4007_v23 = vpop.f32.mrb[152].mxu0  ;;  %8602 = vmatmul.mubr.msk.f32.gmra.mrb[134].mxu1 %vm4016_vm6, %v11009_v10 }
 0x606   : > { %v9091_v19 = vpack.c.bf16 %v4007_v23, %v4002_v60  ;;  %v8543_v14 = vpop.f32.mrb[153].mxu0  ;;  %8604 = vmatprep.mubr.msk.f32.mxu1 %vm9584_vm4, %v9583_v28 }
 0x608   : > { %9092 = vmatpush3.bf16.msra.mxu1 %v9091_v19 }
 0x609   : > { %v4012_v59 = vpop.f32.mrb[154].mxu0  ;;  %8605 = vmatmul.mubr.msk.f32.gmra.mrb[136].mxu1 %vm4016_vm6, %v11015_v35  ;;  %8611 = vmatprep.subr.mxu1 %v9583_v28 }
 0x60a   : > { %v8546_v11 = vpop.f32.mrb[155].mxu0  ;;  %8613 = vmatprep.mubr.msk.f32.mxu1 %vm9584_vm4, %v9583_v28 }
 0x60c   : > { %8612 = vmatpush3.msra.mxu1 %v4012_v59 }
 0x60d   : > { %8614 = vmatmul.mubr.msk.f32.vlgmr.msra.gmra.mrb[138].mxu1 %vm4016_vm6, %v11002_v38  ;;  %v4601_v61 = vpop.f32.mrb[156].mxu0 }
 0x60e   : > { %v8626_v32 = vpop.f32.mrb[157].mxu0  ;;  %8616 = vmatprep.mubr.msk.f32.mxu1 %vm9584_vm4, %v9583_v28 }
 0x611   : > { %8617 = vmatmul.mubr.msk.f32.gmra.mrb[140].mxu1 %vm4016_vm6, %v11009_v10  ;;  %v4606_v7 = vpop.f32.mrb[158].mxu0 }
 0x612   : > { %v9093_v3 = vpack.c.bf16 %v4606_v7, %v4601_v61  ;;  %v8629_v2 = vpop.f32.mrb[159].mxu0  ;;  %8619 = vmatprep.mubr.msk.f32.mxu1 %vm9584_vm4, %v9583_v28 }
 0x614   : > { %9094 = vmatprep.subr.bf16.mxu1 %v9093_v3 }
 0x615   : > { %8620 = vmatmul.mubr.msk.f32.gmra.mrb[142].mxu1 %vm4016_vm6, %v11015_v35  ;;  %v4611_v62 = vpop.f32.mrb[160].mxu0 }
 0x616   : > { %9096 = vmatpush3.bf16.msra.mxu1 %v9093_v3  ;;  %v8632_v44 = vpop.f32.mrb[161].mxu0  ;;  %8639 = vmatprep.mubr.msk.f32.mxu1 %vm4016_vm6, %v10997_v9 }
 0x617   : > { %8637 = vmatprep.subr.mxu1 %v4611_v62 }
 0x61a   : > { %8638 = vmatpush3.msra.mxu1 %v4611_v62 }
 0x61b   : > { %8640 = vmatmul.mubr.msk.f32.vlgmr.msra.gmra.mrb[144].mxu1 %vm4016_vm6, %v11076_v22  ;;  %8642 = vmatprep.subr.mxu1 %v9583_v28 }
 0x61c   : > { %8643 = vmatpush3.msra.mxu1 %v10901_v1  ;;  %8644 = vmatprep.mubr.msk.f32.mxu1 %vm9584_vm4, %v9583_v28 }
 0x61d   : > { %8674 = vmatprep.subr.msk.mxu1 %vm4863_vm7, %v11094_v31 }
 0x61f   : > { %8645 = vmatmul.mubr.msk.f32.vlgmr.msra.gmra.mrb[146].mxu1 %vm3830_vm5, %v10928_v34 }
 0x620   : > { %8647 = vmatprep.mubr.msk.f32.mxu1 %vm9584_vm4, %v9583_v28  ;;  %8675 = vmatpush3.msk.msra.mxu1 %vm4863_vm7, %v11094_v31 }
 0x621   : > { %8686 = vmatprep.subr.msk.mxu1 %vm4863_vm7, %v11094_v31 }
 0x623   : > { %8648 = vmatmul.mubr.msk.f32.gmra.mrb[148].mxu1 %vm3830_vm5, %v10936_v5 }
 0x624   : > { %8650 = vmatprep.mubr.msk.f32.mxu1 %vm9584_vm4, %v9583_v28 }
 0x627   : > { %8651 = vmatmul.mubr.msk.f32.gmra.mrb[150].mxu1 %vm3830_vm5, %v10944_v51 }
 0x6b0   : > { %v4092_v1 = vpop.f32.mrb[114].mxu1 }
 0x6b1   : > { %v8555_v34 = vpop.f32.mrb[115].mxu1  ;;  %v4426_v51 = vmul.f32 %v4092_v1, %v4092_v1 }
 0x6b4   : > { %v4097_v5 = vpop.f32.mrb[116].mxu1 }
 0x6b5   : > { %v8558_v9 = vpop.f32.mrb[117].mxu1  ;;  %v4427_v63 = vmul.f32 %v4097_v5, %v4097_v5 }
 0x6b8   : > { %v4102_v4 = vpop.f32.mrb[118].mxu1 }
 0x6b9   : > { %v8561_v43 = vpop.f32.mrb[119].mxu1  ;;  %v4428_v47 = vmul.f32 %v4102_v4, %v4102_v4 }
 0x6bc   : > { %v4172_v37 = vpop.f32.mrb[120].mxu1 }
 0x6bd   : > { %v4429_v15 = vmul.f32 %v4172_v37, %v4172_v37  ;;  %v4432_v46 = vmul.f32 %v4172_v37, %v4092_v1  ;;  %v8570_v20 = vpop.f32.mrb[121].mxu1 }
 0x6bf   : > { %v4465_v26 = vadd.f32 %v4429_v15, %v4426_v51  ;;  %v4456_v59 = vmul.f32 2.0, %v4432_v46 }
 0x6c0   : > { %v4177_v53 = vpop.f32.mrb[122].mxu1 }
 0x6c1   : > { %v4430_v17 = vmul.f32 %v4177_v53, %v4177_v53  ;;  %v4433_v39 = vmul.f32 %v4177_v53, %v4097_v5  ;;  %v8573_v50 = vpop.f32.mrb[123].mxu1  ;;  %v4468_v16 = vadd.f32 0.0001, %v4465_v26  ;;  %v4459_v44 = vadd.f32 0.0001, %v4456_v59 }
 0x6c3   : > { %v4466_v13 = vadd.f32 %v4430_v17, %v4427_v63  ;;  %v4457_v5 = vmul.f32 2.0, %v4433_v39 }
 0x6c4   : > { %v4182_v36 = vpop.f32.mrb[124].mxu1 }
 0x6c5   : > { %v4431_v25 = vmul.f32 %v4182_v36, %v4182_v36  ;;  %v11102_v0 = vmul.f32 %v4182_v36, %v4102_v4  ;;  %v8576_v38 = vpop.f32.mrb[125].mxu1  ;;  %v4469_v18 = vadd.f32 0.0001, %v4466_v13 }
 0x6c7   : > { %v4467_v48 = vadd.f32 %v4431_v25, %v4428_v47  ;;  %v4458_v26 = vmul.f32 2.0, %v11102_v0 }
 0x6c8   : > { %v4252_v54 = vpop.f32.mrb[126].mxu1 }
 0x6c9   : > { %v4435_v10 = vsub.f32 %v4252_v54, %v4426_v51  ;;  %v8585_v52 = vpop.f32.mrb[127].mxu1  ;;  %v4470_v61 = vadd.f32 0.0001, %v4467_v48 }
 0x6cc   : > { %v4257_v24 = vpop.f32.mrb[128].mxu1 }
 0x6cd   : > { %v4436_v55 = vsub.f32 %v4257_v24, %v4427_v63  ;;  %v8588_v35 = vpop.f32.mrb[129].mxu1  ;;  %v4460_v63 = vadd.f32 0.0001, %v4457_v5 }
 0x6d0   : > { %v4262_v29 = vpop.f32.mrb[130].mxu1 }
 0x6d1   : > { %v4437_v45 = vsub.f32 %v4262_v29, %v4428_v47  ;;  %v8591_v21 = vpop.f32.mrb[131].mxu1 }
 0x6d4   : > { %v4332_v6 = vpop.f32.mrb[132].mxu1 }
 0x6d5   : > { %v4438_v27 = vsub.f32 %v4332_v6, %v4429_v15  ;;  %v8600_v56 = vpop.f32.mrb[133].mxu1 }
 0x6d7   : > { %v4450_v33 = vadd.f32 %v4438_v27, %v4435_v10 }
 0x6d8   : > { %v4337_v42 = vpop.f32.mrb[134].mxu1 }
 0x6d9   : > { %v4453_v30 = vadd.f32 0.0009, %v4450_v33  ;;  %v4439_v12 = vsub.f32 %v4337_v42, %v4430_v17  ;;  %v8603_v49 = vpop.f32.mrb[135].mxu1 }
 0x6db   : > { %v4471_v57 = vmul.f32 %v4468_v16, %v4453_v30  ;;  %9327 = vrcp.f32 %v4453_v30  ;;  %v4451_v40 = vadd.f32 %v4439_v12, %v4436_v55 }
 0x6dc   : > { %v4342_v8 = vpop.f32.mrb[136].mxu1 }
 0x6dd   : > { %9329 = vrcp.f32 %v4471_v57  ;;  %v4454_v60 = vadd.f32 0.0009, %v4451_v40  ;;  %v4440_v58 = vsub.f32 %v4342_v8, %v4431_v25  ;;  %v8606_v23 = vpop.f32.mrb[137].mxu1 }
 0x6df   : > { %v4472_v19 = vmul.f32 %v4469_v18, %v4454_v60  ;;  %9331 = vrcp.f32 %v4454_v60  ;;  %v4452_v14 = vadd.f32 %v4440_v58, %v4437_v45 }
 0x6e0   : > { %v4412_v11 = vpop.f32.mrb[138].mxu1 }
 0x6e1   : > { %9333 = vrcp.f32 %v4472_v19  ;;  %v4455_v32 = vadd.f32 0.0009, %v4452_v14  ;;  %v4441_v7 = vsub.f32 %v4412_v11, %v4432_v46  ;;  %v8615_v3 = vpop.f32.mrb[139].mxu1 }
 0x6e3   : > { %v4473_v2 = vmul.f32 %v4470_v61, %v4455_v32  ;;  %9335 = vrcp.f32 %v4455_v32  ;;  %v4444_v62 = vmul.f32 2.0, %v4441_v7 }
 0x6e4   : > { %v4417_v1 = vpop.f32.mrb[140].mxu1 }
 0x6e5   : > { %v9328_v34 = vpop.eup %9327  ;;  %9337 = vrcp.f32 %v4473_v2  ;;  %v4447_v9 = vadd.f32 0.0009, %v4444_v62  ;;  %v4442_v4 = vsub.f32 %v4417_v1, %v4433_v39  ;;  %v8618_v43 = vpop.f32.mrb[141].mxu1  ;;  %v4461_v39 = vadd.f32 0.0001, %v4458_v26 }
 0x6e7   : > { %v9330_v37 = vpop.eup %9329  ;;  %v4462_v51 = vmul.f32 %v4459_v44, %v4447_v9  ;;  %v4481_v15 = vmul.f32 %v9328_v34, %v4447_v9  ;;  %v4445_v20 = vmul.f32 2.0, %v4442_v4 }
 0x6e8   : > { %v4422_v53 = vpop.f32.mrb[142].mxu1 }
 0x6e9   : > { %v9332_v46 = vpop.eup %9331  ;;  %v4475_v17 = vmul.f32 %v9330_v37, %v4462_v51  ;;  %v4448_v50 = vadd.f32 0.0009, %v4445_v20  ;;  %v4443_v13 = vsub.f32 %v4422_v53, %v11102_v0  ;;  %v8621_v36 = vpop.f32.mrb[143].mxu1  ;;  %v4510_v24 = vsel %vm3830_vm5, %v4481_v15, 0.0 }
 0x6eb   : > { %v9334_v47 = vpop.eup %9333  ;;  %v4463_v25 = vmul.f32 %v4460_v63, %v4448_v50  ;;  %v4483_v38 = vmul.f32 %v9332_v46, %v4448_v50  ;;  %v4446_v48 = vmul.f32 2.0, %v4443_v13  ;;  %v4488_v27 = vsel %vm3830_vm5, %v4475_v17, 0.0  ;;  %v5751_v17 = vld [vmem:[#allocation9 + $0x60] sm:$0xf]  ;;  %v4855_v50 = vld [vmem:[#allocation7 + $0x128] sm:$0xf] }
 0x6ed   : > { %v9336_v54 = vpop.eup %9335  ;;  %v4477_v10 = vmul.f32 %v9334_v47, %v4463_v25  ;;  %v4449_v52 = vadd.f32 0.0009, %v4446_v48  ;;  %v4511_v55 = vsel %vm3830_vm5, %v4483_v38, 0.0 }
 0x6ee   : > { %v11108_v35 = vpop.f32.mrb[144].mxu1  ;;  %v4512_v29 = vadd.f32 %v4511_v55, %v4510_v24 }
 0x6ef   : > { %v9338_v45 = vpop.eup %9337  ;;  %v4464_v21 = vmul.f32 %v4461_v39, %v4449_v52  ;;  %v4485_v6 = vmul.f32 %v9336_v54, %v4449_v52  ;;  %v11110_v0 = vpop.f32.mrb[145].mxu1  ;;  %v4489_v56 = vsel %vm3830_vm5, %v4477_v10, 0.0  ;;  %v5187_v15 = vmul.f32 %v11108_v35, %v11108_v35 }
 0x6f0   : > { %v4490_v33 = vadd.f32 %v4489_v56, %v4488_v27  ;;  %v5186_v43 = vmul.f32 %v11110_v0, %v11110_v0 }
 0x6f1   : > { %v4513_v42 = vsel %vm3830_vm5, %v4485_v6, 0.0  ;;  %v4479_v16 = vmul.f32 %v9338_v45, %v4464_v21 }
 0x6f2   : > { %v4762_v30 = vpop.f32.mrb[146].mxu1  ;;  %v4514_v12 = vadd.f32 %v4513_v42, %v4512_v29  ;;  %v11213_v42 = vld [vmem:[#allocation6 + $0x80] sm:$0x3] }
 0x6f3   : > { %v8646_v49 = vpop.f32.mrb[147].mxu1  ;;  %v4491_v57 = vsel %vm3830_vm5, %v4479_v16, 0.0 }
 0x6f4   : > { %4515 = vadd.xlane.f32.xlu1 %v4514_v12  ;;  %v4492_v40 = vadd.f32 %v4491_v57, %v4490_v33 }
 0x6f6   : > { %v4767_v8 = vpop.f32.mrb[148].mxu1  ;;  %4493 = vadd.xlane.f32.xlu0 %v4492_v40 }
 0x6f7   : > { %v9097_v18 = vpack.c.bf16 %v4767_v8, %v4762_v30  ;;  %v8649_v60 = vpop.f32.mrb[149].mxu1 }
 0x6f9   : > { %9098 = vmatprep.subr.bf16.mxu0 %v9097_v18 }
 0x6fa   : > { %v4772_v58 = vpop.f32.mrb[150].mxu1  ;;  %9100 = vmatpush3.bf16.msra.mxu0 %v9097_v18 }
 0x6fb   : > { %v8652_v23 = vpop.f32.mrb[151].mxu1  ;;  %8657 = vmatprep.subr.mxu0 %v4772_v58 }
 0x6fe   : > { %8658 = vmatpush3.msra.mxu0 %v4772_v58 }
 0x6ff   : > { %8660 = vmatmul.mubr.msk.f32.vlgmr.msra.gmra.mrb[162].mxu0 %vm4016_vm6, %v11076_v22  ;;  %8662 = vmatprep.subr.msk.mxu0 %vm4863_vm7, %v11094_v31 }
 0x700   : > { %8664 = vmatprep.mubr.msk.f32.mxu0 %vm4856_vm8, %v11110_v0  ;;  %8663 = vmatpush3.msk.msra.mxu0 %vm4863_vm7, %v11094_v31 }
 0x703   : > { %8665 = vmatmul.mubr.msk.f32.vlgmr.msra.gmra.mrb[164].mxu0 %vm4856_vm8, %v11108_v35 }
 0x781   : > { %v4516_v19 = vpop.xlane.xlu1 %4515 }
 0x782   : > { %v4517_v14 = vrot.slane %v4516_v19, 4 }
 0x783   : > { %v4494_v59 = vpop.xlane.xlu0 %4493 }
 0x784   : > { %v4518_v11 = vadd.f32 %v4517_v14, %v4516_v19  ;;  %v4495_v61 = vrot.slane %v4494_v59, 4 }
 0x786   : > { %v4519_v32 = vrot.slane %v4518_v11, 2  ;;  %v4496_v7 = vadd.f32 %v4495_v61, %v4494_v59 }
 0x788   : > { %v4497_v22 = vrot.slane %v4496_v7, 2  ;;  %v4520_v3 = vadd.f32 %v4519_v32, %v4518_v11 }
 0x78a   : > { %v4498_v2 = vadd.f32 %v4497_v22, %v4496_v7  ;;  %v4521_v62 = vrot.slane %v4520_v3, 1 }
 0x78c   : > { %v4499_v44 = vrot.slane %v4498_v2, 1  ;;  %v4522_v34 = vadd.f32 %v4521_v62, %v4520_v3 }
 0x78e   : > { %v4500_v1 = vadd.f32 %v4499_v44, %v4498_v2 }
 0x790   : > { %9152 = vpush %v4500_v1 }
 0x791   : > { %9154 = vpush %v4522_v34 }
 0x7c1   : > { %s9153_s15 = spop %9152 }
 0x7c2   : > { %s9155_s19 = spop %9154  ;;  %s4504_s8 = smul.f32 0.0052083335, %s9153_s15 }
 0x7c3   : > { %s4526_s11 = smul.f32 0.0052083335, %s9155_s19 }
 0x7d2   : > { %v8661_v5 = vpop.f32.mrb[162].mxu0 }
 0x7d3   : > { %v5509_v9 = vmul.f32 %v8661_v5, %v11108_v35  ;;  %v4842_v4 = vpop.f32.mrb[163].mxu0  ;;  %v5348_v63 = vmul.f32 %v8661_v5, %v8661_v5 }
 0x7d4   : > { %v5508_v37 = vmul.f32 %v4842_v4, %v11110_v0  ;;  %8676 = vmatprep.mubr.msk.f32.mxu1 %vm4856_vm8, %v4842_v4  ;;  %v5347_v53 = vmul.f32 %v4842_v4, %v4842_v4 }
 0x7d5   : > { %8677 = vmatmul.mubr.msk.f32.vlgmr.msra.gmra.mrb[152].mxu1 %vm4856_vm8, %v8661_v5 }
 0x7d6   : > { %v8666_v51 = vpop.f32.mrb[164].mxu0  ;;  %8688 = vmatprep.mubr.msk.f32.mxu1 %vm4856_vm8, %v5186_v43  ;;  %8687 = vmatpush3.msk.msra.mxu1 %vm4863_vm7, %v11094_v31 }
 0x7d7   : > { %v4933_v20 = vpop.f32.mrb[165].mxu0  ;;  %8698 = vmatprep.subr.msk.mxu1 %vm4863_vm7, %v11094_v31 }
 0x7d8   : > { %v9101_v46 = vpack.c.bf16 %v8666_v51, %v4933_v20 }
 0x7d9   : > { %8689 = vmatmul.mubr.msk.f32.vlgmr.msra.gmra.mrb[154].mxu1 %vm4856_vm8, %v5187_v15 }
 0x7da   : > { %9103 = vmatprep.subr.msk.bf16.mxu0 %vm11138_vm10, %v9101_v46  ;;  %8700 = vmatprep.mubr.msk.f32.mxu1 %vm4856_vm8, %v5347_v53 }
 0x7db   : > { %9106 = vmatpush3.bf16.msk.msra.mxu0 %vm11138_vm10, %v9101_v46  ;;  %8699 = vmatpush3.msk.msra.mxu1 %vm4863_vm7, %v11094_v31 }
 0x7dc   : > { %8710 = vmatprep.subr.msk.mxu1 %vm4863_vm7, %v11094_v31 }
 0x7dd   : > { %8701 = vmatmul.mubr.msk.f32.vlgmr.msra.gmra.mrb[156].mxu1 %vm4856_vm8, %v5348_v63 }
 0x7de   : > { %8712 = vmatprep.mubr.msk.f32.mxu1 %vm4856_vm8, %v5508_v37  ;;  %8711 = vmatpush3.msk.msra.mxu1 %vm4863_vm7, %v11094_v31  ;;  %v4854_v31 = vld [vmem:[#allocation7 + $0x120] sm:$0xff] }
 0x7df   : > { %8722 = vmatprep.subr.msk.mxu1 %vm4863_vm7, %v5751_v17  ;;  %8671 = vmatprep.mubr.msk.f32.mxu0 %vm4942_vm11, %v4854_v31 }
 0x7e0   : > { %8672 = vmatmul.mubr.msk.f32.vlgmr.msra.gmra.mrb[166].mxu0 %vm4942_vm11, %v4855_v50 }
 0x7e1   : > { %8713 = vmatmul.mubr.msk.f32.vlgmr.msra.gmra.mrb[158].mxu1 %vm4856_vm8, %v5509_v9  ;;  %8683 = vmatprep.mubr.msk.f32.mxu0 %vm4942_vm11, %v4854_v31 }
 0x7e2   : > { %8724 = vmatprep.mubr.msk.f32.mxu1 %vm4856_vm8, %v11110_v0  ;;  %8723 = vmatpush3.msk.msra.mxu1 %vm4863_vm7, %v5751_v17  ;;  %v5753_v0 = vld [vmem:[#allocation10 + $0x90] sm:$0x3f] }
 0x7e3   : > { %8734 = vmatprep.subr.msk.mxu1 %vm4863_vm7, %v5751_v17 }
 0x7e5   : > { %8725 = vmatmul.mubr.msk.f32.vlgmr.msra.gmra.mrb[160].mxu1 %vm4856_vm8, %v11108_v35 }
 0x7e6   : > { %8736 = vmatprep.mubr.msk.f32.mxu1 %vm4856_vm8, %v4842_v4  ;;  %8735 = vmatpush3.msk.msra.mxu1 %vm4863_vm7, %v5751_v17 }
 0x7e7   : > { %8746 = vmatprep.subr.mxu1 %v9583_v28 }
 0x7e9   : > { %8737 = vmatmul.mubr.msk.f32.vlgmr.msra.gmra.mrb[162].mxu1 %vm4856_vm8, %v8661_v5 }
 0x7ea   : > { %8748 = vmatprep.mubr.msk.f32.mxu1 %vm9584_vm4, %v9583_v28  ;;  %8747 = vmatpush3.msk.msra.mxu1 %vm6064_vm12, %v11213_v42 }
 0x7eb   : > { %8756 = vmatprep.subr.mxu1 %v9583_v28 }
 0x8a8   : > { %v8678_v13 = vpop.f32.mrb[152].mxu1 }
 0x8a9   : > { %v5099_v36 = vpop.f32.mrb[153].mxu1 }
 0x8aa   : > { %v9107_v47 = vpack.c.bf16 %v8678_v13, %v5099_v36 }
 0x8ac   : > { %9109 = vmatprep.subr.msk.bf16.mxu0 %vm11138_vm10, %v9107_v47  ;;  %v8690_v25 = vpop.f32.mrb[154].mxu1 }
 0x8ad   : > { %9112 = vmatpush3.bf16.msk.msra.mxu0 %vm11138_vm10, %v9107_v47  ;;  %v5260_v38 = vpop.f32.mrb[155].mxu1 }
 0x8ae   : > { %v9113_v48 = vpack.c.bf16 %v8690_v25, %v5260_v38 }
 0x8b0   : > { %8684 = vmatmul.mubr.msk.f32.vlgmr.msra.gmra.mrb[168].mxu0 %vm4942_vm11, %v4855_v50  ;;  %9115 = vmatprep.subr.msk.bf16.mxu0 %vm11138_vm10, %v9113_v48  ;;  %v8702_v39 = vpop.f32.mrb[156].mxu1 }
 0x8b1   : > { %9118 = vmatpush3.bf16.msk.msra.mxu0 %vm11138_vm10, %v9113_v48  ;;  %v5421_v54 = vpop.f32.mrb[157].mxu1  ;;  %8695 = vmatprep.mubr.msk.f32.mxu0 %vm4942_vm11, %v4854_v31 }
 0x8b2   : > { %v9119_v10 = vpack.c.bf16 %v8702_v39, %v5421_v54 }
 0x8b3   : > { %v8673_v56 = vpop.f32.mrb[166].mxu0 }
 0x8b4   : > { %8696 = vmatmul.mubr.msk.f32.vlgmr.msra.gmra.mrb[170].mxu0 %vm4942_vm11, %v4855_v50  ;;  %9121 = vmatprep.subr.msk.bf16.mxu0 %vm11138_vm10, %v9119_v10  ;;  %v8714_v52 = vpop.f32.mrb[158].mxu1  ;;  %v5018_v33 = vpop.f32.mrb[167].mxu0  ;;  %v5670_v16 = vmul.f32 %v8673_v56, %v8673_v56 }
 0x8b5   : > { %9124 = vmatpush3.bf16.msk.msra.mxu0 %vm11138_vm10, %v9119_v10  ;;  %v5582_v24 = vpop.f32.mrb[159].mxu1  ;;  %8707 = vmatprep.mubr.msk.f32.mxu0 %vm4942_vm11, %v4854_v31  ;;  %v5669_v57 = vmul.f32 %v5018_v33, %v5018_v33 }
 0x8b6   : > { %v9125_v55 = vpack.c.bf16 %v8714_v52, %v5582_v24 }
 0x8b8   : > { %8708 = vmatmul.mubr.msk.f32.vlgmr.msra.gmra.mrb[172].mxu0 %vm4942_vm11, %v4855_v50  ;;  %9127 = vmatprep.subr.msk.bf16.mxu0 %vm11138_vm10, %v9125_v55  ;;  %v8726_v35 = vpop.f32.mrb[160].mxu1 }
 0x8b9   : > { %9130 = vmatpush3.bf16.msk.msra.mxu0 %vm11138_vm10, %v9125_v55  ;;  %v5823_v29 = vpop.f32.mrb[161].mxu1  ;;  %8719 = vmatprep.mubr.msk.f32.mxu0 %vm4942_vm11, %v4854_v31 }
 0x8ba   : > { %v9132_v45 = vpack.c.bf16 %v8726_v35, %v5823_v29  ;;  %9131 = vmatprep.subr.bf16.mxu0 %v9585_v41 }
 0x8bc   : > { %8720 = vmatmul.mubr.msk.f32.vlgmr.msra.gmra.mrb[174].mxu0 %vm4942_vm11, %v4855_v50  ;;  %v8738_v21 = vpop.f32.mrb[162].mxu1 }
 0x8bd   : > { %9134 = vmatpush3.bf16.msk.msra.mxu0 %vm11138_vm10, %v9132_v45  ;;  %v5974_v6 = vpop.f32.mrb[163].mxu1  ;;  %8731 = vmatprep.mubr.msk.f32.mxu0 %vm9584_vm4, %v9583_v28 }
 0x8be   : > { %v9136_v27 = vpack.c.bf16 %v8738_v21, %v5974_v6  ;;  %9135 = vmatprep.subr.bf16.mxu0 %v9585_v41 }
 0x8c0   : > { %8732 = vmatmul.mubr.msk.f32.vlgmr.msra.gmra.mrb[176].mxu0 %vm4942_vm11, %v5753_v0 }
 0x8c1   : > { %9138 = vmatpush3.bf16.msk.msra.mxu0 %vm11138_vm10, %v9136_v27  ;;  %8743 = vmatprep.mubr.msk.f32.mxu0 %vm9584_vm4, %v9583_v28 }
 0x8c2   : > { %8751 = vmatprep.subr.mxu0 %v9583_v28 }
 0x8c4   : > { %8744 = vmatmul.mubr.msk.f32.vlgmr.msra.gmra.mrb[178].mxu0 %vm4942_vm11, %v5753_v0 }
 0x8c5   : > { %8753 = vmatprep.mubr.msk.f32.mxu0 %vm9584_vm4, %v9583_v28 }
 0x983   : > { %v8685_v41 = vpop.f32.mrb[168].mxu0 }
 0x984   : > { %v5672_v30 = vmul.f32 %v8685_v41, %v8685_v41  ;;  %v5674_v12 = vmul.f32 %v8685_v41, %v8673_v56  ;;  %v5177_v49 = vpop.f32.mrb[169].mxu0 }
 0x985   : > { %v5671_v40 = vmul.f32 %v5177_v49, %v5177_v49  ;;  %v5673_v8 = vmul.f32 %v5177_v49, %v5018_v33 }
 0x986   : > { %v5696_v18 = vadd.f32 %v5672_v30, %v5670_v16  ;;  %v5690_v2 = vmul.f32 2.0, %v5674_v12 }
 0x987   : > { %v5695_v60 = vadd.f32 %v5671_v40, %v5669_v57  ;;  %v8697_v58 = vpop.f32.mrb[170].mxu0  ;;  %v5689_v5 = vmul.f32 2.0, %v5673_v8 }
 0x988   : > { %v5676_v23 = vsub.f32 %v8697_v58, %v5670_v16  ;;  %v5338_v19 = vpop.f32.mrb[171].mxu0  ;;  %v5698_v62 = vadd.f32 0.0001, %v5696_v18  ;;  %v5692_v53 = vadd.f32 0.0001, %v5690_v2 }
 0x989   : > { %v5675_v14 = vsub.f32 %v5338_v19, %v5669_v57  ;;  %v5697_v9 = vadd.f32 0.0001, %v5695_v60  ;;  %v5691_v17 = vadd.f32 0.0001, %v5689_v5  ;;  %v394_v19 = vlaneseq }
 0x98a   : > { %v4505_v5 = vstv %s4504_s8 }
 0x98b   : > { %v8709_v59 = vpop.f32.mrb[172].mxu0 }
 0x98c   : > { %v5678_v11 = vsub.f32 %v8709_v59, %v5672_v30  ;;  %v5499_v61 = vpop.f32.mrb[173].mxu0  ;;  %v1934_v59 = vstv %s1933_s27 }
 0x98d   : > { %v5677_v32 = vsub.f32 %v5499_v61, %v5671_v40 }
 0x98e   : > { %v5686_v7 = vadd.f32 %v5678_v11, %v5676_v23  ;;  %v11249_v11 = vld [vmem:[#allocation7 + $0x180] sm:$0x3f] }
 0x98f   : > { %v5685_v22 = vadd.f32 %v5677_v32, %v5675_v14  ;;  %v8721_v3 = vpop.f32.mrb[174].mxu0  ;;  %v11246_v14 = vshrl.u32 %v394_v19, 7 }
 0x990   : > { %v5688_v44 = vadd.f32 0.0009, %v5686_v7  ;;  %v5680_v1 = vsub.f32 %v8721_v3, %v5674_v12  ;;  %v5660_v34 = vpop.f32.mrb[175].mxu0  ;;  %v1974_v7 = vstv %s1973_s17  ;;  %v3418_v3 = vstv %s3417_s14 }
 0x991   : > { %v5687_v4 = vadd.f32 0.0009, %v5685_v22  ;;  %v5679_v43 = vsub.f32 %v5660_v34, %v5673_v8  ;;  %vm1897_vm15 = vcmp.eq.s32.totalorder %v11246_v14, 0  ;;  %vm1937_vm2 = vcmp.eq.s32.totalorder %v11246_v14, 1 }
 0x992   : > { %v5700_v37 = vmul.f32 %v5698_v62, %v5688_v44  ;;  %9339 = vrcp.f32 %v5688_v44  ;;  %v5682_v51 = vmul.f32 2.0, %v5680_v1  ;;  %v1935_v32 = vsel %vm1897_vm15, %v1934_v59, 0.0 }
 0x993   : > { %v5699_v15 = vmul.f32 %v5697_v9, %v5687_v4  ;;  %9341 = vrcp.f32 %v5687_v4  ;;  %v5681_v20 = vmul.f32 2.0, %v5679_v43  ;;  %v5904_v26 = vpop.f32.mrb[176].mxu0  ;;  %vm3393_vm3 = vcmp.eq.s32.totalorder %v11246_v14, 2 }
 0x994   : > { %9343 = vrcp.f32 %v5700_v37  ;;  %v5684_v46 = vadd.f32 0.0009, %v5682_v51  ;;  %8749 = vmatmul.mubr.msk.f32.vlgmr.msra.gmra.mrb[164].mxu1 %vm6060_vm13, %v5904_v26  ;;  %v8733_v63 = vpop.f32.mrb[177].mxu0  ;;  %v6362_v38 = vmul.f32 %v5904_v26, %v5904_v26  ;;  %v1975_v2 = vsel %vm1937_vm2, %v1974_v7, %v1935_v32 }
 0x995   : > { %9345 = vrcp.f32 %v5699_v15  ;;  %v5683_v31 = vadd.f32 0.0009, %v5681_v20  ;;  %8757 = vmatpush3.msk.msra.mxu1 %vm6064_vm12, %v11213_v42  ;;  %8758 = vmatprep.mubr.msk.f32.mxu1 %vm9584_vm4, %v9583_v28  ;;  %v3419_v44 = vsel %vm3393_vm3, %v3418_v3, %v1975_v2  ;;  %vm3421_vm5 = vcmp.eq.s32.totalorder %v11246_v14, 3 }
 0x996   : > { %v5694_v50 = vmul.f32 %v5692_v53, %v5684_v46  ;;  %8766 = vmatprep.subr.mxu1 %v9583_v28  ;;  %v3446_v1 = vstv %s3445_s24  ;;  %vm4486_vm6 = vcmp.eq.s32.totalorder %v11246_v14, 4  ;;  %vm4508_vm7 = vcmp.eq.s32.totalorder %v11246_v14, 5 }
 0x997   : > { %v5693_v13 = vmul.f32 %v5691_v17, %v5683_v31  ;;  %v6052_v36 = vpop.f32.mrb[178].mxu0  ;;  %v3447_v9 = vsel %vm3421_vm5, %v3446_v1, %v3419_v44  ;;  %v4527_v37 = vstv %s4526_s11  ;;  %vm5730_vm9 = vcmp.eq.s32.totalorder %v11246_v14, 7 }
 0x998   : > { %v6656_v47 = vmul.f32 %v6052_v36, %v5904_v26  ;;  %8759 = vmatmul.mubr.msk.f32.vlgmr.msra.gmra.mrb[166].mxu1 %vm6060_vm13, %v6052_v36  ;;  %v8745_v25 = vpop.f32.mrb[179].mxu0  ;;  %v6509_v24 = vmul.f32 %v6052_v36, %v6052_v36  ;;  %v4506_v43 = vsel %vm4486_vm6, %v4505_v5, %v3447_v9  ;;  %v396_v1 = vadd.s32 8, %v11246_v14 }
 0x999   : > { %8767 = vmatpush3.msk.msra.mxu1 %vm6064_vm12, %v11213_v42  ;;  %8768 = vmatprep.mubr.msk.f32.mxu1 %vm9584_vm4, %v9583_v28  ;;  %v4528_v15 = vsel %vm4508_vm7, %v4527_v37, %v4506_v43 }
 0x99a   : > { %8776 = vmatprep.subr.mxu1 %v9583_v28  ;;  %vm6824_vm10 = vcmp.eq.s32.totalorder %v396_v1, 8  ;;  %vm6843_vm11 = vcmp.eq.s32.totalorder %v396_v1, 9 }
 0x99c   : > { %v9340_v48 = vpop.eup %9339  ;;  %8769 = vmatmul.mubr.msk.f32.vlgmr.msra.gmra.mrb[168].mxu1 %vm6060_vm13, %v6362_v38 }
 0x99d   : > { %v9342_v39 = vpop.eup %9341  ;;  %v5708_v54 = vmul.f32 %v9340_v48, %v5684_v46  ;;  %8777 = vmatpush3.msk.msra.mxu1 %vm6064_vm12, %v11213_v42  ;;  %8778 = vmatprep.mubr.msk.f32.mxu1 %vm9584_vm4, %v9583_v28 }
 0x99e   : > { %v9344_v10 = vpop.eup %9343  ;;  %v5706_v52 = vmul.f32 %v9342_v39, %v5683_v31  ;;  %8786 = vmatprep.subr.mxu1 %v9583_v28 }
 0x99f   : > { %v9346_v55 = vpop.eup %9345  ;;  %v5733_v35 = vsel %vm5712_vm14, %v5708_v54, 0.0  ;;  %v5704_v29 = vmul.f32 %v9344_v10, %v5694_v50 }
 0x9a0   : > { %8779 = vmatmul.mubr.msk.f32.vlgmr.msra.gmra.mrb[170].mxu1 %vm6060_vm13, %v6509_v24  ;;  %v5732_v45 = vsel %vm4856_vm8, %v5706_v52, 0.0  ;;  %v5702_v21 = vmul.f32 %v9346_v55, %v5693_v13 }
 0x9a1   : > { %8787 = vmatpush3.msk.msra.mxu1 %vm6064_vm12, %v11213_v42  ;;  %8788 = vmatprep.mubr.msk.f32.mxu1 %vm9584_vm4, %v9583_v28  ;;  %v5734_v6 = vadd.f32 %v5733_v35, %v5732_v45  ;;  %v5713_v0 = vsel %vm5712_vm14, %v5704_v29, 0.0 }
 0x9a2   : > { %v5711_v27 = vsel %vm4856_vm8, %v5702_v21, 0.0  ;;  %vm5709_vm8 = vcmp.eq.s32.totalorder %v11246_v14, 6 }
 0x9a3   : > { %5735 = vadd.xlane.f32.xlu1 %v5734_v6  ;;  %v5714_v56 = vadd.f32 %v5713_v0, %v5711_v27 }
 0x9a4   : > { %8789 = vmatmul.mubr.msk.f32.vlgmr.msra.gmra.mrb[172].mxu1 %vm6060_vm13, %v6656_v47 }
 0x9a5   : > { %5715 = vadd.xlane.f32.xlu0 %v5714_v56 }
 0xa30   : > { %v5736_v33 = vpop.xlane.xlu1 %5735 }
 0xa31   : > { %v5737_v41 = vrot.slane %v5736_v33, 4 }
 0xa32   : > { %v5716_v16 = vpop.xlane.xlu0 %5715 }
 0xa33   : > { %v5738_v30 = vadd.f32 %v5737_v41, %v5736_v33  ;;  %v5717_v12 = vrot.slane %v5716_v16, 4 }
 0xa35   : > { %v5739_v49 = vrot.slane %v5738_v30, 2  ;;  %v5718_v42 = vadd.f32 %v5717_v12, %v5716_v16 }
 0xa37   : > { %v5719_v57 = vrot.slane %v5718_v42, 2  ;;  %v5740_v40 = vadd.f32 %v5739_v49, %v5738_v30 }
 0xa39   : > { %v5720_v8 = vadd.f32 %v5719_v57, %v5718_v42  ;;  %v5741_v18 = vrot.slane %v5740_v40, 1 }
 0xa3b   : > { %v5721_v60 = vrot.slane %v5720_v8, 1  ;;  %v5742_v23 = vadd.f32 %v5741_v18, %v5740_v40 }
 0xa3d   : > { %v5722_v58 = vadd.f32 %v5721_v60, %v5720_v8 }
 0xa3f   : > { %9156 = vpush %v5722_v58 }
 0xa40   : > { %9158 = vpush %v5742_v23 }
 0xa67   : > { %v6134_v61 = vpop.f32.mrb[164].mxu1 }
 0xa68   : > { %8752 = vmatpush3.msk.msra.mxu0 %vm6142_vm0, %v6134_v61  ;;  %v8750_v22 = vpop.f32.mrb[165].mxu1 }
 0xa69   : > { %8754 = vmatmul.mubr.msk.f32.vlgmr.msra.gmra.mrb[180].mxu0 %vm6138_vm1, %v11249_v11  ;;  %8761 = vmatprep.subr.mxu0 %v9583_v28 }
 0xa6a   : > { %8763 = vmatprep.mubr.msk.f32.mxu0 %vm9584_vm4, %v9583_v28 }
 0xa6b   : > { %v6285_v62 = vpop.f32.mrb[166].mxu1 }
 0xa6c   : > { %8762 = vmatpush3.msk.msra.mxu0 %vm6142_vm0, %v6285_v62  ;;  %v8760_v34 = vpop.f32.mrb[167].mxu1 }
 0xa6d   : > { %8764 = vmatmul.mubr.msk.f32.vlgmr.msra.gmra.mrb[182].mxu0 %vm6138_vm1, %v11249_v11  ;;  %8771 = vmatprep.subr.mxu0 %v9583_v28 }
 0xa6e   : > { %8773 = vmatprep.mubr.msk.f32.mxu0 %vm9584_vm4, %v9583_v28 }
 0xa6f   : > { %v6432_v4 = vpop.f32.mrb[168].mxu1 }
 0xa70   : > { %s9157_s13 = spop %9156  ;;  %v8770_v51 = vpop.f32.mrb[169].mxu1  ;;  %8772 = vmatpush3.msk.msra.mxu0 %vm6142_vm0, %v6432_v4 }
 0xa71   : > { %s5726_s12 = smul.f32 0.020833334, %s9157_s13  ;;  %s9159_s7 = spop %9158  ;;  %8774 = vmatmul.mubr.msk.f32.vlgmr.msra.gmra.mrb[184].mxu0 %vm6138_vm1, %v11249_v11  ;;  %8781 = vmatprep.subr.mxu0 %v9583_v28 }
 0xa72   : > { %s5746_s18 = smul.f32 0.020833334, %s9159_s7  ;;  %8783 = vmatprep.mubr.msk.f32.mxu0 %vm9584_vm4, %v9583_v28 }
 0xa73   : > { %v5727_v20 = vstv %s5726_s12  ;;  %v6579_v26 = vpop.f32.mrb[170].mxu1 }
 0xa74   : > { %v5728_v53 = vsel %vm5709_vm8, %v5727_v20, %v4528_v15  ;;  %v5747_v46 = vstv %s5746_s18  ;;  %v8780_v63 = vpop.f32.mrb[171].mxu1  ;;  %8782 = vmatpush3.msk.msra.mxu0 %vm6142_vm0, %v6579_v26 }
 0xa75   : > { %v5748_v17 = vsel %vm5730_vm9, %v5747_v46, %v5728_v53  ;;  %8784 = vmatmul.mubr.msk.f32.vlgmr.msra.gmra.mrb[186].mxu0 %vm6138_vm1, %v11249_v11  ;;  %8791 = vmatprep.subr.mxu0 %v9583_v28 }
 0xa76   : > { %6860 = vst [vmem:[%s11283_s20] sm:$0xff] %v5748_v17  ;;  %8793 = vmatprep.mubr.msk.f32.mxu0 %vm9584_vm4, %v9583_v28  ;;  %vm6825_vm4 = vcmask 13312  }
 0xa77   : > { %v6726_v31 = vpop.f32.mrb[172].mxu1 }
 0xa78   : > { %v8790_v50 = vpop.f32.mrb[173].mxu1  ;;  %8792 = vmatpush3.msk.msra.mxu0 %vm6142_vm0, %v6726_v31 }
 0xa79   : > { %8794 = vmatmul.mubr.msk.f32.vlgmr.msra.gmra.mrb[188].mxu0 %vm6138_vm1, %v11249_v11 }
 0xb3c   : > { %v6212_v13 = vpop.f32.mrb[180].mxu0 }
 0xb3d   : > { %v8755_v36 = vpop.f32.mrb[181].mxu0  ;;  %v6803_v25 = vmul.f32 %v6212_v13, %v6212_v13 }
 0xb40   : > { %v6358_v47 = vpop.f32.mrb[182].mxu0 }
 0xb41   : > { %v6804_v38 = vmul.f32 %v6358_v47, %v6358_v47  ;;  %v6805_v48 = vmul.f32 %v6358_v47, %v6212_v13  ;;  %v8765_v39 = vpop.f32.mrb[183].mxu0 }
 0xb43   : > { %v6816_v54 = vadd.f32 %v6804_v38, %v6803_v25  ;;  %v6813_v21 = vmul.f32 2.0, %v6805_v48 }
 0xb44   : > { %v6505_v10 = vpop.f32.mrb[184].mxu0 }
 0xb45   : > { %v6806_v52 = vsub.f32 %v6505_v10, %v6803_v25  ;;  %v8775_v24 = vpop.f32.mrb[185].mxu0  ;;  %v6817_v6 = vadd.f32 0.0001, %v6816_v54  ;;  %v6814_v16 = vadd.f32 0.0001, %v6813_v21 }
 0xb48   : > { %v6652_v55 = vpop.f32.mrb[186].mxu0 }
 0xb49   : > { %v6807_v28 = vsub.f32 %v6652_v55, %v6804_v38  ;;  %v8785_v35 = vpop.f32.mrb[187].mxu0 }
 0xb4b   : > { %v6811_v29 = vadd.f32 %v6807_v28, %v6806_v52 }
 0xb4c   : > { %v6799_v45 = vpop.f32.mrb[188].mxu0 }
 0xb4d   : > { %v6812_v0 = vadd.f32 0.0009, %v6811_v29  ;;  %v6808_v27 = vsub.f32 %v6799_v45, %v6805_v48  ;;  %v8795_v56 = vpop.f32.mrb[189].mxu0 }
 0xb4f   : > { %v6818_v33 = vmul.f32 %v6817_v6, %v6812_v0  ;;  %9347 = vrcp.f32 %v6812_v0  ;;  %v6809_v41 = vmul.f32 2.0, %v6808_v27 }
 0xb51   : > { %9349 = vrcp.f32 %v6818_v33  ;;  %v6810_v30 = vadd.f32 0.0009, %v6809_v41 }
 0xb53   : > { %v6815_v12 = vmul.f32 %v6814_v16, %v6810_v30 }
 0xb59   : > { %v9348_v49 = vpop.eup %9347 }
 0xb5a   : > { %v6822_v42 = vmul.f32 %v9348_v49, %v6810_v30 }
 0xb5b   : > { %v9350_v57 = vpop.eup %9349 }
 0xb5c   : > { %v6844_v40 = vsel %vm6825_vm4, %v6822_v42, 0.0  ;;  %v6820_v8 = vmul.f32 %v9350_v57, %v6815_v12 }
 0xb5d   : > { %6845 = vadd.xlane.f32.xlu1 %v6844_v40 }
 0xb5e   : > { %v6826_v18 = vsel %vm6825_vm4, %v6820_v8, 0.0 }
 0xb5f   : > { %6827 = vadd.xlane.f32.xlu0 %v6826_v18 }
 0xbea   : > { %v6846_v60 = vpop.xlane.xlu1 %6845 }
 0xbeb   : > { %v6847_v58 = vrot.slane %v6846_v60, 4 }
 0xbec   : > { %v6828_v23 = vpop.xlane.xlu0 %6827 }
 0xbed   : > { %v6848_v19 = vadd.f32 %v6847_v58, %v6846_v60  ;;  %v6829_v59 = vrot.slane %v6828_v23, 4 }
 0xbef   : > { %v6849_v11 = vrot.slane %v6848_v19, 2  ;;  %v6830_v61 = vadd.f32 %v6829_v59, %v6828_v23 }
 0xbf1   : > { %v6850_v32 = vadd.f32 %v6849_v11, %v6848_v19  ;;  %v6831_v7 = vrot.slane %v6830_v61, 2 }
 0xbf3   : > { %v6832_v22 = vadd.f32 %v6831_v7, %v6830_v61  ;;  %v6851_v3 = vrot.slane %v6850_v32, 1 }
 0xbf5   : > { %v6833_v2 = vrot.slane %v6832_v22, 1  ;;  %v6852_v44 = vadd.f32 %v6851_v3, %v6850_v32 }
 0xbf7   : > { %v6834_v62 = vadd.f32 %v6833_v2, %v6832_v22 }
 0xbf9   : > { %9160 = vpush %v6834_v62 }
 0xbfa   : > { %9162 = vpush %v6852_v44 }
 0xc2a   : > { %s9161_s26 = spop %9160 }
 0xc2b   : > { %s6838_s27 = smul.f32 0.083333336, %s9161_s26  ;;  %s9163_s21 = spop %9162 }
 0xc2c   : > { %s6856_s9 = smul.f32 0.083333336, %s9163_s21 }
 0xc2d   : > { %v6839_v34 = vstv %s6838_s27 }
 0xc2e   : > { %v6841_v5 = vsel %vm6824_vm10, %v6839_v34, 0.0  ;;  %v6857_v9 = vstv %s6856_s9 }
 0xc2f   : > { %v6859_v4 = vsel %vm6843_vm11, %v6857_v9, %v6841_v5 }
 0xc30   : > { %6861 = vst [vmem:[%s11283_s20 + $0x8] sm:$0xff] %v6859_v4 }
 0xc31 PF: > { %p21_p10 = scmp.ge.s32.totalorder %s9773_s30, 4   ;;  %s11364_s21 = smov %s9565_s22 }
 0xc32   : > { %s11365_s22 = smov %s9569_s23  ;;  %s11366_s23 = smov %s9784_s29 }
 0xc33   : > { %s11367_s24 = smov %s9773_s30  ;;  %23 = sbr.rel (!%p21_p10) target bundleno = 7 (0x7), region = 127 }
 0xc3a   :  { %6883 = vsyncpa [#allocation3], 1 }
 0xc3b   :  { %6885 = vsyncpa [#allocation3 + $0x1], 1 }
 0xc3c   :  { %6886 = vsyncpa [#allocation5], 1 }
 0xc3d   :  { %6888 = vsyncpa [#allocation5 + $0x1], 1 }
 0xc3e   :  { %6889 = vsyncpa [#allocation8], 1 }
 0xc3f   :  { %6890 = vsyncpa [#allocation11], 1 }

</bundles_post_ra>
